<compile_context>
chip_gen: v7x
topology: tpu7x:2x2x1
jax: 0.10.0
libtpu: 0.0.40
codegen_flags: <defaults>
</compile_context>

<pallas_src>
import functools

import jax
import jax.numpy as jnp
from jax.experimental import pallas as pl
from jax.experimental.pallas import tpu as pltpu

BN_EPS = 1e-5


# ---------------------------------------------------------------------------
# Pallas kernel: direct conv (tap accumulation) + folded-BN bias + ReLU
# ---------------------------------------------------------------------------
def _convbr_kernel(x_ref, w_ref, b_ref, o_ref, *, kh, kw, stride, dilation,
                   cin, ho, wo):
    """Fused ConvBR for one batch element.

    x_ref: (Hs, Ws, stride*stride*cin) bf16 -- zero-padded NHWC image,
           space-to-depth applied for stride > 1 so taps are unit-stride slices.
    w_ref: (kh*kw, cin, cout)          bf16 -- BN scale already folded in.
    b_ref: (1, cout)                   f32  -- folded BN bias.
    o_ref: (ho*wo, cout)               f32  -- flattened-spatial output.
    """
    cout = w_ref.shape[-1]
    acc = jnp.zeros((ho * wo, cout), jnp.float32)
    for di in range(kh):
        for dj in range(kw):
            qi, ri = divmod(di * dilation, stride)
            qj, rj = divmod(dj * dilation, stride)
            c0 = (ri * stride + rj) * cin
            patch = x_ref[qi:qi + ho, qj:qj + wo, c0:c0 + cin]     # (ho, wo, cin)
            acc += jnp.dot(patch.reshape(ho * wo, cin),
                           w_ref[di * kw + dj],
                           preferred_element_type=jnp.float32)
    o_ref[...] = jnp.maximum(acc + b_ref[...], 0.0).astype(o_ref.dtype)


# ---------------------------------------------------------------------------
# Wrapper (PyTorch NCHW interface)
# ---------------------------------------------------------------------------
def convbr_forward(x_nchw, weight_oihw, bn_gamma, bn_beta, bn_mean, bn_var,
                   *, stride=1, padding=0, dilation=1, eps=BN_EPS):
    B, Cin, H, W = x_nchw.shape
    Cout, _, kh, kw = weight_oihw.shape
    s, d = stride, dilation

    # Fold inference-mode BatchNorm into per-channel scale/bias; fold the scale
    # into the conv weights (f32), then cast the weights to bf16 for the MXU.
    scale = bn_gamma / jnp.sqrt(bn_var + eps)
    bias = (bn_beta - bn_mean * scale).reshape(1, Cout).astype(jnp.float32)
    w_hwio = jnp.transpose(weight_oihw, (2, 3, 1, 0)) * scale[None, None, None, :]
    w_taps = w_hwio.reshape(kh * kw, Cin, Cout).astype(jnp.bfloat16)

    # NHWC, zero pad, bf16 activations.
    x = jnp.transpose(x_nchw, (0, 2, 3, 1)).astype(jnp.bfloat16)
    x = jnp.pad(x, ((0, 0), (padding, padding), (padding, padding), (0, 0)))
    Hp, Wp = H + 2 * padding, W + 2 * padding
    dkh, dkw = d * (kh - 1) + 1, d * (kw - 1) + 1
    Ho, Wo = (Hp - dkh) // s + 1, (Wp - dkw) // s + 1

    # Space-to-depth so strided taps become unit-stride slices inside the kernel.
    Hs, Ws = -(-Hp // s), -(-Wp // s)
    if s > 1:
        x = jnp.pad(x, ((0, 0), (0, Hs * s - Hp), (0, Ws * s - Wp), (0, 0)))
        x = x.reshape(B, Hs, s, Ws, s, Cin)
        x = x.transpose(0, 1, 3, 2, 4, 5).reshape(B, Hs, Ws, s * s * Cin)
    C2 = s * s * Cin

    kernel = functools.partial(_convbr_kernel, kh=kh, kw=kw, stride=s,
                               dilation=d, cin=Cin, ho=Ho, wo=Wo)
    out = pl.pallas_call(
        kernel,
        out_shape=jax.ShapeDtypeStruct((B, Ho * Wo, Cout), jnp.float32),
        grid=(B,),
        in_specs=[
            pl.BlockSpec((None, Hs, Ws, C2), lambda b: (b, 0, 0, 0)),
            pl.BlockSpec((kh * kw, Cin, Cout), lambda b: (0, 0, 0)),
            pl.BlockSpec((1, Cout), lambda b: (0, 0)),
        ],
        out_specs=pl.BlockSpec((None, Ho * Wo, Cout), lambda b: (b, 0, 0)),
        compiler_params=pltpu.CompilerParams(
            dimension_semantics=("parallel",)),
    )(x, w_taps, bias)

    # NHWC -> NCHW only at the module boundary.
    return out.reshape(B, Ho, Wo, Cout).transpose(0, 3, 1, 2)


# ---------------------------------------------------------------------------
# Reference (same bf16 operand rounding, XLA conv) for a numerical check
# ---------------------------------------------------------------------------
def convbr_reference(x_nchw, weight_oihw, bn_gamma, bn_beta, bn_mean, bn_var,
                     *, stride=1, padding=0, dilation=1, eps=BN_EPS):
    scale = bn_gamma / jnp.sqrt(bn_var + eps)
    bias = bn_beta - bn_mean * scale
    w = (jnp.transpose(weight_oihw, (2, 3, 1, 0)) * scale[None, None, None, :]
         ).astype(jnp.bfloat16).astype(jnp.float32)
    x = jnp.transpose(x_nchw, (0, 2, 3, 1)).astype(jnp.bfloat16).astype(jnp.float32)
    y = jax.lax.conv_general_dilated(
        x, w, window_strides=(stride, stride),
        padding=((padding, padding), (padding, padding)),
        rhs_dilation=(dilation, dilation),
        dimension_numbers=("NHWC", "HWIO", "NHWC"),
        precision=jax.lax.Precision.HIGHEST)
    y = jnp.maximum(y + bias[None, None, None, :], 0.0)
    return jnp.transpose(y, (0, 3, 1, 2))


# ---------------------------------------------------------------------------
if __name__ == "__main__":
    key = jax.random.PRNGKey(0)
    kx1, kx2, kw_, kg, kb, km, kv = jax.random.split(key, 7)

    Cin, Cout, K = 32, 128, 3
    fan_in = Cin * K * K
    # nn.init.kaiming_normal_(w, a=1): std = sqrt(2 / (1 + a^2) / fan_in)
    w = jax.random.normal(kw_, (Cout, Cin, K, K), jnp.float32) / jnp.sqrt(fan_in)
    gamma = 1.0 + 0.1 * jax.random.normal(kg, (Cout,), jnp.float32)
    beta = 0.1 * jax.random.normal(kb, (Cout,), jnp.float32)
    mean = 0.1 * jax.random.normal(km, (Cout,), jnp.float32)
    var = 0.9 + 0.1 * jnp.abs(jax.random.normal(kv, (Cout,), jnp.float32))

    # Case 1: stride=1, padding=1 (the common ConvBR configuration).
    x1 = jax.random.normal(kx1, (2, Cin, 16, 16), jnp.float32)
    f1 = jax.jit(functools.partial(convbr_forward, stride=1, padding=1))
    y1 = f1(x1, w, gamma, beta, mean, var)
    jax.block_until_ready(y1)
    assert y1.shape == (2, Cout, 16, 16)
    r1 = convbr_reference(x1, w, gamma, beta, mean, var, stride=1, padding=1)
    assert float(jnp.max(jnp.abs(y1 - r1))) < 1e-2, "stride-1 mismatch"

    # Case 2: stride=2, padding=1 (exercises the space-to-depth path).
    x2 = jax.random.normal(kx2, (2, Cin, 32, 32), jnp.float32)
    f2 = jax.jit(functools.partial(convbr_forward, stride=2, padding=1))
    y2 = f2(x2, w, gamma, beta, mean, var)
    jax.block_until_ready(y2)
    assert y2.shape == (2, Cout, 16, 16)
    r2 = convbr_reference(x2, w, gamma, beta, mean, var, stride=2, padding=1)
    assert float(jnp.max(jnp.abs(y2 - r2))) < 1e-2, "stride-2 mismatch"

    print("KERNEL_OK")
</pallas_src>

<mosaic_0001>
module attributes {stable_mosaic.version = 11 : i64} {
  func.func @_convbr_kernel(%arg0: i32, %arg1: memref<1x18x18x32xbf16, #tpu.memory_space<vmem>>, %arg2: memref<9x32x128xbf16, #tpu.memory_space<vmem>>, %arg3: memref<1x128xf32, #tpu.memory_space<vmem>>, %arg4: memref<1x256x128xf32, #tpu.memory_space<vmem>>) attributes {dimension_semantics = [#tpu.dimension_semantics<parallel>], iteration_bounds = array<i64: 2>, scalar_prefetch = 0 : i64, scratch_operands = 0 : i64, tpu.core_type = #tpu.core_type<tc>, window_params = [{transform_indices = @transform_0, window_bounds = array<i64: 1, 18, 18, 32>}, {pipeline_mode = #tpu.pipeline_mode<synchronous>, transform_indices = @transform_1, window_bounds = array<i64: 9, 32, 128>}, {pipeline_mode = #tpu.pipeline_mode<synchronous>, transform_indices = @transform_2, window_bounds = array<i64: 1, 128>}, {transform_indices = @transform_3, window_bounds = array<i64: 1, 256, 128>}]} {
    %cst = arith.constant 0.000000e+00 : f32
    %0 = vector.broadcast %cst : f32 to vector<256x128xf32>
    %c0 = arith.constant 0 : index
    %c0_0 = arith.constant 0 : index
    %c0_1 = arith.constant 0 : index
    %c0_2 = arith.constant 0 : index
    %1 = vector.load %arg1[%c0, %c0_0, %c0_1, %c0_2] : memref<1x18x18x32xbf16, #tpu.memory_space<vmem>>, vector<1x16x16x32xbf16>
    %2 = vector.shape_cast %1 : vector<1x16x16x32xbf16> to vector<16x16x32xbf16>
    %3 = vector.shape_cast %2 : vector<16x16x32xbf16> to vector<256x32xbf16>
    %c0_3 = arith.constant 0 : index
    %c0_4 = arith.constant 0 : index
    %c0_5 = arith.constant 0 : index
    %4 = vector.load %arg2[%c0_3, %c0_4, %c0_5] : memref<9x32x128xbf16, #tpu.memory_space<vmem>>, vector<1x32x128xbf16>
    %5 = vector.shape_cast %4 : vector<1x32x128xbf16> to vector<32x128xbf16>
    %cst_6 = arith.constant dense<0.000000e+00> : vector<256x128xf32>
    %6 = tpu.matmul %3, %5, %cst_6 {dimension_numbers = #tpu.dot_dimension_numbers<[1], [0], [0], [1], [0, 0, 1, 1], [], []>} : vector<256x32xbf16>, vector<32x128xbf16>, vector<256x128xf32> -> vector<256x128xf32>
    %7 = arith.addf %0, %6 : vector<256x128xf32>
    %c0_7 = arith.constant 0 : index
    %c0_8 = arith.constant 0 : index
    %c1 = arith.constant 1 : index
    %c0_9 = arith.constant 0 : index
    %8 = vector.load %arg1[%c0_7, %c0_8, %c1, %c0_9] : memref<1x18x18x32xbf16, #tpu.memory_space<vmem>>, vector<1x16x16x32xbf16>
    %9 = vector.shape_cast %8 : vector<1x16x16x32xbf16> to vector<16x16x32xbf16>
    %10 = vector.shape_cast %9 : vector<16x16x32xbf16> to vector<256x32xbf16>
    %c1_10 = arith.constant 1 : index
    %c0_11 = arith.constant 0 : index
    %c0_12 = arith.constant 0 : index
    %11 = vector.load %arg2[%c1_10, %c0_11, %c0_12] : memref<9x32x128xbf16, #tpu.memory_space<vmem>>, vector<1x32x128xbf16>
    %12 = vector.shape_cast %11 : vector<1x32x128xbf16> to vector<32x128xbf16>
    %cst_13 = arith.constant dense<0.000000e+00> : vector<256x128xf32>
    %13 = tpu.matmul %10, %12, %cst_13 {dimension_numbers = #tpu.dot_dimension_numbers<[1], [0], [0], [1], [0, 0, 1, 1], [], []>} : vector<256x32xbf16>, vector<32x128xbf16>, vector<256x128xf32> -> vector<256x128xf32>
    %14 = arith.addf %7, %13 : vector<256x128xf32>
    %c0_14 = arith.constant 0 : index
    %c0_15 = arith.constant 0 : index
    %c2 = arith.constant 2 : index
    %c0_16 = arith.constant 0 : index
    %15 = vector.load %arg1[%c0_14, %c0_15, %c2, %c0_16] : memref<1x18x18x32xbf16, #tpu.memory_space<vmem>>, vector<1x16x16x32xbf16>
    %16 = vector.shape_cast %15 : vector<1x16x16x32xbf16> to vector<16x16x32xbf16>
    %17 = vector.shape_cast %16 : vector<16x16x32xbf16> to vector<256x32xbf16>
    %c2_17 = arith.constant 2 : index
    %c0_18 = arith.constant 0 : index
    %c0_19 = arith.constant 0 : index
    %18 = vector.load %arg2[%c2_17, %c0_18, %c0_19] : memref<9x32x128xbf16, #tpu.memory_space<vmem>>, vector<1x32x128xbf16>
    %19 = vector.shape_cast %18 : vector<1x32x128xbf16> to vector<32x128xbf16>
    %cst_20 = arith.constant dense<0.000000e+00> : vector<256x128xf32>
    %20 = tpu.matmul %17, %19, %cst_20 {dimension_numbers = #tpu.dot_dimension_numbers<[1], [0], [0], [1], [0, 0, 1, 1], [], []>} : vector<256x32xbf16>, vector<32x128xbf16>, vector<256x128xf32> -> vector<256x128xf32>
    %21 = arith.addf %14, %20 : vector<256x128xf32>
    %c0_21 = arith.constant 0 : index
    %c1_22 = arith.constant 1 : index
    %c0_23 = arith.constant 0 : index
    %c0_24 = arith.constant 0 : index
    %22 = vector.load %arg1[%c0_21, %c1_22, %c0_23, %c0_24] : memref<1x18x18x32xbf16, #tpu.memory_space<vmem>>, vector<1x16x16x32xbf16>
    %23 = vector.shape_cast %22 : vector<1x16x16x32xbf16> to vector<16x16x32xbf16>
    %24 = vector.shape_cast %23 : vector<16x16x32xbf16> to vector<256x32xbf16>
    %c3 = arith.constant 3 : index
    %c0_25 = arith.constant 0 : index
    %c0_26 = arith.constant 0 : index
    %25 = vector.load %arg2[%c3, %c0_25, %c0_26] : memref<9x32x128xbf16, #tpu.memory_space<vmem>>, vector<1x32x128xbf16>
    %26 = vector.shape_cast %25 : vector<1x32x128xbf16> to vector<32x128xbf16>
    %cst_27 = arith.constant dense<0.000000e+00> : vector<256x128xf32>
    %27 = tpu.matmul %24, %26, %cst_27 {dimension_numbers = #tpu.dot_dimension_numbers<[1], [0], [0], [1], [0, 0, 1, 1], [], []>} : vector<256x32xbf16>, vector<32x128xbf16>, vector<256x128xf32> -> vector<256x128xf32>
    %28 = arith.addf %21, %27 : vector<256x128xf32>
    %c0_28 = arith.constant 0 : index
    %c1_29 = arith.constant 1 : index
    %c1_30 = arith.constant 1 : index
    %c0_31 = arith.constant 0 : index
    %29 = vector.load %arg1[%c0_28, %c1_29, %c1_30, %c0_31] : memref<1x18x18x32xbf16, #tpu.memory_space<vmem>>, vector<1x16x16x32xbf16>
    %30 = vector.shape_cast %29 : vector<1x16x16x32xbf16> to vector<16x16x32xbf16>
    %31 = vector.shape_cast %30 : vector<16x16x32xbf16> to vector<256x32xbf16>
    %c4 = arith.constant 4 : index
    %c0_32 = arith.constant 0 : index
    %c0_33 = arith.constant 0 : index
    %32 = vector.load %arg2[%c4, %c0_32, %c0_33] : memref<9x32x128xbf16, #tpu.memory_space<vmem>>, vector<1x32x128xbf16>
    %33 = vector.shape_cast %32 : vector<1x32x128xbf16> to vector<32x128xbf16>
    %cst_34 = arith.constant dense<0.000000e+00> : vector<256x128xf32>
    %34 = tpu.matmul %31, %33, %cst_34 {dimension_numbers = #tpu.dot_dimension_numbers<[1], [0], [0], [1], [0, 0, 1, 1], [], []>} : vector<256x32xbf16>, vector<32x128xbf16>, vector<256x128xf32> -> vector<256x128xf32>
    %35 = arith.addf %28, %34 : vector<256x128xf32>
    %c0_35 = arith.constant 0 : index
    %c1_36 = arith.constant 1 : index
    %c2_37 = arith.constant 2 : index
    %c0_38 = arith.constant 0 : index
    %36 = vector.load %arg1[%c0_35, %c1_36, %c2_37, %c0_38] : memref<1x18x18x32xbf16, #tpu.memory_space<vmem>>, vector<1x16x16x32xbf16>
    %37 = vector.shape_cast %36 : vector<1x16x16x32xbf16> to vector<16x16x32xbf16>
    %38 = vector.shape_cast %37 : vector<16x16x32xbf16> to vector<256x32xbf16>
    %c5 = arith.constant 5 : index
    %c0_39 = arith.constant 0 : index
    %c0_40 = arith.constant 0 : index
    %39 = vector.load %arg2[%c5, %c0_39, %c0_40] : memref<9x32x128xbf16, #tpu.memory_space<vmem>>, vector<1x32x128xbf16>
    %40 = vector.shape_cast %39 : vector<1x32x128xbf16> to vector<32x128xbf16>
    %cst_41 = arith.constant dense<0.000000e+00> : vector<256x128xf32>
    %41 = tpu.matmul %38, %40, %cst_41 {dimension_numbers = #tpu.dot_dimension_numbers<[1], [0], [0], [1], [0, 0, 1, 1], [], []>} : vector<256x32xbf16>, vector<32x128xbf16>, vector<256x128xf32> -> vector<256x128xf32>
    %42 = arith.addf %35, %41 : vector<256x128xf32>
    %c0_42 = arith.constant 0 : index
    %c2_43 = arith.constant 2 : index
    %c0_44 = arith.constant 0 : index
    %c0_45 = arith.constant 0 : index
    %43 = vector.load %arg1[%c0_42, %c2_43, %c0_44, %c0_45] : memref<1x18x18x32xbf16, #tpu.memory_space<vmem>>, vector<1x16x16x32xbf16>
    %44 = vector.shape_cast %43 : vector<1x16x16x32xbf16> to vector<16x16x32xbf16>
    %45 = vector.shape_cast %44 : vector<16x16x32xbf16> to vector<256x32xbf16>
    %c6 = arith.constant 6 : index
    %c0_46 = arith.constant 0 : index
    %c0_47 = arith.constant 0 : index
    %46 = vector.load %arg2[%c6, %c0_46, %c0_47] : memref<9x32x128xbf16, #tpu.memory_space<vmem>>, vector<1x32x128xbf16>
    %47 = vector.shape_cast %46 : vector<1x32x128xbf16> to vector<32x128xbf16>
    %cst_48 = arith.constant dense<0.000000e+00> : vector<256x128xf32>
    %48 = tpu.matmul %45, %47, %cst_48 {dimension_numbers = #tpu.dot_dimension_numbers<[1], [0], [0], [1], [0, 0, 1, 1], [], []>} : vector<256x32xbf16>, vector<32x128xbf16>, vector<256x128xf32> -> vector<256x128xf32>
    %49 = arith.addf %42, %48 : vector<256x128xf32>
    %c0_49 = arith.constant 0 : index
    %c2_50 = arith.constant 2 : index
    %c1_51 = arith.constant 1 : index
    %c0_52 = arith.constant 0 : index
    %50 = vector.load %arg1[%c0_49, %c2_50, %c1_51, %c0_52] : memref<1x18x18x32xbf16, #tpu.memory_space<vmem>>, vector<1x16x16x32xbf16>
    %51 = vector.shape_cast %50 : vector<1x16x16x32xbf16> to vector<16x16x32xbf16>
    %52 = vector.shape_cast %51 : vector<16x16x32xbf16> to vector<256x32xbf16>
    %c7 = arith.constant 7 : index
    %c0_53 = arith.constant 0 : index
    %c0_54 = arith.constant 0 : index
    %53 = vector.load %arg2[%c7, %c0_53, %c0_54] : memref<9x32x128xbf16, #tpu.memory_space<vmem>>, vector<1x32x128xbf16>
    %54 = vector.shape_cast %53 : vector<1x32x128xbf16> to vector<32x128xbf16>
    %cst_55 = arith.constant dense<0.000000e+00> : vector<256x128xf32>
    %55 = tpu.matmul %52, %54, %cst_55 {dimension_numbers = #tpu.dot_dimension_numbers<[1], [0], [0], [1], [0, 0, 1, 1], [], []>} : vector<256x32xbf16>, vector<32x128xbf16>, vector<256x128xf32> -> vector<256x128xf32>
    %56 = arith.addf %49, %55 : vector<256x128xf32>
    %c0_56 = arith.constant 0 : index
    %c2_57 = arith.constant 2 : index
    %c2_58 = arith.constant 2 : index
    %c0_59 = arith.constant 0 : index
    %57 = vector.load %arg1[%c0_56, %c2_57, %c2_58, %c0_59] : memref<1x18x18x32xbf16, #tpu.memory_space<vmem>>, vector<1x16x16x32xbf16>
    %58 = vector.shape_cast %57 : vector<1x16x16x32xbf16> to vector<16x16x32xbf16>
    %59 = vector.shape_cast %58 : vector<16x16x32xbf16> to vector<256x32xbf16>
    %c8 = arith.constant 8 : index
    %c0_60 = arith.constant 0 : index
    %c0_61 = arith.constant 0 : index
    %60 = vector.load %arg2[%c8, %c0_60, %c0_61] : memref<9x32x128xbf16, #tpu.memory_space<vmem>>, vector<1x32x128xbf16>
    %61 = vector.shape_cast %60 : vector<1x32x128xbf16> to vector<32x128xbf16>
    %cst_62 = arith.constant dense<0.000000e+00> : vector<256x128xf32>
    %62 = tpu.matmul %59, %61, %cst_62 {dimension_numbers = #tpu.dot_dimension_numbers<[1], [0], [0], [1], [0, 0, 1, 1], [], []>} : vector<256x32xbf16>, vector<32x128xbf16>, vector<256x128xf32> -> vector<256x128xf32>
    %63 = arith.addf %56, %62 : vector<256x128xf32>
    %c0_63 = arith.constant 0 : index
    %c0_64 = arith.constant 0 : index
    %64 = vector.load %arg3[%c0_63, %c0_64] : memref<1x128xf32, #tpu.memory_space<vmem>>, vector<1x128xf32>
    %65 = vector.broadcast %64 : vector<1x128xf32> to vector<256x128xf32>
    %66 = arith.addf %63, %65 : vector<256x128xf32>
    %cst_65 = arith.constant 0.000000e+00 : f32
    %67 = vector.broadcast %cst_65 : f32 to vector<256x128xf32>
    %68 = arith.maximumf %66, %67 : vector<256x128xf32>
    %c0_66 = arith.constant 0 : index
    %c0_67 = arith.constant 0 : index
    %c0_68 = arith.constant 0 : index
    %69 = vector.load %arg4[%c0_66, %c0_67, %c0_68] : memref<1x256x128xf32, #tpu.memory_space<vmem>>, vector<1x256x128xf32>
    %70 = vector.shape_cast %69 : vector<1x256x128xf32> to vector<256x128xf32>
    %71 = vector.shape_cast %68 : vector<256x128xf32> to vector<1x256x128xf32>
    tpu.vector_store %arg4[%c0_66, %c0_67, %c0_68], %71 {strides = array<i32>} : memref<1x256x128xf32, #tpu.memory_space<vmem>>, vector<1x256x128xf32>,
    return
  }
  func.func @transform_0(%arg0: i32) -> (i32, i32, i32, i32) {
    %c0_i32 = arith.constant 0 : i32
    %c0_i32_0 = arith.constant 0 : i32
    %c0_i32_1 = arith.constant 0 : i32
    %c0_i32_2 = arith.constant 0 : i32
    return %arg0, %c0_i32, %c0_i32_0, %c0_i32_1 : i32, i32, i32, i32
  }
  func.func @transform_1(%arg0: i32) -> (i32, i32, i32) {
    %c0_i32 = arith.constant 0 : i32
    %c0_i32_0 = arith.constant 0 : i32
    %c0_i32_1 = arith.constant 0 : i32
    %c0_i32_2 = arith.constant 0 : i32
    return %c0_i32, %c0_i32_0, %c0_i32_1 : i32, i32, i32
  }
  func.func @transform_2(%arg0: i32) -> (i32, i32) {
    %c0_i32 = arith.constant 0 : i32
    %c0_i32_0 = arith.constant 0 : i32
    %c0_i32_1 = arith.constant 0 : i32
    return %c0_i32, %c0_i32_0 : i32, i32
  }
  func.func @transform_3(%arg0: i32) -> (i32, i32, i32) {
    %c0_i32 = arith.constant 0 : i32
    %c0_i32_0 = arith.constant 0 : i32
    %c0_i32_1 = arith.constant 0 : i32
    return %arg0, %c0_i32, %c0_i32_0 : i32, i32, i32
  }
}

</mosaic_0001>

<bundles_post_ra>
// kernel: convbr_forward.1
= control target key start
LH: loop header
LB: loop body
LE: loop exit
PB: predicated region body
PF: predicated region fallthrough
CT: control target
= control target key end

     0   :  { %8 = vsyncpa [#allocation3], 0  ;;  %s8516_s0 = inlined_call_operand.vmem [shape: bf16[2,18,18,32], index: 0, kind: input, shape index: {}]   ;;  %s8517_s1 = inlined_call_operand.vmem [shape: bf16[9,32,128], index: 1, kind: input, shape index: {}]   ;;  %s8518_s2 = inlined_call_operand.vmem [shape: f32[1,128], index: 2, kind: input, shape index: {}]   ;;  %s8519_s3 = inlined_call_operand.hbm [shape: f32[2,256,128], index: 3, kind: output, shape index: {}]  }
   0x1   :  { %10 = vsyncpa [#allocation3 + $0x1], 0  ;;  %s6608_s12 = smov 0   ;;  %s6610_s13 = smov 0  }
   0x2   :  { %s6612_s14 = smov 0   ;;  %s6614_s15 = smov 0  }
   0x3 LB: > { %s6629_s16 = sadd.s32 4294967295, %s6583_s15   ;;  %s5015_s17 = sadd.s32 4294967294, %s6583_s15   ;;  %s6583_s15 = sphi %s6614_s15, %s8592_s15   ;;  %s6579_s14 = sphi %s6612_s14, %s8591_s14   ;;  %s6575_s13 = sphi %s6610_s13, %s8590_s13   ;;  %s6571_s12 = sphi %s6608_s12, %s8589_s12  }
   0x4   : > { %s6633_s18 = sadd.s32 1, %s6583_s15   ;;  %s91_s19 = sadd.s32 1, %s6579_s14 }
   0x5   : > { %s88_s20 = ssub.s32 %s6583_s15, %s6633_s18  ;;  %p101_p0 = scmp.ne.s32.totalorder %s6579_s14, %s6575_s13 }
   0x6   : > { %p89_p1 = scmp.eq.s32.totalorder %s88_s20, 0  ;;  %p102_p2 = scmp.eq.s32.totalorder %s6629_s16, 1 }
   0x7   : > { %p107_p3 = scmp.ne.s32.totalorder %s6575_s13, %s6571_s12  ;;  %p108_p4 = scmp.eq.s32.totalorder %s5015_s17, 1 }
   0x8   : > { %s6644_s21 = scalar_select %p89_p1, %s6579_s14, %s91_s19  }
   0x9   : > { %p6646_p5 = por %p102_p2, %p101_p0  ;;  %p6650_p6 = por %p108_p4, %p107_p3 }
   0xa   : > { %p5018_p7 = scmp.ge.s32.totalorder %s6583_s15, 1  ;;  %p140_p8 = scmp.lt.s32.totalorder %s6583_s15, 3 }
   0xc   : > { %p141_p9 = pnand %p5018_p7, %p140_p8 }
   0xe   : > { %144 = sbr.rel (%p141_p9) target bundleno = 610 (0x262), region = 32 }
  0x15   : > { %v6394_v0 = vld [vmem:[%s8517_s1 + $0x10] sm:$0xff]   ;;  %p164_p10 = scmp.lt.s32.totalorder %s6629_s16, 1  ;;  %v6395_v1 = vld [vmem:[%s8517_s1 + $0x40] sm:$0xff]   ;;  %v6396_v2 = vld [vmem:[%s8517_s1 + $0x18] sm:$0xff]   ;;  %vm222_vm0 = vsmask.f32 3328 }
  0x16   : > { %5768 = vmatprep.subr.bf16.mxu1 %v6394_v0  ;;  %5912 = vmatprep.subr.bf16.mxu0 %v6395_v1  ;;  %v6397_v3 = vld [vmem:[%s8517_s1 + $0x48] sm:$0xff]   ;;  %v6673_v4 = vld [vmem:[%s8517_s1] sm:$0xff]   ;;  %vm223_vm1 = vsmask.f32 7440  ;;  %v6683_v5 = vld [vmem:[%s8517_s1 + $0x50] sm:$0xff]   ;;  %vm674_vm3 = vcmask 261120  }
  0x17   : > { %s165_s30 = scalar_select %p164_p10, %s6629_s16, 1  ;;  %5769 = vmatpush3.bf16.msra.mxu1 %v6394_v0  ;;  %5913 = vmatpush3.bf16.msra.mxu0 %v6395_v1  ;;  %vm6703_vm2 = vmor %vm222_vm0, %vm223_vm1  ;;  %vm1233_vm4 = vcmask 1042432   ;;  %vm1234_vm5 = vcmask 1046532  }
  0x18   : > { %5770 = vmatprep.subr.bf16.mxu1 %v6396_v2  ;;  %5914 = vmatprep.subr.bf16.mxu0 %v6397_v3  ;;  %vm6931_vm6 = vmor %vm1233_vm4, %vm1234_vm5  ;;  %s5605_s20 = sshll.u32 %s6629_s16, 12  ;;  %s6585_s29 = smov [#allocation2]  }
  0x19   : > { %s6352_s6 = smul.u32 216, %s165_s30  ;;  %s8466_s27 = scalar_lea.hbm %s8519_s3, %s5605_s20 }
  0x1a   : > { %s6525_s30 = sshll.u32 %s6585_s29, 4  ;;  %s6526_s30 = int_to_ptr.vmem [resolvable:$false] %s6525_s30 }
  0x1b   : > { %s6678_s11 = scalar_lea.vmem %s8516_s0, %s6352_s6  ;;  %5771 = vmatpush3.bf16.msra.mxu1 %v6396_v2  ;;  %5915 = vmatpush3.bf16.msra.mxu0 %v6397_v3  ;;  %s6527_s4 = scalar_lea.vmem %s6526_s30, 8192 }
  0x1c   : > { %v170_v6 = vld [vmem:[%s6678_s11] sm:$0xf]  ;;  %v171_v7 = vld [vmem:[%s6678_s11 + $0x4] sm:$0xf]  ;;  %v206_v8 = vld [vmem:[%s6678_s11 + $0x8] sm:$0x1]  ;;  %5804 = vmatprep.subr.bf16.mxu1 %v6673_v4  ;;  %5948 = vmatprep.subr.bf16.mxu0 %v6683_v5 }
  0x1d   : > { %v226_v9 = vshrl.u32 %v170_v6, 16  ;;  %v229_v10 = vshll.u32 %v170_v6, 16  ;;  %v235_v11 = vshll.u32 %v171_v7, 16  ;;  %v239_v12 = vshrl.u32 %v171_v7, 16  ;;  %v5217_v13 = vld [vmem:[%s6678_s11 + $0xc] sm:$0xf] }
  0x1e   : > { %v245_v14 = vshll.u32 %v206_v8, 16  ;;  %v6691_v15 = vld [vmem:[%s6678_s11 + $0x10] sm:$0xf]  ;;  %v6694_v16 = vld [vmem:[%s6678_s11 + $0x14] sm:$0x1]  ;;  %v2074_v22 = vshrl.u32 %v5217_v13, 16 }
  0x1f   : > { %v228_v17 = vrot.slane %v226_v9, 4  ;;  %v231_v18 = vrot.slane %v229_v10, 5  ;;  %v237_v19 = vrot.slane %v235_v11, 5  ;;  %v241_v20 = vrot.slane %v239_v12, 4  ;;  %v172_v29 = vld [vmem:[%s6678_s11 + $0xc] sm:$0xf] }
  0x20   : > { %v247_v21 = vrot.slane %v245_v14, 5  ;;  %v2077_v23 = vshll.u32 %v5217_v13, 16  ;;  %v2083_v24 = vshll.u32 %v6691_v15, 16  ;;  %v2087_v27 = vshrl.u32 %v6691_v15, 16  ;;  %v173_v34 = vld [vmem:[%s6678_s11 + $0x10] sm:$0xf] }
  0x21   : > { %v232_v25 = vor.u32 %v231_v18, %v228_v17  ;;  %v242_v26 = vor.u32 %v241_v20, %v237_v19  ;;  %v2093_v28 = vshll.u32 %v6694_v16, 16  ;;  %v2076_v31 = vrot.slane %v2074_v22, 4  ;;  %v207_v40 = vld [vmem:[%s6678_s11 + $0x14] sm:$0x1]  ;;  %v5220_v51 = vld [vmem:[%s6678_s11 + $0x18] sm:$0xf] }
  0x22   : > { %v2079_v32 = vrot.slane %v2077_v23, 5  ;;  %v2085_v33 = vrot.slane %v2083_v24, 5  ;;  %v2089_v37 = vrot.slane %v2087_v27, 4  ;;  %v250_v41 = vshrl.u32 %v172_v29, 16  ;;  %v6715_v56 = vld [vmem:[%s6678_s11 + $0x1c] sm:$0xf] }
  0x23   : > { %v233_v35 = vrot.slane %v232_v25, 4  ;;  %v243_v36 = vrot.slane %v242_v26, 4  ;;  %v2095_v39 = vrot.slane %v2093_v28, 5  ;;  %v253_v42 = vshll.u32 %v172_v29, 16  ;;  %v6723_v61 = vld [vmem:[%s6678_s11 + $0x20] sm:$0x1] }
  0x24   : > { %v2080_v38 = vor.u32 %v2079_v32, %v2076_v31  ;;  %v2090_v45 = vor.u32 %v2089_v37, %v2085_v33  ;;  %v259_v46 = vshll.u32 %v173_v34, 16  ;;  %v252_v49 = vrot.slane %v250_v41, 4  ;;  %v174_v12 = vld [vmem:[%s6678_s11 + $0x18] sm:$0xf]  ;;  %v208_v26 = vld [vmem:[%s6678_s11 + $0x20] sm:$0x1] }
  0x25   : > { %v238_v43 = vsel %vm6703_vm2, %v233_v35, %v237_v19  ;;  %v248_v44 = vsel %vm6703_vm2, %v243_v36, %v247_v21  ;;  %v255_v50 = vrot.slane %v253_v42, 5  ;;  %v263_v54 = vshrl.u32 %v173_v34, 16  ;;  %v175_v19 = vld [vmem:[%s6678_s11 + $0x1c] sm:$0xf]  ;;  %v5223_v34 = vld [vmem:[%s6678_s11 + $0x24] sm:$0xf] }
  0x26   : > { %v5025_v47 = vcombine.low %v238_v43, %v248_v44  ;;  %v2081_v48 = vrot.slane %v2080_v38, 4  ;;  %v2091_v52 = vrot.slane %v2090_v45, 4  ;;  %v261_v53 = vrot.slane %v259_v46, 5 }
  0x27   : > { %v269_v55 = vshll.u32 %v207_v40, 16  ;;  %v2829_v58 = vrot.slane %v6691_v15, 5  ;;  %v2832_v59 = vrot.slane %v6694_v16, 5  ;;  %v256_v60 = vor.u32 %v255_v50, %v252_v49  ;;  %v6401_v40 = vld [vmem:[%s8517_s1 + $0x8] sm:$0xff]   ;;  %v6400_v50 = vld [vmem:[%s8517_s1 + $0x58] sm:$0xff]  }
  0x28   : > { %5772 = vmatprep.mubr.msk.bf16.mxu1 %vm674_vm3, %v5025_v47  ;;  %v2086_v57 = vsel %vm6703_vm2, %v2081_v48, %v2085_v33  ;;  %v2096_v62 = vsel %vm6703_vm2, %v2091_v52, %v2095_v39  ;;  %v265_v63 = vrot.slane %v263_v54, 4  ;;  %v2098_v1 = vshrl.u32 %v5220_v51, 16  ;;  %v6746_v39 = vld [vmem:[%s6678_s11 + $0x28] sm:$0xf]  ;;  %v6755_v47 = vld [vmem:[%s6678_s11 + $0x2c] sm:$0x1] }
  0x29   : > { %v271_v0 = vrot.slane %v269_v55, 5  ;;  %v5269_v2 = vcombine.low %v2086_v57, %v2096_v62  ;;  %v257_v3 = vrot.slane %v256_v60, 4  ;;  %v2101_v6 = vshll.u32 %v5220_v51, 16  ;;  %v176_v55 = vld [vmem:[%s6678_s11 + $0x24] sm:$0xf] }
  0x2a   : > { %v2107_v7 = vshll.u32 %v6715_v56, 16  ;;  %v266_v8 = vor.u32 %v265_v63, %v261_v53  ;;  %v2100_v9 = vrot.slane %v2098_v1, 4  ;;  %v2111_v10 = vshrl.u32 %v6715_v56, 16  ;;  %v6404_v1 = vld [vmem:[%s8517_s1 + $0x20] sm:$0xff]  }
  0x2b   : > { %v2117_v11 = vshll.u32 %v6723_v61, 16  ;;  %5916 = vmatprep.mubr.msk.bf16.mxu0 %vm674_vm3, %v5269_v2  ;;  %v262_v13 = vsel %vm6703_vm2, %v257_v3, %v261_v53  ;;  %v2103_v14 = vrot.slane %v2101_v6, 5  ;;  %v2836_v18 = vrot.slane %v6715_v56, 5 }
  0x2c   : > { %v2109_v17 = vrot.slane %v2107_v7, 5  ;;  %v267_v20 = vrot.slane %v266_v8, 4  ;;  %v2113_v21 = vrot.slane %v2111_v10, 4  ;;  %v2839_v23 = vrot.slane %v6723_v61, 5 }
  0x2d   : > { %v2119_v22 = vrot.slane %v2117_v11, 5  ;;  %v2104_v24 = vor.u32 %v2103_v14, %v2100_v9  ;;  %v6739_v25 = vrot.slane %v2836_v18, 4  ;;  %v274_v27 = vshrl.u32 %v174_v12, 16  ;;  %v209_v9 = vld [vmem:[%s6678_s11 + $0x2c] sm:$0x1] }
  0x2e   : > { %v277_v28 = vshll.u32 %v174_v12, 16  ;;  %v272_v29 = vsel %vm6703_vm2, %v267_v20, %v271_v0  ;;  %v2114_v31 = vor.u32 %v2113_v21, %v2109_v17  ;;  %v283_v32 = vshll.u32 %v175_v19, 16  ;;  %v177_v0 = vld [vmem:[%s6678_s11 + $0x28] sm:$0xf] }
  0x2f   : > { %v287_v33 = vshrl.u32 %v175_v19, 16  ;;  %v5026_v35 = vcombine.low %v262_v13, %v272_v29  ;;  %v2105_v36 = vrot.slane %v2104_v24, 4  ;;  %v276_v37 = vrot.slane %v274_v27, 4  ;;  %v5226_v19 = vld [vmem:[%s6678_s11 + $0x30] sm:$0xf] }
  0x30   : > { %v279_v38 = vrot.slane %v277_v28, 5  ;;  %v2115_v41 = vrot.slane %v2114_v31, 4  ;;  %v285_v42 = vrot.slane %v283_v32, 5  ;;  %v293_v44 = vshll.u32 %v208_v26, 16  ;;  %v6780_v26 = vld [vmem:[%s6678_s11 + $0x34] sm:$0xf] }
  0x31   : > { %v289_v43 = vrot.slane %v287_v33, 4  ;;  %5773 = vmatmul.mubr.msk.bf16.vlgmr.msra.gmra.mrb[0].mxu1 %vm674_vm3, %v5026_v35  ;;  %v2110_v45 = vsel %vm6703_vm2, %v2105_v36, %v2109_v17  ;;  %v2122_v48 = vshrl.u32 %v5223_v34, 16  ;;  %v2125_v49 = vshll.u32 %v5223_v34, 16  ;;  %v6791_v34 = vld [vmem:[%s6678_s11 + $0x38] sm:$0x1] }
  0x32   : > { %v280_v46 = vor.u32 %v279_v38, %v276_v37  ;;  %5805 = vmatpush3.bf16.msra.mxu1 %v6673_v4  ;;  %v2120_v51 = vsel %vm6703_vm2, %v2115_v41, %v2119_v22  ;;  %v295_v53 = vrot.slane %v293_v44, 5  ;;  %v2131_v54 = vshll.u32 %v6746_v39, 16 }
  0x33   : > { %v290_v52 = vor.u32 %v289_v43, %v285_v42  ;;  %v5270_v57 = vcombine.low %v2110_v45, %v2120_v51  ;;  %v2124_v62 = vrot.slane %v2122_v48, 4  ;;  %v2127_v63 = vrot.slane %v2125_v49, 5  ;;  %5806 = vmatprep.subr.bf16.mxu1 %v6401_v40 }
  0x34   : > { %v281_v60 = vrot.slane %v280_v46, 4  ;;  %v2133_v2 = vrot.slane %v2131_v54, 5  ;;  %v2135_v3 = vshrl.u32 %v6746_v39, 16  ;;  %v2141_v6 = vshll.u32 %v6755_v47, 16  ;;  %v178_v46 = vld [vmem:[%s6678_s11 + $0x30] sm:$0xf] }
  0x35   : > { %v291_v4 = vrot.slane %v290_v52, 4  ;;  %5917 = vmatmul.mubr.msk.bf16.vlgmr.msra.gmra.mrb[0].mxu0 %vm674_vm3, %v5270_v57  ;;  %v2128_v8 = vor.u32 %v2127_v63, %v2124_v62  ;;  %v298_v10 = vshrl.u32 %v176_v55, 16  ;;  %v301_v11 = vshll.u32 %v176_v55, 16 }
  0x36   : > { %v286_v7 = vsel %vm6703_vm2, %v281_v60, %v285_v42  ;;  %5949 = vmatpush3.bf16.msra.mxu0 %v6683_v5  ;;  %v2137_v13 = vrot.slane %v2135_v3, 4  ;;  %v2143_v14 = vrot.slane %v2141_v6, 5  ;;  %v307_v17 = vshll.u32 %v177_v0, 16  ;;  %5807 = vmatpush3.bf16.msra.mxu1 %v6401_v40  ;;  %v6785_v5 = vld [vmem:[%s8517_s1 + $0x60] sm:$0xff]   ;;  %v210_v60 = vld [vmem:[%s6678_s11 + $0x38] sm:$0x1] }
  0x37   : > { %v296_v12 = vsel %vm6703_vm2, %v291_v4, %v295_v53  ;;  %v2129_v21 = vrot.slane %v2128_v8, 4  ;;  %v300_v22 = vrot.slane %v298_v10, 4  ;;  %v303_v24 = vrot.slane %v301_v11, 5  ;;  %5950 = vmatprep.subr.bf16.mxu0 %v6400_v50  ;;  %5840 = vmatprep.subr.bf16.mxu1 %v6404_v1  ;;  %v179_v53 = vld [vmem:[%s6678_s11 + $0x34] sm:$0xf] }
  0x38   : > { %v5027_v20 = vcombine.low %v286_v7, %v296_v12  ;;  %v2138_v27 = vor.u32 %v2137_v13, %v2133_v2  ;;  %v309_v28 = vrot.slane %v307_v17, 5  ;;  %v311_v29 = vshrl.u32 %v177_v0, 16  ;;  %v5229_v7 = vld [vmem:[%s6678_s11 + $0x3c] sm:$0xf]  ;;  %v6809_v12 = vld [vmem:[%s6678_s11 + $0x40] sm:$0xf] }
  0x39   : > { %v317_v31 = vshll.u32 %v209_v9, 16  ;;  %v2134_v32 = vsel %vm6703_vm2, %v2129_v21, %v2133_v2  ;;  %v304_v33 = vor.u32 %v303_v24, %v300_v22  ;;  %v2146_v35 = vshrl.u32 %v5226_v19, 16  ;;  %v180_v21 = vld [vmem:[%s6678_s11 + $0x3c] sm:$0xf] }
  0x3a   : > { %5776 = vmatprep.mubr.msk.bf16.mxu1 %vm674_vm3, %v5027_v20  ;;  %v2149_v36 = vshll.u32 %v5226_v19, 16  ;;  %v2139_v37 = vrot.slane %v2138_v27, 4  ;;  %v313_v38 = vrot.slane %v311_v29, 4  ;;  %v2155_v41 = vshll.u32 %v6780_v26, 16  ;;  %5951 = vmatpush3.bf16.msra.mxu0 %v6400_v50  ;;  %v6814_v20 = vld [vmem:[%s6678_s11 + $0x44] sm:$0x1] }
  0x3b   : > { %v319_v40 = vrot.slane %v317_v31, 5  ;;  %v305_v42 = vrot.slane %v304_v33, 4  ;;  %v2148_v43 = vrot.slane %v2146_v35, 4  ;;  %v2159_v45 = vshrl.u32 %v6780_v26, 16  ;;  %5984 = vmatprep.subr.bf16.mxu0 %v6785_v5 }
  0x3c   : > { %v2151_v44 = vrot.slane %v2149_v36, 5  ;;  %v2144_v48 = vsel %vm6703_vm2, %v2139_v37, %v2143_v14  ;;  %v314_v49 = vor.u32 %v313_v38, %v309_v28  ;;  %v2157_v51 = vrot.slane %v2155_v41, 5 }
  0x3d   : > { %v2165_v52 = vshll.u32 %v6791_v34, 16  ;;  %v5271_v54 = vcombine.low %v2134_v32, %v2144_v48  ;;  %v310_v50 = vsel %vm6703_vm2, %v305_v42, %v309_v28  ;;  %v2161_v57 = vrot.slane %v2159_v45, 4 }
  0x3e   : > { %v2152_v55 = vor.u32 %v2151_v44, %v2148_v43  ;;  %v315_v62 = vrot.slane %v314_v49, 4  ;;  %v322_v0 = vshrl.u32 %v178_v46, 16  ;;  %v325_v1 = vshll.u32 %v178_v46, 16 }
  0x3f   : > { %v2167_v63 = vrot.slane %v2165_v52, 5  ;;  %5920 = vmatprep.mubr.msk.bf16.mxu0 %vm674_vm3, %v5271_v54  ;;  %v2162_v2 = vor.u32 %v2161_v57, %v2157_v51  ;;  %v331_v3 = vshll.u32 %v179_v53, 16  ;;  %v335_v6 = vshrl.u32 %v179_v53, 16  ;;  %v211_v54 = vld [vmem:[%s6678_s11 + $0x44] sm:$0x1] }
  0x40   : > { %v2153_v4 = vrot.slane %v2152_v55, 4  ;;  %v320_v8 = vsel %vm6703_vm2, %v315_v62, %v319_v40  ;;  %v324_v9 = vrot.slane %v322_v0, 4  ;;  %v327_v10 = vrot.slane %v325_v1, 5  ;;  %v181_v40 = vld [vmem:[%s6678_s11 + $0x40] sm:$0xf] }
  0x41   : > { %v341_v11 = vshll.u32 %v210_v60, 16  ;;  %v5028_v13 = vcombine.low %v310_v50, %v320_v8  ;;  %v2163_v17 = vrot.slane %v2162_v2, 4  ;;  %v333_v19 = vrot.slane %v331_v3, 5  ;;  %v5232_v55 = vld [vmem:[%s6678_s11 + $0x48] sm:$0xf] }
  0x42   : > { %v2158_v14 = vsel %vm6703_vm2, %v2153_v4, %v2157_v51  ;;  %v328_v22 = vor.u32 %v327_v10, %v324_v9  ;;  %v337_v24 = vrot.slane %v335_v6, 4  ;;  %v2170_v28 = vshrl.u32 %v5229_v7, 16  ;;  %v6832_v0 = vld [vmem:[%s6678_s11 + $0x4c] sm:$0xf] }
  0x43   : > { %v343_v27 = vrot.slane %v341_v11, 5  ;;  %5777 = vmatmul.mubr.msk.bf16.gmra.mrb[4].mxu1 %vm674_vm3, %v5028_v13  ;;  %v2168_v29 = vsel %vm6703_vm2, %v2163_v17, %v2167_v63  ;;  %v2173_v31 = vshll.u32 %v5229_v7, 16  ;;  %v2179_v32 = vshll.u32 %v6809_v12, 16  ;;  %v6840_v13 = vld [vmem:[%s6678_s11 + $0x50] sm:$0x1] }
  0x44   : > { %v2183_v33 = vshrl.u32 %v6809_v12, 16  ;;  %v5272_v35 = vcombine.low %v2158_v14, %v2168_v29  ;;  %v329_v36 = vrot.slane %v328_v22, 4  ;;  %v338_v37 = vor.u32 %v337_v24, %v333_v19 }
  0x45   : > { %v2172_v38 = vrot.slane %v2170_v28, 4  ;;  %v2175_v41 = vrot.slane %v2173_v31, 5  ;;  %v2181_v42 = vrot.slane %v2179_v32, 5  ;;  %v2189_v44 = vshll.u32 %v6814_v20, 16  ;;  %v6847_v28 = vld [vmem:[%s6678_s11 + $0x4c] sm:$0xf] }
  0x46   : > { %v2185_v43 = vrot.slane %v2183_v33, 4  ;;  %5921 = vmatmul.mubr.msk.bf16.gmra.mrb[4].mxu0 %vm674_vm3, %v5272_v35  ;;  %v334_v45 = vsel %vm6703_vm2, %v329_v36, %v333_v19  ;;  %v339_v46 = vrot.slane %v338_v37, 4  ;;  %v346_v48 = vshrl.u32 %v180_v21, 16  ;;  %v6844_v19 = vld [vmem:[%s6678_s11 + $0x48] sm:$0xf] }
  0x47   : > { %v349_v49 = vshll.u32 %v180_v21, 16  ;;  %v2176_v51 = vor.u32 %v2175_v41, %v2172_v38  ;;  %v2191_v53 = vrot.slane %v2189_v44, 5  ;;  %v355_v50 = vshll.u32 %v181_v40, 16  ;;  %v212_v38 = vld [vmem:[%s6678_s11 + $0x50] sm:$0x1] }
  0x48   : > { %v2186_v52 = vor.u32 %v2185_v43, %v2181_v42  ;;  %v344_v57 = vsel %vm6703_vm2, %v339_v46, %v343_v27  ;;  %v348_v60 = vrot.slane %v346_v48, 4  ;;  %v359_v63 = vshrl.u32 %v181_v40, 16 }
  0x49   : > { %v351_v62 = vrot.slane %v349_v49, 5  ;;  %v5029_v1 = vcombine.low %v334_v45, %v344_v57  ;;  %v2177_v4 = vrot.slane %v2176_v51, 4  ;;  %v357_v3 = vrot.slane %v355_v50, 5  ;;  %v5235_v45 = vld [vmem:[%s6678_s11 + $0x54] sm:$0xf] }
  0x4a   : > { %v2187_v2 = vrot.slane %v2186_v52, 4  ;;  %v361_v7 = vrot.slane %v359_v63, 4  ;;  %v365_v8 = vshll.u32 %v211_v54, 16  ;;  %v2194_v9 = vshrl.u32 %v5232_v55, 16 }
  0x4b   : > { %v352_v6 = vor.u32 %v351_v62, %v348_v60  ;;  %5780 = vmatprep.mubr.msk.bf16.mxu1 %vm674_vm3, %v5029_v1  ;;  %v2182_v10 = vsel %vm6703_vm2, %v2177_v4, %v2181_v42  ;;  %v2197_v14 = vshll.u32 %v5232_v55, 16  ;;  %v2203_v17 = vshll.u32 %v6832_v0, 16  ;;  %v6863_v55 = vld [vmem:[%s6678_s11 + $0x58] sm:$0xf] }
  0x4c   : > { %v2192_v11 = vsel %vm6703_vm2, %v2187_v2, %v2191_v53  ;;  %v362_v24 = vor.u32 %v361_v7, %v357_v3  ;;  %v367_v27 = vrot.slane %v365_v8, 5  ;;  %v2196_v29 = vrot.slane %v2194_v9, 4 }
  0x4d   : > { %v5273_v21 = vcombine.low %v2182_v10, %v2192_v11  ;;  %v353_v22 = vrot.slane %v352_v6, 4  ;;  %v2199_v31 = vrot.slane %v2197_v14, 5  ;;  %v2205_v32 = vrot.slane %v2203_v17, 5  ;;  %v6873_v11 = vld [vmem:[%s6678_s11 + $0x54] sm:$0xf] }
  0x4e   : > { %v2207_v33 = vshrl.u32 %v6832_v0, 16  ;;  %v363_v36 = vrot.slane %v362_v24, 4  ;;  %v2213_v37 = vshll.u32 %v6840_v13, 16  ;;  %v370_v40 = vshrl.u32 %v6844_v19, 16  ;;  %v6879_v24 = vld [vmem:[%s6678_s11 + $0x58] sm:$0xf] }
  0x4f   : > { %5924 = vmatprep.mubr.msk.bf16.mxu0 %vm674_vm3, %v5273_v21  ;;  %v358_v35 = vsel %vm6703_vm2, %v353_v22, %v357_v3  ;;  %v2200_v41 = vor.u32 %v2199_v31, %v2196_v29  ;;  %v373_v43 = vshll.u32 %v6844_v19, 16  ;;  %v379_v44 = vshll.u32 %v6847_v28, 16  ;;  %v6869_v3 = vld [vmem:[%s6678_s11 + $0x5c] sm:$0x1] }
  0x50   : > { %v2209_v42 = vrot.slane %v2207_v33, 4  ;;  %v368_v46 = vsel %vm6703_vm2, %v363_v36, %v367_v27  ;;  %v2215_v48 = vrot.slane %v2213_v37, 5  ;;  %v372_v49 = vrot.slane %v370_v40, 4  ;;  %v213_v37 = vld [vmem:[%s6678_s11 + $0x5c] sm:$0x1] }
  0x51   : > { %v383_v51 = vshrl.u32 %v6847_v28, 16  ;;  %v5030_v52 = vcombine.low %v358_v35, %v368_v46  ;;  %v2201_v53 = vrot.slane %v2200_v41, 4  ;;  %v375_v50 = vrot.slane %v373_v43, 5 }
  0x52   : > { %v2210_v54 = vor.u32 %v2209_v42, %v2205_v32  ;;  %v381_v57 = vrot.slane %v379_v44, 5  ;;  %v389_v62 = vshll.u32 %v212_v38, 16  ;;  %v2218_v63 = vshrl.u32 %v5235_v45, 16  ;;  %v5238_v44 = vld [vmem:[%s6678_s11 + $0x60] sm:$0xf] }
  0x53   : > { %v385_v60 = vrot.slane %v383_v51, 4  ;;  %5781 = vmatmul.mubr.msk.bf16.gmra.mrb[8].mxu1 %vm674_vm3, %v5030_v52  ;;  %v2206_v1 = vsel %vm6703_vm2, %v2201_v53, %v2205_v32  ;;  %v376_v2 = vor.u32 %v375_v50, %v372_v49  ;;  %v2221_v6 = vshll.u32 %v5235_v45, 16  ;;  %v6893_v51 = vld [vmem:[%s6678_s11 + $0x64] sm:$0xf] }
  0x54   : > { %v2211_v4 = vrot.slane %v2210_v54, 4  ;;  %v391_v8 = vrot.slane %v389_v62, 5  ;;  %v2220_v9 = vrot.slane %v2218_v63, 4  ;;  %v2227_v10 = vshll.u32 %v6863_v55, 16 }
  0x55   : > { %v386_v7 = vor.u32 %v385_v60, %v381_v57  ;;  %v377_v17 = vrot.slane %v376_v2, 4  ;;  %v2223_v21 = vrot.slane %v2221_v6, 5  ;;  %v2231_v22 = vshrl.u32 %v6863_v55, 16  ;;  %v6900_v60 = vld [vmem:[%s6678_s11 + $0x60] sm:$0xf] }
  0x56   : > { %v2216_v14 = vsel %vm6703_vm2, %v2211_v4, %v2215_v48  ;;  %v2229_v31 = vrot.slane %v2227_v10, 5  ;;  %v2237_v32 = vshll.u32 %v6869_v3, 16  ;;  %v394_v38 = vshrl.u32 %v6873_v11, 16 }
  0x57   : > { %v5274_v27 = vcombine.low %v2206_v1, %v2216_v14  ;;  %v387_v29 = vrot.slane %v386_v7, 4  ;;  %v382_v33 = vsel %vm6703_vm2, %v377_v17, %v381_v57  ;;  %v2224_v35 = vor.u32 %v2223_v21, %v2220_v9  ;;  %v6897_v57 = vld [vmem:[%s6678_s11 + $0x68] sm:$0x1]  ;;  %v6910_v21 = vld [vmem:[%s6678_s11 + $0x64] sm:$0xf] }
  0x58   : > { %v2233_v36 = vrot.slane %v2231_v22, 4  ;;  %v2239_v41 = vrot.slane %v2237_v32, 5  ;;  %v397_v42 = vshll.u32 %v6873_v11, 16  ;;  %v403_v43 = vshll.u32 %v6879_v24, 16  ;;  %v214_v32 = vld [vmem:[%s6678_s11 + $0x68] sm:$0x1] }
  0x59   : > { %5925 = vmatmul.mubr.msk.bf16.gmra.mrb[8].mxu0 %vm674_vm3, %v5274_v27  ;;  %v392_v40 = vsel %vm6703_vm2, %v387_v29, %v391_v8  ;;  %v2225_v46 = vrot.slane %v2224_v35, 4  ;;  %v396_v49 = vrot.slane %v394_v38, 4  ;;  %v407_v54 = vshrl.u32 %v6879_v24, 16 }
  0x5a   : > { %v5031_v45 = vcombine.low %v382_v33, %v392_v40  ;;  %v2234_v48 = vor.u32 %v2233_v36, %v2229_v31  ;;  %v399_v52 = vrot.slane %v397_v42, 5  ;;  %v405_v53 = vrot.slane %v403_v43, 5 }
  0x5b   : > { %v413_v50 = vshll.u32 %v213_v37, 16  ;;  %v2230_v62 = vsel %vm6703_vm2, %v2225_v46, %v2229_v31  ;;  %v2242_v1 = vshrl.u32 %v5238_v44, 16  ;;  %v2245_v4 = vshll.u32 %v5238_v44, 16 }
  0x5c   : > { %5784 = vmatprep.mubr.msk.bf16.mxu1 %vm674_vm3, %v5031_v45  ;;  %v2235_v63 = vrot.slane %v2234_v48, 4  ;;  %v400_v2 = vor.u32 %v399_v52, %v396_v49  ;;  %v409_v6 = vrot.slane %v407_v54, 4  ;;  %v2251_v8 = vshll.u32 %v6893_v51, 16  ;;  %v5303_v48 = vld [vmem:[%s6678_s11 + $0xc] sm:$0xe] }
  0x5d   : > { %v415_v7 = vrot.slane %v413_v50, 5  ;;  %v2244_v10 = vrot.slane %v2242_v1, 4  ;;  %v2247_v14 = vrot.slane %v2245_v4, 5  ;;  %v2255_v17 = vshrl.u32 %v6893_v51, 16 }
  0x5e   : > { %v2240_v9 = vsel %vm6703_vm2, %v2235_v63, %v2239_v41  ;;  %v401_v27 = vrot.slane %v400_v2, 4  ;;  %v410_v29 = vor.u32 %v409_v6, %v405_v53  ;;  %v2253_v31 = vrot.slane %v2251_v8, 5 }
  0x5f   : > { %v5275_v22 = vcombine.low %v2230_v62, %v2240_v9  ;;  %v2248_v33 = vor.u32 %v2247_v14, %v2244_v10  ;;  %v2257_v35 = vrot.slane %v2255_v17, 4  ;;  %v2261_v36 = vshll.u32 %v6897_v57, 16  ;;  %v6925_v62 = vld [vmem:[%s6678_s11 + $0x6c] sm:$0xf]  ;;  %v6938_v10 = vld [vmem:[%s6678_s11 + $0x70] sm:$0xf] }
  0x60   : > { %v418_v37 = vshrl.u32 %v6900_v60, 16  ;;  %v406_v38 = vsel %vm6703_vm2, %v401_v27, %v405_v53  ;;  %v411_v40 = vrot.slane %v410_v29, 4  ;;  %v421_v41 = vshll.u32 %v6900_v60, 16 }
  0x61   : > { %5928 = vmatprep.mubr.msk.bf16.mxu0 %vm674_vm3, %v5275_v22  ;;  %v427_v42 = vshll.u32 %v6910_v21, 16  ;;  %v2249_v43 = vrot.slane %v2248_v33, 4  ;;  %v2258_v44 = vor.u32 %v2257_v35, %v2253_v31  ;;  %v2263_v45 = vrot.slane %v2261_v36, 5  ;;  %v215_v35 = vld [vmem:[%s6678_s11 + $0x74] sm:$0x1] }
  0x62   : > { %v420_v46 = vrot.slane %v418_v37, 4  ;;  %v416_v49 = vsel %vm6703_vm2, %v411_v40, %v415_v7  ;;  %v423_v52 = vrot.slane %v421_v41, 5  ;;  %v431_v50 = vshrl.u32 %v6910_v21, 16  ;;  %v5304_v36 = vld [vmem:[%s6678_s11 + $0x18] sm:$0xe] }
  0x63   : > { %v429_v54 = vrot.slane %v427_v42, 5  ;;  %v5032_v53 = vcombine.low %v406_v38, %v416_v49  ;;  %v2254_v63 = vsel %vm6703_vm2, %v2249_v43, %v2253_v31  ;;  %v2259_v1 = vrot.slane %v2258_v44, 4  ;;  %v6957_v42 = vld [vmem:[%s6678_s11 + $0x78] sm:$0xf] }
  0x64   : > { %v437_v4 = vshll.u32 %v214_v32, 16  ;;  %v424_v6 = vor.u32 %v423_v52, %v420_v46  ;;  %v433_v7 = vrot.slane %v431_v50, 4  ;;  %v5319_v8 = vrot.slane %v5303_v48, 9  ;;  %v216_v50 = vld [vmem:[%s6678_s11 + $0x80] sm:$0x1] }
  0x65   : > { %v2831_v9 = vrot.slane %v2829_v58, 4  ;;  %5785 = vmatmul.mubr.msk.bf16.gmra.mrb[12].mxu1 %vm674_vm3, %v5032_v53  ;;  %v2264_v14 = vsel %vm6703_vm2, %v2259_v1, %v2263_v45  ;;  %v442_v22 = vshrl.u32 %v6925_v62, 16  ;;  %v445_v27 = vshll.u32 %v6925_v62, 16 }
  0x66   : > { %v439_v17 = vrot.slane %v437_v4, 5  ;;  %v5276_v29 = vcombine.low %v2254_v63, %v2264_v14  ;;  %v425_v31 = vrot.slane %v424_v6, 4  ;;  %v434_v32 = vor.u32 %v433_v7, %v429_v54  ;;  %v5305_v7 = vld [vmem:[%s6678_s11 + $0x24] sm:$0xe] }
  0x67   : > { %v2830_v33 = vsel %vm6931_vm6, %v5319_v8, %v2829_v58  ;;  %v2833_v37 = vsel %vm6931_vm6, %v2831_v9, %v2832_v59  ;;  %v444_v38 = vrot.slane %v442_v22, 4  ;;  %v447_v40 = vrot.slane %v445_v27, 5  ;;  %v6988_v22 = vld [vmem:[%s6678_s11 + $0x84] sm:$0xf] }
  0x68   : > { %v451_v41 = vshll.u32 %v6938_v10, 16  ;;  %5929 = vmatmul.mubr.msk.bf16.gmra.mrb[12].mxu0 %vm674_vm3, %v5276_v29  ;;  %v430_v15 = vsel %vm6703_vm2, %v425_v31, %v429_v54  ;;  %v435_v58 = vrot.slane %v434_v32, 4  ;;  %v5339_v43 = vcombine.low %v2830_v33, %v2833_v37  ;;  %v6972_v54 = vld [vmem:[%s6678_s11 + $0x7c] sm:$0xf]  ;;  %v6995_v33 = vld [vmem:[%s6678_s11 + $0x88] sm:$0xf] }
  0x69   : > { %v455_v16 = vshrl.u32 %v6938_v10, 16  ;;  %v448_v44 = vor.u32 %v447_v40, %v444_v38  ;;  %v461_v45 = vshll.u32 %v215_v35, 16  ;;  %v5320_v46 = vrot.slane %v5304_v36, 9  ;;  %v217_v40 = vld [vmem:[%s6678_s11 + $0x8c] sm:$0x1] }
  0x6a   : > { %v453_v59 = vrot.slane %v451_v41, 5  ;;  %v440_v48 = vsel %vm6703_vm2, %v435_v58, %v439_v17  ;;  %5952 = vmatprep.mubr.msk.bf16.mxu0 %vm674_vm3, %v5339_v43  ;;  %v2840_v52 = vsel %vm6931_vm6, %v6739_v25, %v2839_v23  ;;  %v466_v53 = vshrl.u32 %v6957_v42, 16 }
  0x6b   : > { %v457_v49 = vrot.slane %v455_v16, 4  ;;  %v5033_v63 = vcombine.low %v430_v15, %v440_v48  ;;  %v449_v1 = vrot.slane %v448_v44, 4  ;;  %v463_v4 = vrot.slane %v461_v45, 5 }
  0x6c   : > { %v2837_v6 = vsel %vm6931_vm6, %v5320_v46, %v2836_v18  ;;  %v468_v9 = vrot.slane %v466_v53, 4  ;;  %v469_v23 = vshll.u32 %v6957_v42, 16  ;;  %v475_v14 = vshll.u32 %v6972_v54, 16  ;;  %v6405_v18 = vld [vmem:[%s8517_s1 + $0x68] sm:$0xff]  }
  0x6d   : > { %v458_v61 = vor.u32 %v457_v49, %v453_v59  ;;  %v5340_v8 = vcombine.low %v2837_v6, %v2840_v52  ;;  %5788 = vmatprep.mubr.msk.bf16.mxu1 %vm674_vm3, %v5033_v63  ;;  %v454_v25 = vsel %vm6703_vm2, %v449_v1, %v453_v59  ;;  %v479_v56 = vshrl.u32 %v6972_v54, 16  ;;  %v7013_v52 = vld [vmem:[%s6678_s11 + $0x90] sm:$0xf] }
  0x6e   : > { %v485_v17 = vshll.u32 %v216_v50, 16  ;;  %v471_v29 = vrot.slane %v469_v23, 5  ;;  %v5321_v31 = vrot.slane %v5305_v7, 9  ;;  %v2843_v32 = vrot.slane %v6746_v39, 5  ;;  %v5306_v39 = vld [vmem:[%s6678_s11 + $0x30] sm:$0xe] }
  0x6f   : > { %v459_v27 = vrot.slane %v458_v61, 4  ;;  %v477_v35 = vrot.slane %v475_v14, 5  ;;  %v481_v36 = vrot.slane %v479_v56, 4  ;;  %v2846_v38 = vrot.slane %v6755_v47, 5 }
  0x70   : > { %v487_v37 = vrot.slane %v485_v17, 5  ;;  %5953 = vmatmul.mubr.msk.bf16.vlgmr.msra.gmra.mrb[0].mxu0 %vm674_vm3, %v5340_v8  ;;  %v472_v15 = vor.u32 %v471_v29, %v468_v9  ;;  %v2844_v58 = vsel %vm6931_vm6, %v5321_v31, %v2843_v32  ;;  %v2845_v43 = vrot.slane %v2843_v32, 4  ;;  %v218_v9 = vld [vmem:[%s6678_s11 + $0x98] sm:$0x1]  ;;  %v5307_v32 = vld [vmem:[%s6678_s11 + $0x3c] sm:$0xe] }
  0x71   : > { %v464_v41 = vsel %vm6703_vm2, %v459_v27, %v463_v4  ;;  %5985 = vmatpush3.bf16.msra.mxu0 %v6785_v5  ;;  %v482_v44 = vor.u32 %v481_v36, %v477_v35  ;;  %v490_v47 = vshrl.u32 %v6988_v22, 16  ;;  %v493_v59 = vshll.u32 %v6988_v22, 16  ;;  %v7018_v5 = vld [vmem:[%s8517_s1 + $0x70] sm:$0xff]  }
  0x72   : > { %v5034_v16 = vcombine.low %v454_v25, %v464_v41  ;;  %v473_v45 = vrot.slane %v472_v15, 4  ;;  %v2847_v46 = vsel %vm6931_vm6, %v2845_v43, %v2846_v38  ;;  %v499_v48 = vshll.u32 %v6995_v33, 16  ;;  %5986 = vmatprep.subr.bf16.mxu0 %v6405_v18  ;;  %v7022_v4 = vld [vmem:[%s6678_s11 + $0x94] sm:$0xf]  ;;  %v7045_v15 = vld [vmem:[%s6678_s11 + $0xa0] sm:$0xf] }
  0x73   : > { %v503_v49 = vshrl.u32 %v6995_v33, 16  ;;  %v483_v50 = vrot.slane %v482_v44, 4  ;;  %v5341_v53 = vcombine.low %v2844_v58, %v2847_v46  ;;  %v492_v63 = vrot.slane %v490_v47, 4 }
  0x74   : > { %5789 = vmatmul.mubr.msk.bf16.gmra.mrb[16].mxu1 %vm674_vm3, %v5034_v16  ;;  %v495_v1 = vrot.slane %v493_v59, 5  ;;  %v478_v6 = vsel %vm6703_vm2, %v473_v45, %v477_v35  ;;  %v501_v7 = vrot.slane %v499_v48, 5  ;;  %v509_v8 = vshll.u32 %v217_v40, 16  ;;  %v7038_v40 = vld [vmem:[%s6678_s11 + $0x9c] sm:$0xf] }
  0x75   : > { %v505_v61 = vrot.slane %v503_v49, 4  ;;  %v488_v23 = vsel %vm6703_vm2, %v483_v50, %v487_v37  ;;  %5956 = vmatprep.mubr.msk.bf16.mxu0 %vm674_vm3, %v5341_v53  ;;  %v5322_v14 = vrot.slane %v5306_v39, 9  ;;  %v2850_v56 = vrot.slane %v6780_v26, 5  ;;  %5987 = vmatpush3.bf16.msra.mxu0 %v6405_v18  ;;  %v219_v53 = vld [vmem:[%s6678_s11 + $0xa4] sm:$0x1] }
  0x76   : > { %v496_v25 = vor.u32 %v495_v1, %v492_v63  ;;  %v5035_v17 = vcombine.low %v478_v6, %v488_v23  ;;  %v511_v29 = vrot.slane %v509_v8, 5  ;;  %v2853_v31 = vrot.slane %v6791_v34, 5  ;;  %6020 = vmatprep.subr.bf16.mxu0 %v7018_v5  ;;  %v5308_v63 = vld [vmem:[%s6678_s11 + $0x48] sm:$0xe] }
  0x77   : > { %v506_v27 = vor.u32 %v505_v61, %v501_v7  ;;  %v2851_v36 = vsel %vm6931_vm6, %v5322_v14, %v2850_v56  ;;  %v2852_v37 = vrot.slane %v2850_v56, 4  ;;  %v514_v38 = vshrl.u32 %v7013_v52, 16 }
  0x78   : > { %v497_v35 = vrot.slane %v496_v25, 4  ;;  %5792 = vmatprep.mubr.msk.bf16.mxu1 %vm674_vm3, %v5035_v17  ;;  %v517_v18 = vshll.u32 %v7013_v52, 16  ;;  %v523_v34 = vshll.u32 %v7022_v4, 16  ;;  %v527_v41 = vshrl.u32 %v7022_v4, 16 }
  0x79   : > { %v507_v26 = vrot.slane %v506_v27, 4  ;;  %v2854_v43 = vsel %vm6931_vm6, %v2852_v37, %v2853_v31  ;;  %v516_v39 = vrot.slane %v514_v38, 4  ;;  %v533_v16 = vshll.u32 %v218_v9, 16  ;;  %v7066_v27 = vld [vmem:[%s6678_s11 + $0xa8] sm:$0xf] }
  0x7a   : > { %v502_v58 = vsel %vm6703_vm2, %v497_v35, %v501_v7  ;;  %v5342_v47 = vcombine.low %v2851_v36, %v2854_v43  ;;  %v519_v59 = vrot.slane %v517_v18, 5  ;;  %v525_v45 = vrot.slane %v523_v34, 5  ;;  %v7069_v35 = vld [vmem:[%s6678_s11 + $0xac] sm:$0xf] }
  0x7b   : > { %v512_v44 = vsel %vm6703_vm2, %v507_v26, %v511_v29  ;;  %v529_v48 = vrot.slane %v527_v41, 4  ;;  %v535_v49 = vrot.slane %v533_v16, 5  ;;  %v5323_v50 = vrot.slane %v5307_v32, 9 }
  0x7c   : > { %v5036_v46 = vcombine.low %v502_v58, %v512_v44  ;;  %5957 = vmatmul.mubr.msk.bf16.gmra.mrb[4].mxu0 %vm674_vm3, %v5342_v47  ;;  %v520_v1 = vor.u32 %v519_v59, %v516_v39  ;;  %v2857_v6 = vrot.slane %v6809_v12, 5  ;;  %v2860_v7 = vrot.slane %v6814_v20, 5  ;;  %v220_v47 = vld [vmem:[%s6678_s11 + $0xb0] sm:$0x1]  ;;  %v5309_v59 = vld [vmem:[%s6678_s11 + $0x54] sm:$0xe] }
  0x7d   : > { %v538_v61 = vshrl.u32 %v7038_v40, 16  ;;  %v530_v8 = vor.u32 %v529_v48, %v525_v45  ;;  %v541_v9 = vshll.u32 %v7038_v40, 16  ;;  %v547_v23 = vshll.u32 %v7045_v15, 16 }
  0x7e   : > { %5793 = vmatmul.mubr.msk.bf16.gmra.mrb[20].mxu1 %vm674_vm3, %v5036_v46  ;;  %v551_v25 = vshrl.u32 %v7045_v15, 16  ;;  %v521_v14 = vrot.slane %v520_v1, 4  ;;  %v2858_v56 = vsel %vm6931_vm6, %v5323_v50, %v2857_v6  ;;  %v2859_v17 = vrot.slane %v2857_v6, 4 }
  0x7f   : > { %v540_v12 = vrot.slane %v538_v61, 4  ;;  %v531_v20 = vrot.slane %v530_v8, 4  ;;  %v543_v29 = vrot.slane %v541_v9, 5  ;;  %v549_v31 = vrot.slane %v547_v23, 5  ;;  %v7094_v61 = vld [vmem:[%s6678_s11 + $0xb4] sm:$0xf] }
  0x80   : > { %v553_v32 = vrot.slane %v551_v25, 4  ;;  %v526_v36 = vsel %vm6703_vm2, %v521_v14, %v525_v45  ;;  %v2861_v37 = vsel %vm6931_vm6, %v2859_v17, %v2860_v7  ;;  %v557_v38 = vshll.u32 %v219_v53, 16  ;;  %v7099_v14 = vld [vmem:[%s6678_s11 + $0xb8] sm:$0xf] }
  0x81   : > { %v5324_v26 = vrot.slane %v5308_v63, 9  ;;  %v536_v18 = vsel %vm6703_vm2, %v531_v20, %v535_v49  ;;  %v5343_v34 = vcombine.low %v2858_v56, %v2861_v37  ;;  %v544_v41 = vor.u32 %v543_v29, %v540_v12  ;;  %v221_v29 = vld [vmem:[%s6678_s11 + $0xbc] sm:$0x1] }
  0x82   : > { %v554_v58 = vor.u32 %v553_v32, %v549_v31  ;;  %v5037_v43 = vcombine.low %v526_v36, %v536_v18  ;;  %v559_v39 = vrot.slane %v557_v38, 5  ;;  %v2864_v16 = vrot.slane %v6832_v0, 5  ;;  %v5310_v38 = vld [vmem:[%s6678_s11 + $0x60] sm:$0xe] }
  0x83   : > { %v2867_v44 = vrot.slane %v6840_v13, 5  ;;  %5960 = vmatprep.mubr.msk.bf16.mxu0 %vm674_vm3, %v5343_v34  ;;  %v545_v45 = vrot.slane %v544_v41, 4  ;;  %v562_v48 = vshrl.u32 %v7066_v27, 16  ;;  %v565_v49 = vshll.u32 %v7066_v27, 16 }
  0x84   : > { %v555_v46 = vrot.slane %v554_v58, 4  ;;  %5796 = vmatprep.mubr.msk.bf16.mxu1 %vm674_vm3, %v5037_v43  ;;  %v2865_v50 = vsel %vm6931_vm6, %v5324_v26, %v2864_v16  ;;  %v2866_v0 = vrot.slane %v2864_v16, 4  ;;  %v571_v13 = vshll.u32 %v7069_v35, 16  ;;  %v5242_v16 = vld [vmem:[%s6678_s11 + $0x70] sm:$0xf] }
  0x85   : > { %v575_v53 = vshrl.u32 %v7069_v35, 16  ;;  %v550_v63 = vsel %vm6703_vm2, %v545_v45, %v549_v31  ;;  %v564_v6 = vrot.slane %v562_v48, 4  ;;  %v567_v7 = vrot.slane %v565_v49, 5 }
  0x86   : > { %v560_v1 = vsel %vm6703_vm2, %v555_v46, %v559_v39  ;;  %v2868_v9 = vsel %vm6931_vm6, %v2866_v0, %v2867_v44  ;;  %v573_v23 = vrot.slane %v571_v13, 5  ;;  %v581_v12 = vshll.u32 %v220_v47, 16  ;;  %v5311_v46 = vld [vmem:[%s6678_s11 + $0x6c] sm:$0xe] }
  0x87   : > { %v5038_v8 = vcombine.low %v550_v63, %v560_v1  ;;  %v577_v25 = vrot.slane %v575_v53, 4  ;;  %v5344_v56 = vcombine.low %v2865_v50, %v2868_v9  ;;  %v568_v17 = vor.u32 %v567_v7, %v564_v6 }
  0x88   : > { %v5325_v20 = vrot.slane %v5309_v59, 9  ;;  %v2871_v32 = vrot.slane %v6863_v55, 5  ;;  %v2874_v36 = vrot.slane %v6869_v3, 5  ;;  %v586_v37 = vshrl.u32 %v7094_v61, 16  ;;  %v5243_v3 = vld [vmem:[%s6678_s11 + $0x74] sm:$0x1] }
  0x89   : > { %5797 = vmatmul.mubr.msk.bf16.gmra.mrb[24].mxu1 %vm674_vm3, %v5038_v8  ;;  %v578_v31 = vor.u32 %v577_v25, %v573_v23  ;;  %5961 = vmatmul.mubr.msk.bf16.gmra.mrb[8].mxu0 %vm674_vm3, %v5344_v56  ;;  %v569_v26 = vrot.slane %v568_v17, 4  ;;  %v583_v18 = vrot.slane %v581_v12, 5  ;;  %v589_v34 = vshll.u32 %v7094_v61, 16  ;;  %v5312_v12 = vld [vmem:[%s6678_s11 + $0x78] sm:$0xe] }
  0x8a   : > { %v595_v41 = vshll.u32 %v7099_v14, 16  ;;  %v2872_v43 = vsel %vm6931_vm6, %v5325_v20, %v2871_v32  ;;  %v2873_v39 = vrot.slane %v2871_v32, 4  ;;  %v588_v55 = vrot.slane %v586_v37, 4 }
  0x8b   : > { %v579_v58 = vrot.slane %v578_v31, 4  ;;  %v574_v44 = vsel %vm6703_vm2, %v569_v26, %v573_v23  ;;  %v591_v47 = vrot.slane %v589_v34, 5  ;;  %v599_v45 = vshrl.u32 %v7099_v14, 16  ;;  %v7140_v26 = vld [vmem:[%s6678_s11 + $0x4] sm:$0xf] }
  0x8c   : > { %v597_v59 = vrot.slane %v595_v41, 5  ;;  %v2875_v49 = vsel %vm6931_vm6, %v2873_v39, %v2874_v36  ;;  %v605_v50 = vshll.u32 %v221_v29, 16  ;;  %v5326_v0 = vrot.slane %v5310_v38, 9  ;;  %v7134_v36 = vld [vmem:[%s6678_s11 + $0x7c] sm:$0xf] }
  0x8d   : > { %v584_v48 = vsel %vm6703_vm2, %v579_v58, %v583_v18  ;;  %v5345_v53 = vcombine.low %v2872_v43, %v2875_v49  ;;  %v592_v63 = vor.u32 %v591_v47, %v588_v55  ;;  %v601_v1 = vrot.slane %v599_v45, 4  ;;  %v6460_v38 = vld [vmem:[%s6678_s11] sm:$0xf]  ;;  %v5313_v41 = vld [vmem:[%s6678_s11 + $0x84] sm:$0xe] }
  0x8e   : > { %v5039_v13 = vcombine.low %v574_v44, %v584_v48  ;;  %v607_v6 = vrot.slane %v605_v50, 5  ;;  %v2878_v7 = vrot.slane %v6893_v51, 5  ;;  %v2881_v8 = vrot.slane %v6897_v57, 5  ;;  %v7144_v34 = vld [vmem:[%s6678_s11 + $0x80] sm:$0x1] }
  0x8f   : > { %v5327_v9 = vrot.slane %v5311_v46, 9  ;;  %5964 = vmatprep.mubr.msk.bf16.mxu0 %vm674_vm3, %v5345_v53  ;;  %v593_v23 = vrot.slane %v592_v63, 4  ;;  %v602_v25 = vor.u32 %v601_v1, %v597_v59  ;;  %v2885_v56 = vrot.slane %v5242_v16, 5  ;;  %v5248_v16 = vld [vmem:[%s6678_s11 + $0x88] sm:$0xf] }
  0x90   : > { %5800 = vmatprep.mubr.msk.bf16.mxu1 %vm674_vm3, %v5039_v13  ;;  %v2888_v17 = vrot.slane %v5243_v3, 5  ;;  %v2879_v51 = vsel %vm6931_vm6, %v5326_v0, %v2878_v7  ;;  %v2880_v20 = vrot.slane %v2878_v7, 4  ;;  %v5059_v18 = vcombine.low %v6460_v38, %v7140_v26  ;;  %v5249_v3 = vld [vmem:[%s6678_s11 + $0x8c] sm:$0x1]  ;;  %v5252_v0 = vld [vmem:[%s6678_s11 + $0x98] sm:$0x1] }
  0x91   : > { %v598_v57 = vsel %vm6703_vm2, %v593_v23, %v597_v59  ;;  %v603_v29 = vrot.slane %v602_v25, 4  ;;  %v2886_v31 = vsel %vm6931_vm6, %v5327_v9, %v2885_v56  ;;  %v2887_v32 = vrot.slane %v2885_v56, 4  ;;  %v5251_v59 = vld [vmem:[%s6678_s11 + $0x94] sm:$0xf]  ;;  %v5314_v13 = vld [vmem:[%s6678_s11 + $0x90] sm:$0xe] }
  0x92   : > { %v2882_v37 = vsel %vm6931_vm6, %v2880_v20, %v2881_v8  ;;  %v5328_v55 = vrot.slane %v5312_v12, 9  ;;  %v2892_v45 = vrot.slane %v7134_v36, 5  ;;  %v2895_v46 = vrot.slane %v7144_v34, 5  ;;  %v5255_v9 = vld [vmem:[%s6678_s11 + $0xa4] sm:$0x1] }
  0x93   : > { %v608_v58 = vsel %vm6703_vm2, %v603_v29, %v607_v6  ;;  %v5346_v43 = vcombine.low %v2879_v51, %v2882_v37  ;;  %v2889_v39 = vsel %vm6931_vm6, %v2887_v32, %v2888_v17  ;;  %v5329_v48 = vrot.slane %v5313_v41, 9  ;;  %v5254_v6 = vld [vmem:[%s6678_s11 + $0xa0] sm:$0xf]  ;;  %v5315_v23 = vld [vmem:[%s6678_s11 + $0x9c] sm:$0xe] }
  0x94   : > { %v5040_v44 = vcombine.low %v598_v57, %v608_v58  ;;  %v5347_v47 = vcombine.low %v2886_v31, %v2889_v39  ;;  %v2899_v49 = vrot.slane %v5248_v16, 5  ;;  %v2902_v50 = vrot.slane %v5249_v3, 5  ;;  %v6462_v25 = vld [vmem:[%s6678_s11 + $0xc] sm:$0xf]  ;;  %v7171_v56 = vld [vmem:[%s6678_s11 + $0x10] sm:$0xf] }
  0x95   : > { %5965 = vmatmul.mubr.msk.bf16.gmra.mrb[12].mxu0 %vm674_vm3, %v5346_v43  ;;  %v2893_v53 = vsel %vm6931_vm6, %v5328_v55, %v2892_v45  ;;  %v2894_v63 = vrot.slane %v2892_v45, 4  ;;  %v2906_v1 = vrot.slane %v5251_v59, 5  ;;  %v5060_v17 = vcombine.low %v6462_v25, %v7171_v56  ;;  %v6464_v37 = vld [vmem:[%s6678_s11 + $0x18] sm:$0xf]  ;;  %v7180_v38 = vld [vmem:[%s6678_s11 + $0x1c] sm:$0xf] }
  0x96   : > { %5801 = vmatmul.mubr.msk.bf16.gmra.mrb[28].mxu1 %vm674_vm3, %v5040_v44  ;;  %5968 = vmatprep.mubr.msk.bf16.mxu0 %vm674_vm3, %v5347_v47  ;;  %v2900_v7 = vsel %vm6931_vm6, %v5329_v48, %v2899_v49  ;;  %v2901_v8 = vrot.slane %v2899_v49, 4  ;;  %v5330_v51 = vrot.slane %v5314_v13, 9  ;;  %v2909_v20 = vrot.slane %v5252_v0, 5  ;;  %v5257_v39 = vld [vmem:[%s6678_s11 + $0xac] sm:$0xf]  ;;  %v6466_v45 = vld [vmem:[%s8517_s1 + $0x20] sm:$0xff]  }
  0x97   : > { %5808 = vmatprep.mubr.msk.bf16.mxu1 %vm674_vm3, %v5059_v18  ;;  %v2896_v12 = vsel %vm6931_vm6, %v2894_v63, %v2895_v46  ;;  %v2908_v31 = vrot.slane %v2906_v1, 4  ;;  %v2913_v32 = vrot.slane %v5254_v6, 5  ;;  %v5061_v18 = vcombine.low %v6464_v37, %v7180_v38  ;;  %v5260_v16 = vld [vmem:[%s6678_s11 + $0xb8] sm:$0xf]  ;;  %v6414_v3 = vld [vmem:[%s8517_s1 + $0x28] sm:$0xff]   ;;  %v7210_v63 = vld [vmem:[%s8517_s1 + $0x30] sm:$0xff]  }
  0x98   : > { %v5348_v57 = vcombine.low %v2893_v53, %v2896_v12  ;;  %v2903_v29 = vsel %vm6931_vm6, %v2901_v8, %v2902_v50  ;;  %v5331_v58 = vrot.slane %v5315_v23, 9  ;;  %v2916_v43 = vrot.slane %v5255_v9, 5  ;;  %v5258_v49 = vld [vmem:[%s6678_s11 + $0xb0] sm:$0x1]  ;;  %v5316_v50 = vld [vmem:[%s6678_s11 + $0xa8] sm:$0xe] }
  0x99   : > { %v5349_v41 = vcombine.low %v2900_v7, %v2903_v29  ;;  %v2915_v55 = vrot.slane %v2913_v32, 4  ;;  %v2907_v44 = vsel %vm6931_vm6, %v5330_v51, %v2906_v1  ;;  %v2910_v47 = vsel %vm6931_vm6, %v2908_v31, %v2909_v20  ;;  %v5261_v13 = vld [vmem:[%s6678_s11 + $0xbc] sm:$0x1]  ;;  %v5317_v53 = vld [vmem:[%s6678_s11 + $0xb4] sm:$0xe] }
  0x9a   : > { %v2920_v59 = vrot.slane %v5257_v39, 5  ;;  %v2914_v46 = vsel %vm6931_vm6, %v5331_v58, %v2913_v32  ;;  %v2927_v0 = vrot.slane %v5260_v16, 5  ;;  %v6467_v1 = vld [vmem:[%s6678_s11 + $0x24] sm:$0xf]  ;;  %v7214_v6 = vld [vmem:[%s6678_s11 + $0x28] sm:$0xf]  ;;  %v5350_v8 = vcombine.low %v2907_v44, %v2910_v47 }
  0x9b   : > { %v2917_v48 = vsel %vm6931_vm6, %v2915_v55, %v2916_v43  ;;  %v5062_v7 = vcombine.low %v6467_v1, %v7214_v6  ;;  %v5332_v23 = vrot.slane %v5316_v50, 9  ;;  %v6469_v12 = vld [vmem:[%s6678_s11 + $0x30] sm:$0xf]  ;;  %v7219_v51 = vld [vmem:[%s6678_s11 + $0x34] sm:$0xf]  ;;  %v2930_v31 = vrot.slane %v5261_v13, 5 }
  0x9c   : > { %v5351_v9 = vcombine.low %v2914_v46, %v2917_v48  ;;  %v2922_v25 = vrot.slane %v2920_v59, 4  ;;  %v5063_v20 = vcombine.low %v6469_v12, %v7219_v51  ;;  %v2929_v29 = vrot.slane %v2927_v0, 4  ;;  %v5263_v32 = vld [vmem:[%s6678_s11 + $0xc4] sm:$0xf]  ;;  %v5264_v55 = vld [vmem:[%s6678_s11 + $0xc8] sm:$0x1] }
  0x9d   : > { %5969 = vmatmul.mubr.msk.bf16.gmra.mrb[16].mxu0 %vm674_vm3, %v5348_v57  ;;  %v5333_v57 = vrot.slane %v5317_v53, 9  ;;  %v2921_v37 = vsel %vm6931_vm6, %v5332_v23, %v2920_v59  ;;  %v2934_v58 = vrot.slane %v5263_v32, 5  ;;  %v6471_v44 = vld [vmem:[%s6678_s11 + $0x3c] sm:$0xf]  ;;  %v7240_v47 = vld [vmem:[%s6678_s11 + $0x40] sm:$0xf]  ;;  %v5066_v53 = vcombine.low %v6873_v11, %v6879_v24 }
  0x9e   : > { %5809 = vmatmul.mubr.msk.bf16.vlgmr.msra.gmra.mrb[0].mxu1 %vm674_vm3, %v5060_v17  ;;  %5972 = vmatprep.mubr.msk.bf16.mxu0 %vm674_vm3, %v5349_v41  ;;  %v2923_v17 = vrot.slane %v5258_v49, 5  ;;  %v5318_v41 = vld [vmem:[%s6678_s11 + $0xc0] sm:$0xe]  ;;  %v2931_v39 = vsel %vm6931_vm6, %v2929_v29, %v2930_v31  ;;  %v5064_v59 = vcombine.low %v6471_v44, %v7240_v47  ;;  %v2937_v48 = vrot.slane %v5264_v55, 5  ;;  %v6415_v1 = vld [vmem:[%s6678_s11 + $0x18] sm:$0xff]  }
  0x9f   : > { %5841 = vmatpush3.bf16.msra.mxu1 %v6466_v45  ;;  %5812 = vmatprep.mubr.msk.bf16.mxu1 %vm674_vm3, %v5061_v18  ;;  %v2928_v43 = vsel %vm6931_vm6, %v5333_v57, %v2927_v0  ;;  %v2936_v46 = vrot.slane %v2934_v58, 4  ;;  %v5065_v49 = vcombine.low %v6844_v19, %v6847_v28  ;;  %v2299_v13 = vshll.u32 %v7134_v36, 16  ;;  %v1185_v11 = vld [vmem:[%s6678_s11] sm:$0xe]  ;;  %v1187_v24 = vld [vmem:[%s6678_s11 + $0x18] sm:$0xe] }
  0xa0   : > { %5842 = vmatprep.subr.bf16.mxu1 %v6414_v3  ;;  %v2924_v18 = vsel %vm6931_vm6, %v2922_v25, %v2923_v17  ;;  %v5353_v45 = vcombine.low %v2928_v43, %v2931_v39  ;;  %v2303_v19 = vshrl.u32 %v7134_v36, 16  ;;  %v1186_v25 = vld [vmem:[%s6678_s11 + $0xc] sm:$0xe]  ;;  %v6473_v17 = vld [vmem:[%s6678_s11 + $0x14] sm:$0x1]  ;;  %v2309_v31 = vshll.u32 %v7144_v34, 16 }
  0xa1   : > { %v5352_v16 = vcombine.low %v2921_v37, %v2924_v18  ;;  %v2938_v0 = vsel %vm6931_vm6, %v2936_v46, %v2937_v48  ;;  %v1248_v12 = vrot.slane %v6473_v17, 5  ;;  %v1259_v32 = vrot.slane %v7214_v6, 5  ;;  %v6418_v18 = vld [vmem:[%s6678_s11 + $0x24] sm:$0xff]   ;;  %v6420_v43 = vld [vmem:[%s6678_s11 + $0x30] sm:$0xff]   ;;  %v6475_v55 = vld [vmem:[%s6678_s11 + $0x20] sm:$0x1] }
  0xa2   : > { %v2305_v23 = vrot.slane %v2303_v19, 4  ;;  %v5068_v37 = vcombine.low %v6925_v62, %v6938_v10  ;;  %v5071_v34 = vcombine.low %v7013_v52, %v7022_v4  ;;  %v5093_v39 = vrot.slane %v1185_v11, 9  ;;  %v1189_v62 = vld [vmem:[%s6678_s11 + $0x30] sm:$0xe]  ;;  %v6433_v44 = vld [vmem:[%s8517_s1 + $0x78] sm:$0xff]  }
  0xa3   : > { %5843 = vmatpush3.bf16.msra.mxu1 %v6414_v3  ;;  %v5334_v3 = vrot.slane %v5318_v41, 9  ;;  %v1188_v41 = vld [vmem:[%s6678_s11 + $0x24] sm:$0xe]  ;;  %v5095_v6 = vrot.slane %v1187_v24, 9  ;;  %v6476_v46 = vld [vmem:[%s6678_s11 + $0x2c] sm:$0x1] }
  0xa4   : > { %5876 = vmatprep.subr.bf16.mxu1 %v7210_v63  ;;  %v1262_v48 = vrot.slane %v6476_v46, 5  ;;  %v5443_v24 = vld [vmem:[%s6678_s11 + $0x18] sm:$0xf] }
  0xa5   : > { %5973 = vmatmul.mubr.msk.bf16.gmra.mrb[20].mxu0 %vm674_vm3, %v5350_v8  ;;  %v2935_v50 = vsel %vm6931_vm6, %v5334_v3, %v2934_v58  ;;  %v5067_v8 = vcombine.low %v6900_v60, %v6910_v21  ;;  %v1238_v60 = vrot.slane %v7140_v26, 5  ;;  %v5094_v21 = vrot.slane %v1186_v25, 9  ;;  %v5451_v3 = vld [vmem:[%s6678_s11 + $0x38] sm:$0x1] }
  0xa6   : > { %5813 = vmatmul.mubr.msk.bf16.gmra.mrb[4].mxu1 %vm674_vm3, %v5062_v7  ;;  %5976 = vmatprep.mubr.msk.bf16.mxu0 %vm674_vm3, %v5351_v9  ;;  %v5354_v28 = vcombine.low %v2935_v50, %v2938_v0  ;;  %v1245_v7 = vrot.slane %v7171_v56, 5  ;;  %v7261_v9 = vrot.slane %v2299_v13, 5  ;;  %v1252_v56 = vrot.slane %v7180_v38, 5  ;;  %v6477_v13 = vld [vmem:[%s6678_s11 + $0x38] sm:$0x1] }
  0xa7   : > { %5816 = vmatprep.mubr.msk.bf16.mxu1 %vm674_vm3, %v5063_v20  ;;  %v6474_v20 = vld [vmem:[%s6678_s11 + $0x8] sm:$0x1]  ;;  %v5069_v26 = vcombine.low %v6957_v42, %v6972_v54  ;;  %v5070_v38 = vcombine.low %v6988_v22, %v6995_v33  ;;  %v1266_v58 = vrot.slane %v7219_v51, 5  ;;  %v1240_v10 = vrot.slane %v1238_v60, 4 }
  0xa8   : > { %8538 = vst [vmem:[#allocation5_spill] sm:$0xff] %v7261_v9  ;;  %v1247_v36 = vrot.slane %v1245_v7, 4  ;;  %v1241_v57 = vrot.slane %v6474_v20, 5  ;;  %v2306_v29 = vor.u32 %v2305_v23, %v7261_v9  ;;  %v7293_v42 = vsel %vm6931_vm6, %v5094_v21, %v1245_v7  ;;  %v7325_v23 = vld [vmem:[%s6678_s11 + $0x48] sm:$0xe] }
  0xa9   : > { %v1254_v51 = vrot.slane %v1252_v56, 4  ;;  %v5097_v50 = vrot.slane %v1189_v62, 9  ;;  %v1268_v0 = vrot.slane %v1266_v58, 4  ;;  %v1269_v19 = vrot.slane %v6477_v13, 5  ;;  %v6424_v21 = vld [vmem:[%s6678_s11 + $0x48] sm:$0xff]  }
  0xaa   : > { %v7297_v54 = vsel %vm6931_vm6, %v1247_v36, %v1248_v12  ;;  %v7320_v7 = vsel %vm6931_vm6, %v5093_v39, %v1238_v60  ;;  %v7327_v25 = vrot.slane %v2306_v29, 4  ;;  %v7334_v17 = vsel %vm6931_vm6, %v1240_v10, %v1241_v57  ;;  %v7348_v60 = vld [vmem:[%s8517_s1 + $0x80] sm:$0xff]   ;;  %v6478_v57 = vld [vmem:[%s6678_s11 + $0x4c] sm:$0xf]  ;;  %v5447_v13 = vld [vmem:[%s6678_s11 + $0x28] sm:$0xf] }
  0xab   : > { %v7338_v12 = vsel %vm6931_vm6, %v5095_v6, %v1252_v56  ;;  %v1273_v20 = vrot.slane %v7240_v47, 5  ;;  %v1280_v29 = vrot.slane %v6478_v57, 5  ;;  %v7376_v39 = vld [vmem:[%s6678_s11 + $0x60] sm:$0xe]  ;;  %v5445_v47 = vld [vmem:[%s6678_s11 + $0x20] sm:$0x1] }
  0xac   : > { %8540 = vst [vmem:[#allocation7_spill] sm:$0xff] %v7327_v25  ;;  %v5099_v10 = vrot.slane %v7325_v23, 9  ;;  %v5450_v62 = vld [vmem:[%s6678_s11 + $0x34] sm:$0xf] }
  0xad   : > { %5977 = vmatmul.mubr.msk.bf16.gmra.mrb[24].mxu0 %vm674_vm3, %v5352_v16  ;;  %v1255_v16 = vrot.slane %v6475_v55, 5  ;;  %v3665_v55 = vshrl.u32 %v5443_v24, 16  ;;  %v1275_v46 = vrot.slane %v1273_v20, 4  ;;  %v3722_v6 = vshll.u32 %v5450_v62, 16  ;;  %v6486_v9 = vld [vmem:[%s6678_s11 + $0x74] sm:$0x1] }
  0xae   : > { %5817 = vmatmul.mubr.msk.bf16.gmra.mrb[8].mxu1 %vm674_vm3, %v5064_v59  ;;  %5980 = vmatprep.mubr.msk.bf16.mxu0 %vm674_vm3, %v5353_v45  ;;  %v5096_v59 = vrot.slane %v1188_v41, 9  ;;  %v1261_v45 = vrot.slane %v1259_v32, 4  ;;  %v6479_v41 = vld [vmem:[%s6678_s11 + $0x44] sm:$0x1]  ;;  %v7419_v33 = vsel %vm6931_vm6, %v5099_v10, %v1280_v29  ;;  %v3698_v10 = vshll.u32 %v5447_v13, 16 }
  0xaf   : > { %5820 = vmatprep.mubr.msk.bf16.mxu1 %vm674_vm3, %v5065_v49  ;;  %v7342_v11 = vsel %vm6931_vm6, %v1254_v51, %v1255_v16  ;;  %v3668_v16 = vshll.u32 %v5443_v24, 16  ;;  %v7396_v24 = vld [vmem:[%s6678_s11 + $0x5c] sm:$0x1] }
  0xb0   : > { %v7353_v36 = vsel %vm6931_vm6, %v5096_v59, %v1259_v32  ;;  %v7357_v56 = vsel %vm6931_vm6, %v1261_v45, %v1262_v48  ;;  %v5446_v45 = vld [vmem:[%s6678_s11 + $0x24] sm:$0xf]  ;;  %v1282_v48 = vrot.slane %v1280_v29, 4  ;;  %v7442_v25 = vrot.slane %v3698_v10, 5 }
  0xb1   : > { %v3689_v4 = vshrl.u32 %v5446_v45, 16 }
  0xb3   : > { %v3691_v49 = vrot.slane %v3689_v4, 4  ;;  %v6430_v4 = vld [vmem:[%s6678_s11 + $0x6c] sm:$0xff]  }
  0xb5   : > { %5981 = vmatmul.mubr.msk.bf16.gmra.mrb[28].mxu0 %vm674_vm3, %v5354_v28  ;;  %v7310_v28 = vld [vmem:[%s6678_s11 + $0x3c] sm:$0xe] }
  0xb6   : > { %5821 = vmatmul.mubr.msk.bf16.gmra.mrb[12].mxu1 %vm674_vm3, %v5066_v53  ;;  %5988 = vmatprep.mubr.msk.bf16.mxu0 %vm674_vm3, %v6415_v1  ;;  %v7312_v53 = vrot.slane %v2309_v31, 5  ;;  %v7362_v31 = vld [vmem:[%s6678_s11 + $0x54] sm:$0xe]  ;;  %v5098_v32 = vrot.slane %v7310_v28, 9  ;;  %v6481_v28 = vld [vmem:[%s6678_s11 + $0x58] sm:$0xf] }
  0xb7   : > { %5824 = vmatprep.mubr.msk.bf16.mxu1 %vm674_vm3, %v5067_v8  ;;  %v1287_v23 = vrot.slane %v6481_v28, 5  ;;  %v3670_v28 = vrot.slane %v3668_v16, 5  ;;  %v6484_v16 = vld [vmem:[%s6678_s11 + $0x70] sm:$0xf]  ;;  %v3726_v1 = vshrl.u32 %v5450_v62, 16 }
  0xb8   : > { %8539 = vst [vmem:[#allocation6_spill] sm:$0xff] %v7312_v53  ;;  %v7415_v22 = vsel %vm6931_vm6, %v5098_v32, %v1273_v20  ;;  %v1194_v32 = vld [vmem:[%s6678_s11 + $0x6c] sm:$0xe]  ;;  %v1301_v29 = vrot.slane %v6484_v16, 5 }
  0xb9   : > { %v1289_v20 = vrot.slane %v1287_v23, 4  ;;  %v5102_v57 = vrot.slane %v1194_v32, 9 }
  0xbd   : > { %5989 = vmatmul.mubr.msk.bf16.vlgmr.msra.gmra.mrb[0].mxu0 %vm674_vm3, %v6418_v18  ;;  %v7367_v18 = vsel %vm6931_vm6, %v5097_v50, %v1266_v58  ;;  %v6480_v50 = vld [vmem:[%s6678_s11 + $0x50] sm:$0x1] }
  0xbe   : > { %5825 = vmatmul.mubr.msk.bf16.gmra.mrb[16].mxu1 %vm674_vm3, %v5068_v37  ;;  %6021 = vmatpush3.bf16.msra.mxu0 %v7018_v5  ;;  %v6422_v5 = vld [vmem:[%s6678_s11 + $0x3c] sm:$0xff]  }
  0xbf   : > { %5828 = vmatprep.mubr.msk.bf16.mxu1 %vm674_vm3, %v5069_v26  ;;  %5992 = vmatprep.mubr.msk.bf16.mxu0 %vm674_vm3, %v6420_v43  ;;  %v5444_v37 = vld [vmem:[%s6678_s11 + $0x1c] sm:$0xf]  ;;  %v7371_v26 = vsel %vm6931_vm6, %v1268_v0, %v1269_v19  ;;  %v1276_v43 = vrot.slane %v6479_v41, 5  ;;  %v1283_v0 = vrot.slane %v6480_v50, 5  ;;  %v5100_v19 = vrot.slane %v7362_v31, 9 }
  0xc0   : > { %6022 = vmatprep.subr.bf16.mxu0 %v6433_v44  ;;  %v3674_v51 = vshll.u32 %v5444_v37, 16  ;;  %v3678_v59 = vshrl.u32 %v5444_v37, 16  ;;  %v5101_v37 = vrot.slane %v7376_v39, 9  ;;  %v5449_v41 = vld [vmem:[%s6678_s11 + $0x30] sm:$0xf]  ;;  %v3667_v50 = vrot.slane %v3665_v55, 4 }
  0xc1   : > { %v6426_v39 = vld [vmem:[%s6678_s11 + $0x54] sm:$0xff]   ;;  %v7426_v55 = vsel %vm6931_vm6, %v1275_v46, %v1276_v43  ;;  %v7430_v52 = vsel %vm6931_vm6, %v1282_v48, %v1283_v0  ;;  %v3713_v43 = vshrl.u32 %v5449_v41, 16  ;;  %v3716_v46 = vshll.u32 %v5449_v41, 16  ;;  %v5448_v0 = vld [vmem:[%s6678_s11 + $0x2c] sm:$0x1] }
  0xc2   : > { %6023 = vmatpush3.bf16.msra.mxu0 %v6433_v44  ;;  %v3684_v44 = vshll.u32 %v5445_v47, 16  ;;  %v6428_v47 = vld [vmem:[%s6678_s11 + $0x60] sm:$0xff]   ;;  %v3671_v8 = vor.u32 %v3670_v28, %v3667_v50  ;;  %v8541_v50 = vcombine.low %v7038_v40, %v7045_v15  ;;  %v3708_v32 = vshll.u32 %v5448_v0, 16 }
  0xc3   : > { %6056 = vmatprep.subr.bf16.mxu0 %v7348_v60  ;;  %v3718_v28 = vrot.slane %v3716_v46, 5  ;;  %v6488_v46 = vld [vmem:[%s6678_s11 + $0x88] sm:$0xf] }
  0xc4   : > { %v3672_v40 = vrot.slane %v3671_v8, 4  ;;  %v1195_v8 = vld [vmem:[%s6678_s11 + $0x78] sm:$0xe]  ;;  %v3710_v0 = vrot.slane %v3708_v32, 5 }
  0xc5   : > { %5993 = vmatmul.mubr.msk.bf16.gmra.mrb[4].mxu0 %vm674_vm3, %v6422_v5  ;;  %v6483_v5 = vld [vmem:[%s6678_s11 + $0x64] sm:$0xf] }
  0xc6   : > { %5829 = vmatmul.mubr.msk.bf16.gmra.mrb[20].mxu1 %vm674_vm3, %v5070_v38  ;;  %5996 = vmatprep.mubr.msk.bf16.mxu0 %vm674_vm3, %v6424_v21  ;;  %v1294_v31 = vrot.slane %v6483_v5, 5  ;;  %v7421_v38 = vrot.slane %v3674_v51, 5  ;;  %v3680_v21 = vrot.slane %v3678_v59, 4  ;;  %v3702_v51 = vshrl.u32 %v5447_v13, 16  ;;  %v6485_v5 = vld [vmem:[%s6678_s11 + $0x68] sm:$0x1] }
  0xc7   : > { %5832 = vmatprep.mubr.msk.bf16.mxu1 %vm674_vm3, %v5071_v34  ;;  %v3692_v34 = vshll.u32 %v5446_v45, 16  ;;  %v1297_v58 = vrot.slane %v6485_v5, 5  ;;  %v7437_v45 = vrot.slane %v3684_v44, 5  ;;  %v1303_v13 = vrot.slane %v1301_v29, 4 }
  0xc8   : > { %v1296_v59 = vrot.slane %v1294_v31, 4  ;;  %v3681_v48 = vor.u32 %v3680_v21, %v7421_v38  ;;  %v1304_v5 = vrot.slane %v6486_v9, 5  ;;  %v3704_v41 = vrot.slane %v3702_v51, 4 }
  0xc9   : > { %v3694_v16 = vrot.slane %v3692_v34, 5  ;;  %v7453_v44 = vsel %vm6931_vm6, %v5100_v19, %v1287_v23  ;;  %v3715_v9 = vrot.slane %v3713_v43, 4  ;;  %v7459_v21 = vrot.slane %v3722_v6, 5  ;;  %v6487_v6 = vld [vmem:[%s6678_s11 + $0x7c] sm:$0xf] }
  0xca   : > { %v3682_v15 = vrot.slane %v3681_v48, 4  ;;  %v7466_v23 = vsel %vm6931_vm6, %v5101_v37, %v1294_v31  ;;  %v1308_v10 = vrot.slane %v6487_v6, 5  ;;  %v3732_v51 = vshll.u32 %v5451_v3, 16  ;;  %v6432_v43 = vld [vmem:[%s6678_s11 + $0x78] sm:$0xff]  }
  0xcb   : > { %v3695_v34 = vor.u32 %v3694_v16, %v3691_v49  ;;  %v7480_v49 = vsel %vm6931_vm6, %v1296_v59, %v1297_v58  ;;  %v7488_v37 = vsel %vm6931_vm6, %v1303_v13, %v1304_v5  ;;  %v3719_v31 = vor.u32 %v3718_v28, %v3715_v9  ;;  %v6489_v13 = vld [vmem:[%s6678_s11 + $0x80] sm:$0x1]  ;;  %v1198_v6 = vld [vmem:[%s6678_s11 + $0x9c] sm:$0xe] }
  0xcc   : > { %v3677_v3 = vsel %vm6703_vm2, %v3672_v40, %v7421_v38  ;;  %v3687_v58 = vsel %vm6703_vm2, %v3682_v15, %v7437_v45  ;;  %v1315_v48 = vrot.slane %v6488_v46, 5  ;;  %v5103_v16 = vrot.slane %v1195_v8, 9  ;;  %v6490_v40 = vld [vmem:[%s6678_s11 + $0x8c] sm:$0x1] }
  0xcd   : > { %5997 = vmatmul.mubr.msk.bf16.gmra.mrb[8].mxu0 %vm674_vm3, %v6426_v39  ;;  %v8542_v39 = vcombine.low %v7066_v27, %v7069_v35  ;;  %v8543_v27 = vrot.slane %v7396_v24, 5  ;;  %v7484_v24 = vsel %vm6931_vm6, %v5102_v57, %v1301_v29  ;;  %v5452_v57 = vld [vmem:[%s6678_s11 + $0x3c] sm:$0xf]  ;;  %v3696_v29 = vrot.slane %v3695_v34, 4 }
  0xce   : > { %5833 = vmatmul.mubr.msk.bf16.gmra.mrb[24].mxu1 %vm674_vm3, %v8541_v50  ;;  %6000 = vmatprep.mubr.msk.bf16.mxu0 %vm674_vm3, %v6428_v47  ;;  %v3728_v47 = vrot.slane %v3726_v1, 4  ;;  %v3705_v1 = vor.u32 %v3704_v41, %v7442_v25  ;;  %v1311_v5 = vrot.slane %v6489_v13, 5  ;;  %v7502_v41 = vld [vmem:[%s6678_s11 + $0x40] sm:$0xf]  ;;  %v1310_v50 = vrot.slane %v1308_v10, 4 }
  0xcf   : > { %5836 = vmatprep.mubr.msk.bf16.mxu1 %vm674_vm3, %v8542_v39  ;;  %v7472_v35 = vsel %vm6931_vm6, %v1289_v20, %v8543_v27  ;;  %v1196_v20 = vld [vmem:[%s6678_s11 + $0x84] sm:$0xe]  ;;  %8544 = vst [vmem:[#allocation8_spill] sm:$0xff] %v7502_v41  ;;  %v3734_v9 = vrot.slane %v3732_v51, 5  ;;  %v8545_v28 = vcombine.low %v7094_v61, %v7099_v14  ;;  %v3720_v39 = vrot.slane %v3719_v31, 4  ;;  %v6435_v51 = vld [vmem:[%s6678_s11 + $0x90] sm:$0xff]  }
  0xd0   : > { %v3729_v59 = vor.u32 %v3728_v47, %v7459_v21  ;;  %v3706_v38 = vrot.slane %v3705_v1, 4  ;;  %v5104_v45 = vrot.slane %v1196_v20, 9  ;;  %v1318_v15 = vrot.slane %v6490_v40, 5  ;;  %v6434_v1 = vld [vmem:[%s6678_s11 + $0x84] sm:$0xff]  }
  0xd1   : > { %v3737_v47 = vshrl.u32 %v5452_v57, 16  ;;  %v3740_v34 = vshll.u32 %v5452_v57, 16  ;;  %v1317_v27 = vrot.slane %v1315_v48, 4  ;;  %v3746_v61 = vshll.u32 %v7502_v41, 16 }
  0xd2   : > { %v3730_v32 = vrot.slane %v3729_v59, 4  ;;  %v3750_v14 = vshrl.u32 %v7502_v41, 16  ;;  %v3711_v31 = vsel %vm6703_vm2, %v3706_v38, %v3710_v0  ;;  %v7534_v20 = vsel %vm6931_vm6, %v5103_v16, %v1308_v10  ;;  %v7542_v59 = vld [vmem:[%s6678_s11 + $0x4c] sm:$0xf]  ;;  %v5458_v10 = vld [vmem:[%s6678_s11 + $0x54] sm:$0xf] }
  0xd3   : > { %v3725_v46 = vsel %vm6703_vm2, %v3720_v39, %v7459_v21  ;;  %v3739_v57 = vrot.slane %v3737_v47, 4  ;;  %v7553_v0 = vld [vmem:[%s6678_s11 + $0x58] sm:$0xf]  ;;  %v7565_v21 = vld [vmem:[%s6678_s11 + $0x44] sm:$0x1]  ;;  %v3770_v39 = vshll.u32 %v7542_v59, 16 }
  0xd4   : > { %v6441_v16 = vld [vmem:[%s8517_s1 + $0x38] sm:$0xff]   ;;  %v3735_v13 = vsel %vm6703_vm2, %v3730_v32, %v3734_v9  ;;  %8547 = vst [vmem:[#allocation9_spill] sm:$0xff] %v7565_v21  ;;  %v3752_v38 = vrot.slane %v3750_v14, 4  ;;  %v3774_v40 = vshrl.u32 %v7542_v59, 16  ;;  %v3785_v9 = vshrl.u32 %v5458_v10, 16 }
  0xd5   : > { %6001 = vmatmul.mubr.msk.bf16.gmra.mrb[12].mxu0 %vm674_vm3, %v6430_v4  ;;  %v8546_v4 = vcombine.low %v7320_v7, %v7334_v17  ;;  %v7522_v7 = vcombine.low %v3677_v3, %v3687_v58  ;;  %v7538_v3 = vsel %vm6931_vm6, %v1310_v50, %v1311_v5  ;;  %v5455_v58 = vld [vmem:[%s6678_s11 + $0x48] sm:$0xf]  ;;  %v7562_v5 = vsel %vm6931_vm6, %v1317_v27, %v1318_v15  ;;  %v7570_v50 = vld [vmem:[%s6678_s11 + $0x90] sm:$0xe]  ;;  %v6491_v27 = vld [vmem:[%s6678_s11 + $0x94] sm:$0xf] }
  0xd6   : > { %5837 = vmatmul.mubr.msk.bf16.gmra.mrb[28].mxu1 %vm674_vm3, %v8545_v28  ;;  %6004 = vmatprep.mubr.msk.bf16.mxu0 %vm674_vm3, %v6432_v43  ;;  %v3701_v43 = vsel %vm6703_vm2, %v3696_v29, %v7442_v25  ;;  %v7549_v25 = vsel %vm6931_vm6, %v5104_v45, %v1315_v48  ;;  %v3742_v29 = vrot.slane %v3740_v34, 5  ;;  %v7567_v48 = vrot.slane %v3746_v61, 5  ;;  %v6496_v41 = vld [vmem:[%s6678_s11 + $0xa4] sm:$0x1] }
  0xd7   : > { %5844 = vmatprep.mubr.msk.bf16.mxu1 %vm674_vm3, %v8546_v4  ;;  %v3761_v45 = vshrl.u32 %v5455_v58, 16  ;;  %v3764_v28 = vshll.u32 %v5455_v58, 16  ;;  %v3788_v47 = vshll.u32 %v5458_v10, 16  ;;  %v3794_v15 = vshll.u32 %v7553_v0, 16  ;;  %v5461_v58 = vld [vmem:[%s6678_s11 + $0x60] sm:$0xf] }
  0xd8   : > { %v3798_v34 = vshrl.u32 %v7553_v0, 16  ;;  %v8548_v4 = vcombine.low %v7293_v42, %v7297_v54  ;;  %v7582_v32 = vcombine.low %v3701_v43, %v3711_v31  ;;  %v7586_v61 = vcombine.low %v3725_v46, %v3735_v13  ;;  %v7599_v31 = vld [vmem:[%s6678_s11 + $0x50] sm:$0x1]  ;;  %v7605_v10 = vld [vmem:[%s6678_s11 + $0x64] sm:$0xf] }
  0xd9   : > { %v3756_v14 = vshll.u32 %v7565_v21, 16  ;;  %v8549_v42 = vcombine.low %v7338_v12, %v7342_v11  ;;  %v3766_v46 = vrot.slane %v3764_v28, 5  ;;  %v7602_v12 = vrot.slane %v3770_v39, 5  ;;  %v6492_v28 = vld [vmem:[%s6678_s11 + $0x98] sm:$0x1] }
  0xda   : > { %v3776_v11 = vrot.slane %v3774_v40, 4  ;;  %v3787_v13 = vrot.slane %v3785_v9, 4  ;;  %v1325_v17 = vrot.slane %v6492_v28, 5  ;;  %v3780_v39 = vshll.u32 %v7599_v31, 16  ;;  %v7617_v40 = vld [vmem:[%s6678_s11 + $0x5c] sm:$0x1] }
  0xdb   : > { %v7611_v54 = vrot.slane %v3756_v14, 5  ;;  %v3809_v8 = vshrl.u32 %v5461_v58, 16  ;;  %v3812_v19 = vshll.u32 %v5461_v58, 16  ;;  %v3818_v9 = vshll.u32 %v7605_v10, 16  ;;  %v6493_v14 = vld [vmem:[%s6678_s11 + $0xa0] sm:$0xf] }
  0xdc   : > { %v1329_v28 = vrot.slane %v6493_v14, 5  ;;  %v3782_v14 = vrot.slane %v3780_v39, 5  ;;  %v5106_v43 = vrot.slane %v1198_v6, 9  ;;  %v1332_v6 = vrot.slane %v6496_v41, 5 }
  0xdd   : > { %6005 = vmatmul.mubr.msk.bf16.gmra.mrb[16].mxu0 %vm674_vm3, %v6434_v1  ;;  %v3743_v1 = vor.u32 %v3742_v29, %v3739_v57  ;;  %v6436_v57 = vld [vmem:[%s6678_s11 + $0x9c] sm:$0xff]   ;;  %v6437_v29 = vld [vmem:[%s6678_s11 + $0xa8] sm:$0xff]  }
  0xde   : > { %5845 = vmatmul.mubr.msk.bf16.vlgmr.msra.gmra.mrb[0].mxu1 %vm674_vm3, %v8548_v4  ;;  %6008 = vmatprep.mubr.msk.bf16.mxu0 %vm674_vm3, %v6435_v51  ;;  %v3753_v51 = vor.u32 %v3752_v38, %v7567_v48  ;;  %v3790_v38 = vrot.slane %v3788_v47, 5  ;;  %v7609_v4 = vrot.slane %v3794_v15, 5  ;;  %v3822_v47 = vshrl.u32 %v7605_v10, 16 }
  0xdf   : > { %5877 = vmatpush3.bf16.msra.mxu1 %v7210_v63  ;;  %5848 = vmatprep.mubr.msk.bf16.mxu1 %vm674_vm3, %v8549_v42  ;;  %v3763_v63 = vrot.slane %v3761_v45, 4  ;;  %v3800_v42 = vrot.slane %v3798_v34, 4  ;;  %v1322_v45 = vrot.slane %v6491_v27, 5  ;;  %v7622_v15 = vrot.slane %v3743_v1, 4 }
  0xe0   : > { %5878 = vmatprep.subr.bf16.mxu1 %v6441_v16  ;;  %v3777_v27 = vor.u32 %v3776_v11, %v7602_v12  ;;  %v3754_v58 = vrot.slane %v3753_v51, 4  ;;  %v3791_v62 = vor.u32 %v3790_v38, %v3787_v13  ;;  %v6495_v51 = vld [vmem:[%s6678_s11 + $0xac] sm:$0xf]  ;;  %v8552_v38 = vcombine.low %v7367_v18, %v7371_v26 }
  0xe1   : > { %v3767_v34 = vor.u32 %v3766_v46, %v3763_v63  ;;  %v3801_v1 = vor.u32 %v3800_v42, %v7609_v4  ;;  %v3804_v63 = vshll.u32 %v7617_v40, 16  ;;  %v8551_v46 = vcombine.low %v7353_v36, %v7357_v56 }
  0xe2   : > { %v1324_v11 = vrot.slane %v1322_v45, 4  ;;  %v1336_v13 = vrot.slane %v6495_v51, 5  ;;  %v3811_v36 = vrot.slane %v3809_v8, 4  ;;  %v3814_v56 = vrot.slane %v3812_v19, 5  ;;  %v6438_v51 = vld [vmem:[%s6678_s11 + $0xb4] sm:$0xff]   ;;  %v6439_v8 = vld [vmem:[%s6678_s11 + $0xc0] sm:$0xff]  }
  0xe3   : > { %5879 = vmatpush3.bf16.msra.mxu1 %v6441_v16  ;;  %v7629_v16 = vld [vmem:[%s8517_s1 + $0x40] sm:$0xff]   ;;  %v7646_v42 = vrot.slane %v3818_v9, 5  ;;  %v3778_v21 = vrot.slane %v3777_v27, 4  ;;  %v1331_v39 = vrot.slane %v1329_v28, 4  ;;  %v3792_v18 = vrot.slane %v3791_v62, 4 }
  0xe4   : > { %8550 = vst [vmem:[#allocation10_spill] sm:$0xff] %v7629_v16  ;;  %6092 = vmatprep.subr.bf16.mxu1 %v7629_v16  ;;  %v7650_v16 = vld [vmem:[%s6678_s11 + $0x68] sm:$0x1]  ;;  %v3802_v26 = vrot.slane %v3801_v1, 4  ;;  %v3749_v19 = vsel %vm6703_vm2, %v7622_v15, %v7567_v48  ;;  %v8554_v9 = vrot.slane %v7570_v50, 9  ;;  %v3759_v62 = vsel %vm6703_vm2, %v3754_v58, %v7611_v54 }
  0xe5   : > { %6009 = vmatmul.mubr.msk.bf16.gmra.mrb[20].mxu0 %vm674_vm3, %v6436_v57  ;;  %v1199_v57 = vld [vmem:[%s6678_s11 + $0xa8] sm:$0xe]  ;;  %8553 = vst [vmem:[#allocation11_spill] sm:$0xff] %v7650_v16  ;;  %v3815_v1 = vor.u32 %v3814_v56, %v3811_v36  ;;  %v1200_v48 = vld [vmem:[%s6678_s11 + $0xb4] sm:$0xe]  ;;  %v7674_v50 = vsel %vm6931_vm6, %v1324_v11, %v1325_v17  ;;  %v7681_v54 = vsel %vm6931_vm6, %v5106_v43, %v1329_v28 }
  0xe6   : > { %5849 = vmatmul.mubr.msk.bf16.gmra.mrb[4].mxu1 %vm674_vm3, %v8551_v46  ;;  %6012 = vmatprep.mubr.msk.bf16.mxu0 %vm674_vm3, %v6437_v29  ;;  %v3824_v46 = vrot.slane %v3822_v47, 4  ;;  %v3768_v29 = vrot.slane %v3767_v34, 4  ;;  %v5107_v53 = vrot.slane %v1199_v57, 9  ;;  %v7662_v41 = vsel %vm6931_vm6, %v8554_v9, %v1322_v45  ;;  %v6497_v34 = vld [vmem:[%s6678_s11 + $0xb0] sm:$0x1] }
  0xe7   : > { %5852 = vmatprep.mubr.msk.bf16.mxu1 %vm674_vm3, %v8552_v38  ;;  %v3806_v38 = vrot.slane %v3804_v63, 5  ;;  %v1338_v47 = vrot.slane %v1336_v13, 4  ;;  %v1339_v27 = vrot.slane %v6497_v34, 5  ;;  %v3828_v57 = vshll.u32 %v7650_v16, 16  ;;  %v5464_v15 = vld [vmem:[%s6678_s11 + $0x6c] sm:$0xf] }
  0xe8   : > { %v3825_v63 = vor.u32 %v3824_v46, %v7646_v42  ;;  %v3773_v45 = vsel %vm6703_vm2, %v3768_v29, %v7602_v12  ;;  %v7685_v58 = vsel %vm6931_vm6, %v1331_v39, %v1332_v6  ;;  %v3783_v36 = vsel %vm6703_vm2, %v3778_v21, %v3782_v14  ;;  %v6498_v11 = vld [vmem:[%s6678_s11 + $0xb8] sm:$0xf] }
  0xe9   : > { %v3797_v17 = vsel %vm6703_vm2, %v3792_v18, %v7609_v4  ;;  %v3807_v12 = vsel %vm6703_vm2, %v3802_v26, %v3806_v38  ;;  %v7697_v43 = vsel %vm6931_vm6, %v5107_v53, %v1336_v13  ;;  %v8556_v28 = vcombine.low %v7415_v22, %v7426_v55  ;;  %v7710_v53 = vld [vmem:[%s6678_s11 + $0x70] sm:$0xf]  ;;  %v7734_v18 = vld [vmem:[%s6678_s11 + $0x7c] sm:$0xf]  ;;  %v5470_v26 = vld [vmem:[%s6678_s11 + $0x84] sm:$0xf] }
  0xea   : > { %8555 = vst [vmem:[#allocation12_spill] sm:$0xff] %v7697_v43  ;;  %v7706_v21 = vsel %vm6931_vm6, %v1338_v47, %v1339_v27  ;;  %v5108_v4 = vrot.slane %v1200_v48, 9  ;;  %v1343_v14 = vrot.slane %v6498_v11, 5  ;;  %8558 = vst [vmem:[#allocation14_spill] sm:$0xff] %v7710_v53  ;;  %v3833_v13 = vshrl.u32 %v5464_v15, 16  ;;  %v6440_v38 = vld [vmem:[%s6678_s11 + $0xcc] sm:$0xff]  }
  0xeb   : > { %8557 = vst [vmem:[#allocation13_spill] sm:$0xff] %v7706_v21  ;;  %v8559_v22 = vcombine.low %v7419_v33, %v7430_v52  ;;  %v7716_v55 = vcombine.low %v3749_v19, %v3759_v62  ;;  %v7718_v56 = vrot.slane %v3815_v1, 4  ;;  %v7720_v46 = vrot.slane %v3825_v63, 4  ;;  %v5467_v52 = vld [vmem:[%s6678_s11 + $0x78] sm:$0xf]  ;;  %8560 = vst [vmem:[#allocation15_spill] sm:$0xff] %v7734_v18 }
  0xec   : > { %v7722_v29 = vrot.slane %v3828_v57, 5  ;;  %v7726_v6 = vcombine.low %v3773_v45, %v3783_v36  ;;  %v7730_v33 = vcombine.low %v3797_v17, %v3807_v12  ;;  %v7741_v19 = vld [vmem:[%s6678_s11 + $0xbc] sm:$0x1]  ;;  %v3836_v47 = vshll.u32 %v5464_v15, 16  ;;  %v7746_v27 = vld [vmem:[%s6678_s11 + $0x88] sm:$0xf] }
  0xed   : > { %6013 = vmatmul.mubr.msk.bf16.gmra.mrb[24].mxu0 %vm674_vm3, %v6438_v51  ;;  %v3842_v34 = vshll.u32 %v7710_v53, 16  ;;  %8561 = vst [vmem:[#allocation16_spill] sm:$0xff] %v7746_v27  ;;  %v7750_v62 = vsel %vm6931_vm6, %v5108_v4, %v1343_v14  ;;  %v7752_v1 = vrot.slane %v1343_v14, 4  ;;  %v7754_v63 = vrot.slane %v3833_v13, 4  ;;  %v5473_v48 = vld [vmem:[%s6678_s11 + $0x90] sm:$0xf] }
  0xee   : > { %5853 = vmatmul.mubr.msk.bf16.gmra.mrb[8].mxu1 %vm674_vm3, %v8556_v28  ;;  %6016 = vmatprep.mubr.msk.bf16.mxu0 %vm674_vm3, %v6439_v8  ;;  %v3846_v57 = vshrl.u32 %v7710_v53, 16  ;;  %v3857_v36 = vshrl.u32 %v5467_v52, 16  ;;  %v3860_v17 = vshll.u32 %v5467_v52, 16  ;;  %v7767_v12 = vld [vmem:[%s6678_s11 + $0x94] sm:$0xf]  ;;  %v3866_v4 = vshll.u32 %v7734_v18, 16 }
  0xef   : > { %5856 = vmatprep.mubr.msk.bf16.mxu1 %vm674_vm3, %v8559_v22  ;;  %8562 = vst [vmem:[#allocation17_spill] sm:$0xff] %v7767_v12  ;;  %v7770_v28 = vld [vmem:[%s6678_s11 + $0x74] sm:$0x1]  ;;  %v3870_v11 = vshrl.u32 %v7734_v18, 16  ;;  %v3881_v14 = vshrl.u32 %v5470_v26, 16  ;;  %v3884_v13 = vshll.u32 %v5470_v26, 16  ;;  %v8564_v15 = vcombine.low %v7453_v44, %v7472_v35 }
  0xf0   : > { %8563 = vst [vmem:[#allocation18_spill] sm:$0xff] %v7770_v28  ;;  %v3890_v22 = vshll.u32 %v7746_v27, 16  ;;  %v3894_v8 = vshrl.u32 %v7746_v27, 16  ;;  %v3905_v51 = vshrl.u32 %v5473_v48, 16  ;;  %v3908_v52 = vshll.u32 %v5473_v48, 16 }
  0xf1   : > { %v3838_v45 = vrot.slane %v3836_v47, 5  ;;  %v7783_v26 = vrot.slane %v3842_v34, 5  ;;  %v3914_v39 = vshll.u32 %v7767_v12, 16  ;;  %v3918_v9 = vshrl.u32 %v7767_v12, 16  ;;  %v5476_v34 = vld [vmem:[%s6678_s11 + $0x9c] sm:$0xf] }
  0xf2   : > { %v8565_v48 = vcombine.low %v7466_v23, %v7480_v49  ;;  %v3848_v44 = vrot.slane %v3846_v57, 4  ;;  %v3852_v35 = vshll.u32 %v7770_v28, 16  ;;  %v3862_v47 = vrot.slane %v3860_v17, 5  ;;  %v7799_v18 = vld [vmem:[%s6678_s11 + $0x8c] sm:$0x1] }
  0xf3   : > { %v3872_v27 = vrot.slane %v3870_v11, 4  ;;  %v3883_v53 = vrot.slane %v3881_v14, 4  ;;  %v3886_v12 = vrot.slane %v3884_v13, 5  ;;  %v7801_v21 = vrot.slane %v3890_v22, 5  ;;  %v7807_v57 = vld [vmem:[%s6678_s11 + $0x98] sm:$0x1] }
  0xf4   : > { %v3896_v23 = vrot.slane %v3894_v8, 4  ;;  %v3907_v49 = vrot.slane %v3905_v51, 4  ;;  %v3910_v43 = vrot.slane %v3908_v52, 5  ;;  %v7809_v28 = vrot.slane %v3914_v39, 5  ;;  %v6444_v51 = vld [vmem:[%s8517_s1 + $0x88] sm:$0xff]  }
  0xf5   : > { %6017 = vmatmul.mubr.msk.bf16.gmra.mrb[28].mxu0 %vm674_vm3, %v6440_v38  ;;  %v7786_v38 = vld [vmem:[%s6678_s11 + $0x80] sm:$0x1]  ;;  %v3929_v17 = vshrl.u32 %v5476_v34, 16  ;;  %v3839_v11 = vor.u32 %v3838_v45, %v7754_v63  ;;  %v3849_v16 = vor.u32 %v3848_v44, %v7783_v26  ;;  %v3887_v22 = vor.u32 %v3886_v12, %v3883_v53 }
  0xf6   : > { %5857 = vmatmul.mubr.msk.bf16.gmra.mrb[12].mxu1 %vm674_vm3, %v8564_v15  ;;  %6024 = vmatprep.mubr.msk.bf16.mxu0 %vm674_vm3, %v7522_v7  ;;  %v3859_v7 = vrot.slane %v3857_v36, 4  ;;  %v7796_v15 = vrot.slane %v3866_v4, 5  ;;  %v3920_v36 = vrot.slane %v3918_v9, 4  ;;  %v3932_v4 = vshll.u32 %v5476_v34, 16 }
  0xf7   : > { %5860 = vmatprep.mubr.msk.bf16.mxu1 %vm674_vm3, %v8565_v48  ;;  %v7804_v48 = vld [vmem:[%s6678_s11 + $0xa0] sm:$0xf]  ;;  %v3876_v13 = vshll.u32 %v7786_v38, 16  ;;  %v3897_v63 = vor.u32 %v3896_v23, %v7801_v21  ;;  %v3900_v45 = vshll.u32 %v7799_v18, 16  ;;  %v3911_v52 = vor.u32 %v3910_v43, %v3907_v49 }
  0xf8   : > { %v3863_v14 = vor.u32 %v3862_v47, %v3859_v7  ;;  %v3873_v8 = vor.u32 %v3872_v27, %v7796_v15  ;;  %v3938_v39 = vshll.u32 %v7804_v48, 16  ;;  %v3942_v9 = vshrl.u32 %v7804_v48, 16 }
  0xf9   : > { %v3924_v27 = vshll.u32 %v7807_v57, 16  ;;  %v8566_v44 = vcombine.low %v7484_v24, %v7488_v37  ;;  %v3854_v53 = vrot.slane %v3852_v35, 5  ;;  %v3921_v12 = vor.u32 %v3920_v36, %v7809_v28 }
  0xfa   : > { %v3931_v7 = vrot.slane %v3929_v17, 4  ;;  %v8567_v47 = vcombine.low %v7534_v20, %v7538_v3  ;;  %v3840_v43 = vrot.slane %v3839_v11, 4  ;;  %v3850_v24 = vrot.slane %v3849_v16, 4  ;;  %v7844_v16 = vld [vmem:[%s6678_s11 + $0xac] sm:$0xf] }
  0xfb   : > { %v3864_v37 = vrot.slane %v3863_v14, 4  ;;  %v3878_v34 = vrot.slane %v3876_v13, 5  ;;  %v3874_v35 = vrot.slane %v3873_v8, 4  ;;  %v3888_v23 = vrot.slane %v3887_v22, 4 }
  0xfc   : > { %v7838_v49 = vrot.slane %v3938_v39, 5  ;;  %v3944_v36 = vrot.slane %v3942_v9, 4  ;;  %v3898_v17 = vrot.slane %v3897_v63, 4  ;;  %v3902_v20 = vrot.slane %v3900_v45, 5 }
  0xfd   : > { %6025 = vmatmul.mubr.msk.bf16.vlgmr.msra.gmra.mrb[0].mxu0 %vm674_vm3, %v7582_v32  ;;  %v3934_v32 = vrot.slane %v3932_v4, 5  ;;  %v3912_v3 = vrot.slane %v3911_v52, 4  ;;  %v3926_v4 = vrot.slane %v3924_v27, 5  ;;  %v8568_v8 = vrot.slane %v7741_v19, 5 }
  0xfe   : > { %5861 = vmatmul.mubr.msk.bf16.gmra.mrb[16].mxu1 %vm674_vm3, %v8566_v44  ;;  %6057 = vmatpush3.bf16.msra.mxu0 %v7348_v60  ;;  %v5479_v60 = vld [vmem:[%s6678_s11 + $0xa8] sm:$0xf]  ;;  %v7841_v44 = vld [vmem:[%s6678_s11 + $0xa4] sm:$0x1]  ;;  %v3845_v39 = vsel %vm6703_vm2, %v3840_v43, %v7783_v26  ;;  %v3869_v9 = vsel %vm6703_vm2, %v3864_v37, %v7796_v15  ;;  %v3879_v19 = vsel %vm6703_vm2, %v3874_v35, %v3878_v34  ;;  %v3962_v52 = vshll.u32 %v7844_v16, 16 }
  0xff   : > { %5864 = vmatprep.mubr.msk.bf16.mxu1 %vm674_vm3, %v8567_v47  ;;  %6028 = vmatprep.mubr.msk.bf16.mxu0 %vm674_vm3, %v7586_v61  ;;  %v3922_v61 = vrot.slane %v3921_v12, 4  ;;  %v3935_v11 = vor.u32 %v3934_v32, %v3931_v7  ;;  %v3953_v14 = vshrl.u32 %v5479_v60, 16  ;;  %v3956_v13 = vshll.u32 %v5479_v60, 16 }
 0x100   : > { %6058 = vmatprep.subr.bf16.mxu0 %v6444_v51  ;;  %v7851_v22 = vsel %vm6931_vm6, %v7752_v1, %v8568_v8  ;;  %v3893_v1 = vsel %vm6703_vm2, %v3888_v23, %v7801_v21  ;;  %v3945_v63 = vor.u32 %v3944_v36, %v7838_v49  ;;  %v3948_v45 = vshll.u32 %v7841_v44, 16  ;;  %v5533_v21 = vld [vmem:[%s6678_s11 + $0x48] sm:$0xe]  ;;  %v5536_v8 = vld [vmem:[%s6678_s11 + $0x6c] sm:$0xe] }
 0x101   : > { %v3903_v26 = vsel %vm6703_vm2, %v3898_v17, %v3902_v20  ;;  %v3917_v15 = vsel %vm6703_vm2, %v3912_v3, %v7809_v28  ;;  %v3966_v27 = vshrl.u32 %v7844_v16, 16  ;;  %v3936_v12 = vrot.slane %v3935_v11, 4  ;;  %v7887_v28 = vld [vmem:[%s6678_s11 + $0xb0] sm:$0x1] }
 0x102   : > { %6059 = vmatpush3.bf16.msra.mxu0 %v6444_v51  ;;  %v3855_v51 = vsel %vm6703_vm2, %v3850_v24, %v3854_v53  ;;  %v8569_v53 = vcombine.low %v7549_v25, %v7562_v5  ;;  %v3955_v7 = vrot.slane %v3953_v14, 4  ;;  %v3958_v32 = vrot.slane %v3956_v13, 5 }
 0x103   : > { %v8570_v47 = vcombine.low %v7662_v41, %v7674_v50  ;;  %v8571_v25 = vsel %vm6703_vm2, %v7720_v46, %v7722_v29  ;;  %v8572_v5 = vsel %vm6703_vm2, %v7718_v56, %v7646_v42  ;;  %v5128_v43 = vcombine.low %v7750_v62, %v7851_v22  ;;  %v5482_v50 = vld [vmem:[%s6678_s11 + $0xb4] sm:$0xf] }
 0x104   : > { %v7905_v24 = vcombine.low %v3845_v39, %v3855_v51  ;;  %v7907_v41 = vcombine.low %v3869_v9, %v3879_v19  ;;  %v7910_v37 = vcombine.low %v3893_v1, %v3903_v26  ;;  %v3946_v34 = vrot.slane %v3945_v63, 4  ;;  %v5534_v29 = vld [vmem:[%s6678_s11 + $0x54] sm:$0xe] }
 0x105   : > { %6029 = vmatmul.mubr.msk.bf16.gmra.mrb[4].mxu0 %vm674_vm3, %v7716_v55  ;;  %v3927_v55 = vsel %vm6703_vm2, %v3922_v61, %v3926_v4  ;;  %v3950_v60 = vrot.slane %v3948_v45, 5  ;;  %v5549_v46 = vrot.slane %v5533_v21, 9  ;;  %v7915_v42 = vrot.slane %v3962_v52, 5  ;;  %v5535_v4 = vld [vmem:[%s6678_s11 + $0x60] sm:$0xe]  ;;  %v8574_v45 = vld [vmem:[#allocation11_spill] sm:$0xff] }
 0x106   : > { %5865 = vmatmul.mubr.msk.bf16.gmra.mrb[20].mxu1 %vm674_vm3, %v8569_v53  ;;  %6032 = vmatprep.mubr.msk.bf16.mxu0 %vm674_vm3, %v7726_v6  ;;  %v5501_v6 = vcombine.low %v8572_v5, %v8571_v25  ;;  %v7913_v35 = vcombine.low %v3917_v15, %v3927_v55  ;;  %v3968_v56 = vrot.slane %v3966_v27, 4  ;;  %v3972_v23 = vshll.u32 %v7887_v28, 16  ;;  %v8575_v52 = vld [vmem:[#allocation12_spill] sm:$0xff]  ;;  %v8576_v27 = vld [vmem:[#allocation13_spill] sm:$0xff]  ;;  %v8578_v53 = vld [vmem:[#allocation14_spill] sm:$0xff] }
 0x107   : > { %5868 = vmatprep.mubr.msk.bf16.mxu1 %vm674_vm3, %v8570_v47  ;;  %v3941_v36 = vsel %vm6703_vm2, %v3936_v12, %v7838_v49  ;;  %v3959_v17 = vor.u32 %v3958_v32, %v3955_v7  ;;  %v4448_v20 = vrot.slane %v7542_v59, 5  ;;  %v4451_v3 = vrot.slane %v7599_v31, 5  ;;  %v7937_v31 = vld [vmem:[%s6678_s11 + $0xb8] sm:$0xf]  ;;  %v8579_v12 = vld [vmem:[#allocation18_spill] sm:$0xff] }
 0x108   : > { %v3977_v61 = vshrl.u32 %v5482_v50, 16  ;;  %v5550_v11 = vrot.slane %v5534_v29, 9  ;;  %v4455_v14 = vrot.slane %v7553_v0, 5  ;;  %v4458_v13 = vrot.slane %v7617_v40, 5  ;;  %v5485_v32 = vld [vmem:[%s6678_s11 + $0xc0] sm:$0xf] }
 0x109   : > { %v3951_v39 = vsel %vm6703_vm2, %v3946_v34, %v3950_v60  ;;  %v3980_v51 = vshll.u32 %v5482_v50, 16  ;;  %v7931_v49 = vsel %vm6931_vm6, %v5549_v46, %v4448_v20  ;;  %v4450_v9 = vrot.slane %v4448_v20, 4  ;;  %v5537_v46 = vld [vmem:[%s6678_s11 + $0x78] sm:$0xe] }
 0x10a   : > { %v3969_v59 = vor.u32 %v3968_v56, %v7915_v42  ;;  %v7941_v0 = vsel %vm6931_vm6, %v5550_v11, %v4455_v14  ;;  %v4457_v40 = vrot.slane %v4455_v14, 4  ;;  %v5551_v19 = vrot.slane %v5535_v4, 9  ;;  %v6443_v4 = vld [vmem:[%s6678_s11 + $0xc] sm:$0xff]  }
 0x10b   : > { %v8573_v1 = vcombine.low %v7681_v54, %v7685_v58  ;;  %v4462_v63 = vrot.slane %v7605_v10, 5  ;;  %v4465_v26 = vrot.slane %v8574_v45, 5  ;;  %v5552_v15 = vrot.slane %v5536_v8, 9 }
 0x10c   : > { %v8577_v21 = vcombine.low %v8575_v52, %v8576_v27  ;;  %v7962_v58 = vsel %vm6931_vm6, %v4457_v40, %v4458_v13  ;;  %v4469_v55 = vrot.slane %v8578_v53, 5  ;;  %v4472_v10 = vrot.slane %v8579_v12, 5  ;;  %v7999_v13 = vld [vmem:[%s6678_s11 + $0xc4] sm:$0xf]  ;;  %v8581_v52 = vld [vmem:[#allocation6_spill] sm:$0xff]  ;;  %v8582_v27 = vld [vmem:[#allocation7_spill] sm:$0xff] }
 0x10d   : > { %6033 = vmatmul.mubr.msk.bf16.gmra.mrb[8].mxu0 %vm674_vm3, %v7730_v33  ;;  %v7950_v33 = vsel %vm6931_vm6, %v4450_v9, %v4451_v3  ;;  %v3986_v7 = vshll.u32 %v7937_v31, 16  ;;  %v5570_v47 = vcombine.low %v7941_v0, %v7962_v58  ;;  %v7972_v25 = vsel %vm6931_vm6, %v5551_v19, %v4462_v63  ;;  %v5244_v3 = vld [vmem:[%s6678_s11 + $0x78] sm:$0xf]  ;;  %v8580_v19 = vld [vmem:[#allocation15_spill] sm:$0xff]  ;;  %v6511_v58 = vld [vmem:[%s6678_s11 + $0xa0] sm:$0xf] }
 0x10e   : > { %5869 = vmatmul.mubr.msk.bf16.gmra.mrb[24].mxu1 %vm674_vm3, %v8573_v1  ;;  %6036 = vmatprep.mubr.msk.bf16.mxu0 %vm674_vm3, %v5501_v6  ;;  %v5569_v54 = vcombine.low %v7931_v49, %v7950_v33  ;;  %v4464_v5 = vrot.slane %v4462_v63, 4  ;;  %v7974_v6 = vrot.slane %v3972_v23, 5  ;;  %v3990_v50 = vshrl.u32 %v7937_v31, 16  ;;  %v8583_v12 = vld [vmem:[#allocation16_spill] sm:$0xff] }
 0x10f   : > { %5872 = vmatprep.mubr.msk.bf16.mxu1 %vm674_vm3, %v8577_v21  ;;  %v7979_v34 = vsel %vm6931_vm6, %v5552_v15, %v4469_v55  ;;  %v4471_v60 = vrot.slane %v4469_v55, 4  ;;  %v7982_v29 = vcombine.low %v3941_v36, %v3951_v39  ;;  %v7984_v56 = vrot.slane %v3959_v17, 4 }
 0x110   : > { %v7986_v20 = vrot.slane %v3977_v61, 4  ;;  %v7990_v23 = vsel %vm6931_vm6, %v4464_v5, %v4465_v26  ;;  %v7994_v11 = vrot.slane %v3969_v59, 4  ;;  %v7996_v14 = vrot.slane %v3980_v51, 5  ;;  %v5538_v59 = vld [vmem:[%s6678_s11 + $0x84] sm:$0xe] }
 0x111   : > { %v5571_v36 = vcombine.low %v7972_v25, %v7990_v23  ;;  %v8005_v17 = vsel %vm6931_vm6, %v4471_v60, %v4472_v10  ;;  %v8007_v61 = vrot.slane %v3986_v7, 5  ;;  %v4001_v8 = vshrl.u32 %v5485_v32, 16  ;;  %v8015_v51 = vld [vmem:[%s6678_s11 + $0xbc] sm:$0x1]  ;;  %v5488_v5 = vld [vmem:[%s6678_s11 + $0xcc] sm:$0xf] }
 0x112   : > { %v5572_v39 = vcombine.low %v7979_v34, %v8005_v17  ;;  %v5553_v9 = vrot.slane %v5537_v46, 9  ;;  %v4004_v40 = vshll.u32 %v5485_v32, 16  ;;  %v4476_v1 = vrot.slane %v8580_v19, 5  ;;  %v6445_v46 = vld [vmem:[%s6678_s11 + $0x18] sm:$0xff]   ;;  %v5539_v19 = vld [vmem:[%s6678_s11 + $0x90] sm:$0xe] }
 0x113   : > { %v4479_v63 = vrot.slane %v7786_v38, 5  ;;  %v2290_v45 = vshrl.u32 %v5244_v3, 16  ;;  %v4010_v26 = vshll.u32 %v7999_v13, 16  ;;  %v2293_v15 = vshll.u32 %v5244_v3, 16  ;;  %v6515_v17 = vld [vmem:[%s6678_s11 + $0xac] sm:$0xf] }
 0x114   : > { %v2312_v38 = vsel %vm6703_vm2, %v8582_v27, %v8581_v52  ;;  %v8034_v62 = vsel %vm6931_vm6, %v5553_v9, %v4476_v1  ;;  %v4478_v22 = vrot.slane %v4476_v1, 4  ;;  %v3992_v21 = vrot.slane %v3990_v50, 4  ;;  %v8584_v27 = vld [vmem:[#allocation17_spill] sm:$0xff] }
 0x115   : > { %6037 = vmatmul.mubr.msk.bf16.gmra.mrb[12].mxu0 %vm674_vm3, %v7905_v24  ;;  %v4014_v24 = vshrl.u32 %v7999_v13, 16  ;;  %v3996_v53 = vshll.u32 %v8015_v51, 16  ;;  %v2295_v55 = vrot.slane %v2293_v15, 5  ;;  %v4483_v10 = vrot.slane %v8583_v12, 5 }
 0x116   : > { %5873 = vmatmul.mubr.msk.bf16.gmra.mrb[28].mxu1 %vm674_vm3, %v5128_v43  ;;  %6040 = vmatprep.mubr.msk.bf16.mxu0 %vm674_vm3, %v7907_v41  ;;  %v2292_v43 = vrot.slane %v2290_v45, 4  ;;  %v5554_v41 = vrot.slane %v5538_v59, 9  ;;  %v3965_v7 = vsel %vm6703_vm2, %v7984_v56, %v7915_v42  ;;  %v3983_v32 = vor.u32 %v7996_v14, %v7986_v20  ;;  %v6446_v42 = vld [vmem:[%s6678_s11 + $0x24] sm:$0xff]   ;;  %v8058_v14 = vld [vmem:[%s6678_s11 + $0xd0] sm:$0xf] }
 0x117   : > { %5880 = vmatprep.mubr.msk.bf16.mxu1 %vm674_vm3, %v6443_v4  ;;  %v8047_v60 = vsel %vm6931_vm6, %v4478_v22, %v4479_v63  ;;  %v4486_v50 = vrot.slane %v7799_v18, 5  ;;  %v4003_v3 = vrot.slane %v4001_v8, 4  ;;  %v4006_v4 = vrot.slane %v4004_v40, 5  ;;  %v8070_v40 = vld [vmem:[%s6678_s11 + $0xc8] sm:$0x1] }
 0x118   : > { %v5573_v9 = vcombine.low %v8034_v62, %v8047_v60  ;;  %v2296_v59 = vor.u32 %v2295_v55, %v2292_v43  ;;  %v8055_v56 = vrot.slane %v4010_v26, 5  ;;  %v4016_v20 = vrot.slane %v4014_v24, 4  ;;  %v8585_v43 = vld [vmem:[#allocation5_spill] sm:$0xff] }
 0x119   : > { %v8062_v1 = vsel %vm6931_vm6, %v5554_v41, %v4483_v10  ;;  %v4485_v63 = vrot.slane %v4483_v10, 4  ;;  %v3975_v18 = vsel %vm6703_vm2, %v7994_v11, %v7974_v6  ;;  %v3993_v8 = vor.u32 %v3992_v21, %v8007_v61  ;;  %v8586_v21 = vld [vmem:[#allocation10_spill] sm:$0xff] }
 0x11a   : > { %v4025_v45 = vshrl.u32 %v5488_v5, 16  ;;  %v2297_v26 = vrot.slane %v2296_v59, 4  ;;  %v4028_v24 = vshll.u32 %v5488_v5, 16  ;;  %v5555_v52 = vrot.slane %v5539_v19, 9 }
 0x11b   : > { %v8076_v15 = vsel %vm6931_vm6, %v4485_v63, %v4486_v50  ;;  %v4490_v22 = vrot.slane %v8584_v27, 5  ;;  %v4034_v6 = vshll.u32 %v8058_v14, 16  ;;  %v4038_v11 = vshrl.u32 %v8058_v14, 16  ;;  %v6500_v50 = vld [vmem:[%s8517_s1 + $0x48] sm:$0xff]   ;;  %v6447_v63 = vld [vmem:[%s6678_s11 + $0x30] sm:$0xff]  }
 0x11c   : > { %v5574_v41 = vcombine.low %v8062_v1, %v8076_v15  ;;  %v4007_v55 = vor.u32 %v4006_v4, %v4003_v3  ;;  %v4020_v12 = vshll.u32 %v8070_v40, 16  ;;  %v3998_v5 = vrot.slane %v3996_v53, 5  ;;  %v8106_v53 = vld [vmem:[%s6678_s11 + $0xd4] sm:$0x1] }
 0x11d   : > { %6041 = vmatmul.mubr.msk.bf16.gmra.mrb[16].mxu0 %vm674_vm3, %v7910_v37  ;;  %v2302_v37 = vsel %vm6703_vm2, %v2297_v26, %v8585_v43  ;;  %v4492_v59 = vrot.slane %v4490_v22, 4  ;;  %v4493_v3 = vrot.slane %v7807_v57, 5  ;;  %v5507_v4 = vcombine.low %v3965_v7, %v3975_v18 }
 0x11e   : > { %5881 = vmatmul.mubr.msk.bf16.vlgmr.msra.gmra.mrb[0].mxu1 %vm674_vm3, %v6445_v46  ;;  %6044 = vmatprep.mubr.msk.bf16.mxu0 %vm674_vm3, %v7913_v35  ;;  %v4017_v35 = vor.u32 %v4016_v20, %v8055_v56  ;;  %v8093_v10 = vcombine.low %v2302_v37, %v2312_v38  ;;  %v8100_v46 = vsel %vm6931_vm6, %v5555_v52, %v4490_v22  ;;  %v3984_v19 = vrot.slane %v3983_v32, 4  ;;  %v5540_v38 = vld [vmem:[%s6678_s11 + $0x9c] sm:$0xe] }
 0x11f   : > { %6094 = vmatpush3.bf16.msra.mxu1 %v8586_v21  ;;  %5884 = vmatprep.mubr.msk.bf16.mxu1 %vm674_vm3, %v6446_v42  ;;  %v3994_v42 = vrot.slane %v3993_v8, 4  ;;  %v4027_v20 = vrot.slane %v4025_v45, 4  ;;  %v4030_v26 = vrot.slane %v4028_v24, 5  ;;  %v8108_v27 = vrot.slane %v4034_v6, 5  ;;  %v6448_v52 = vld [vmem:[%s6678_s11 + $0x3c] sm:$0xff]  }
 0x120   : > { %6093 = vmatprep.subr.bf16.mxu1 %v6500_v50  ;;  %v4040_v43 = vrot.slane %v4038_v11, 4  ;;  %v8112_v37 = vsel %vm6931_vm6, %v4492_v59, %v4493_v3  ;;  %v4008_v22 = vrot.slane %v4007_v55, 4  ;;  %v4018_v57 = vrot.slane %v4017_v35, 4  ;;  %v5529_v21 = vld [vmem:[%s6678_s11 + $0x18] sm:$0xe] }
 0x121   : > { %v4022_v7 = vrot.slane %v4020_v12, 5  ;;  %v5575_v32 = vcombine.low %v8100_v46, %v8112_v37  ;;  %v5556_v18 = vrot.slane %v5540_v38, 9  ;;  %v4497_v8 = vrot.slane %v7804_v48, 5  ;;  %v6501_v12 = vld [vmem:[%s6678_s11 + $0x1c] sm:$0xf] }
 0x122   : > { %v3989_v45 = vsel %vm6703_vm2, %v3984_v19, %v8007_v61  ;;  %v3999_v24 = vsel %vm6703_vm2, %v3994_v42, %v3998_v5  ;;  %v4044_v6 = vshll.u32 %v8106_v53, 16  ;;  %v4500_v11 = vrot.slane %v7841_v44, 5  ;;  %v5541_v59 = vld [vmem:[%s6678_s11 + $0xa8] sm:$0xe] }
 0x123   : > { %6095 = vmatpush3.bf16.msra.mxu1 %v6500_v50  ;;  %v4031_v48 = vor.u32 %v4030_v26, %v4027_v20  ;;  %v8133_v61 = vsel %vm6931_vm6, %v5556_v18, %v4497_v8  ;;  %v4499_v55 = vrot.slane %v4497_v8, 4  ;;  %v4013_v44 = vsel %vm6703_vm2, %v4008_v22, %v8055_v56  ;;  %v6449_v20 = vld [vmem:[%s6678_s11 + $0x48] sm:$0xff]   ;;  %v6502_v26 = vld [vmem:[%s6678_s11 + $0x20] sm:$0x1]  ;;  %v5542_v8 = vld [vmem:[%s6678_s11 + $0xb4] sm:$0xe] }
 0x124   : > { %v4023_v35 = vsel %vm6703_vm2, %v4018_v57, %v4022_v7  ;;  %v4420_v5 = vrot.slane %v6501_v12, 5  ;;  %v5508_v3 = vcombine.low %v3989_v45, %v3999_v24  ;;  %v5545_v19 = vrot.slane %v5529_v21, 9  ;;  %v5531_v12 = vld [vmem:[%s6678_s11 + $0x30] sm:$0xe] }
 0x125   : > { %6045 = vmatmul.mubr.msk.bf16.gmra.mrb[20].mxu0 %vm674_vm3, %v7982_v29  ;;  %v4041_v29 = vor.u32 %v4040_v43, %v8108_v27  ;;  %v8144_v50 = vsel %vm6931_vm6, %v4499_v55, %v4500_v11  ;;  %v5509_v56 = vcombine.low %v4013_v44, %v4023_v35  ;;  %v4032_v38 = vrot.slane %v4031_v48, 4  ;;  %v5530_v11 = vld [vmem:[%s6678_s11 + $0x24] sm:$0xe]  ;;  %v6503_v48 = vld [vmem:[%s6678_s11 + $0x28] sm:$0xf] }
 0x126   : > { %5885 = vmatmul.mubr.msk.bf16.gmra.mrb[4].mxu1 %vm674_vm3, %v6447_v63  ;;  %6048 = vmatprep.mubr.msk.bf16.mxu0 %vm674_vm3, %v5507_v4  ;;  %v4046_v4 = vrot.slane %v4044_v6, 5  ;;  %v5576_v42 = vcombine.low %v8133_v61, %v8144_v50  ;;  %v4423_v43 = vrot.slane %v6502_v26, 5  ;;  %v4422_v22 = vrot.slane %v4420_v5, 4  ;;  %v6504_v55 = vld [vmem:[%s6678_s11 + $0x34] sm:$0xf] }
 0x127   : > { %5888 = vmatprep.mubr.msk.bf16.mxu1 %vm674_vm3, %v6448_v52  ;;  %v4042_v63 = vrot.slane %v4041_v29, 4  ;;  %v6450_v52 = vld [vmem:[%s6678_s11 + $0x54] sm:$0xff]   ;;  %v5557_v57 = vrot.slane %v5541_v59, 9  ;;  %v4504_v7 = vrot.slane %v7844_v16, 5  ;;  %v4507_v18 = vrot.slane %v7887_v28, 5 }
 0x128   : > { %v4037_v16 = vsel %vm6703_vm2, %v4032_v38, %v8108_v27  ;;  %v4421_v6 = vsel %vm6931_vm6, %v5545_v19, %v4420_v5  ;;  %v4427_v29 = vrot.slane %v6503_v48, 5  ;;  %v4424_v21 = vsel %vm6931_vm6, %v4422_v22, %v4423_v43  ;;  %v6505_v19 = vld [vmem:[%s6678_s11 + $0x2c] sm:$0x1]  ;;  %v6451_v38 = vld [vmem:[%s6678_s11 + $0x60] sm:$0xff]   ;;  %v6520_v61 = vld [vmem:[%s6678_s11 + $0xc8] sm:$0x1] }
 0x129   : > { %v8158_v45 = vsel %vm6931_vm6, %v5557_v57, %v4504_v7  ;;  %v4506_v24 = vrot.slane %v4504_v7, 4  ;;  %v4047_v28 = vsel %vm6703_vm2, %v4042_v63, %v4046_v4  ;;  %v4434_v44 = vrot.slane %v6504_v55, 5  ;;  %v6452_v22 = vld [vmem:[%s6678_s11 + $0x6c] sm:$0xff]  }
 0x12a   : > { %v5558_v35 = vrot.slane %v5542_v8, 9  ;;  %v4511_v59 = vrot.slane %v7937_v31, 5  ;;  %v5546_v4 = vrot.slane %v5530_v11, 9  ;;  %v5565_v63 = vcombine.low %v4421_v6, %v4424_v21  ;;  %v6506_v31 = vld [vmem:[%s6678_s11 + $0x38] sm:$0x1] }
 0x12b   : > { %v8177_v27 = vsel %vm6931_vm6, %v4506_v24, %v4507_v18  ;;  %v4429_v26 = vrot.slane %v4427_v29, 4  ;;  %v5547_v57 = vrot.slane %v5531_v12, 9  ;;  %v4436_v7 = vrot.slane %v4434_v44, 4  ;;  %v5543_v8 = vld [vmem:[%s6678_s11 + $0xc0] sm:$0xe]  ;;  %v8587_v6 = vld [vmem:[#allocation8_spill] sm:$0xff] }
 0x12c   : > { %v5577_v5 = vcombine.low %v8158_v45, %v8177_v27  ;;  %v8188_v43 = vsel %vm6931_vm6, %v5558_v35, %v4511_v59  ;;  %v4437_v18 = vrot.slane %v6506_v31, 5  ;;  %v4441_v11 = vrot.slane %v8587_v6, 5  ;;  %v5532_v35 = vld [vmem:[%s6678_s11 + $0x3c] sm:$0xe]  ;;  %v6507_v6 = vld [vmem:[%s6678_s11 + $0x70] sm:$0xf] }
 0x12d   : > { %6049 = vmatmul.mubr.msk.bf16.gmra.mrb[24].mxu0 %vm674_vm3, %v5508_v3  ;;  %v5510_v3 = vcombine.low %v4037_v16, %v4047_v28  ;;  %v4428_v16 = vsel %vm6931_vm6, %v5546_v4, %v4427_v29  ;;  %v5559_v48 = vrot.slane %v5543_v8, 9  ;;  %v4435_v21 = vsel %vm6931_vm6, %v5547_v57, %v4434_v44  ;;  %v5241_v4 = vld [vmem:[%s6678_s11 + $0x6c] sm:$0xf] }
 0x12e   : > { %5889 = vmatmul.mubr.msk.bf16.gmra.mrb[8].mxu1 %vm674_vm3, %v6449_v20  ;;  %6052 = vmatprep.mubr.msk.bf16.mxu0 %vm674_vm3, %v5509_v56  ;;  %v4430_v20 = vrot.slane %v6505_v19, 5  ;;  %v4514_v56 = vrot.slane %v8015_v51, 5  ;;  %v4438_v55 = vsel %vm6931_vm6, %v4436_v7, %v4437_v18  ;;  %v4518_v12 = vrot.slane %v7999_v13, 5 }
 0x12f   : > { %5892 = vmatprep.mubr.msk.bf16.mxu1 %vm674_vm3, %v6450_v52  ;;  %v4513_v52 = vrot.slane %v4511_v59, 4  ;;  %v4521_v29 = vrot.slane %v8070_v40, 5  ;;  %v5544_v59 = vld [vmem:[%s6678_s11 + $0xcc] sm:$0xe]  ;;  %v4443_v44 = vrot.slane %v4441_v11, 4  ;;  %v2266_v57 = vshrl.u32 %v5241_v4, 16 }
 0x130   : > { %v4431_v28 = vsel %vm6931_vm6, %v4429_v26, %v4430_v20  ;;  %v8219_v19 = vsel %vm6931_vm6, %v5559_v48, %v4518_v12  ;;  %v4520_v20 = vrot.slane %v4518_v12, 4  ;;  %v8588_v26 = vld [vmem:[#allocation9_spill] sm:$0xff]  ;;  %v5560_v40 = vrot.slane %v5544_v59, 9 }
 0x131   : > { %v8195_v24 = vsel %vm6931_vm6, %v4513_v52, %v4514_v56  ;;  %v6453_v56 = vld [vmem:[%s6678_s11 + $0x78] sm:$0xff]   ;;  %v4444_v52 = vrot.slane %v8588_v26, 5  ;;  %v2269_v7 = vshll.u32 %v5241_v4, 16  ;;  %v4525_v18 = vrot.slane %v8058_v14, 5 }
 0x132   : > { %v5578_v51 = vcombine.low %v8188_v43, %v8195_v24  ;;  %v8226_v13 = vsel %vm6931_vm6, %v4520_v20, %v4521_v29  ;;  %v4528_v8 = vrot.slane %v8106_v53, 5  ;;  %v2275_v48 = vshll.u32 %v6507_v6, 16  ;;  %v6455_v29 = vld [vmem:[%s6678_s11 + $0x90] sm:$0xff]   ;;  %v6456_v20 = vld [vmem:[%s6678_s11 + $0x9c] sm:$0xff]  }
 0x133   : > { %v5579_v31 = vcombine.low %v8219_v19, %v8226_v13  ;;  %v8243_v14 = vsel %vm6931_vm6, %v5560_v40, %v4525_v18  ;;  %v4527_v53 = vrot.slane %v4525_v18, 4  ;;  %v5250_v18 = vld [vmem:[%s6678_s11 + $0x90] sm:$0xf]  ;;  %v2453_v50 = vshll.u32 %v6520_v61, 16 }
 0x134   : > { %v2277_v59 = vrot.slane %v2275_v48, 5 }
 0x135   : > { %6053 = vmatmul.mubr.msk.bf16.gmra.mrb[28].mxu0 %vm674_vm3, %v5510_v3  ;;  %v5566_v3 = vcombine.low %v4428_v16, %v4431_v28  ;;  %v4445_v28 = vsel %vm6931_vm6, %v4443_v44, %v4444_v52 }
 0x136   : > { %5893 = vmatmul.mubr.msk.bf16.gmra.mrb[12].mxu1 %vm674_vm3, %v6451_v38  ;;  %6060 = vmatprep.mubr.msk.bf16.mxu0 %vm674_vm3, %v5565_v63  ;;  %v5567_v38 = vcombine.low %v4435_v21, %v4438_v55  ;;  %v5548_v63 = vrot.slane %v5532_v35, 9  ;;  %v2279_v21 = vshrl.u32 %v6507_v6, 16  ;;  %v2268_v55 = vrot.slane %v2266_v57, 4  ;;  %v6458_v6 = vld [vmem:[%s6678_s11 + $0xb4] sm:$0xff]  }
 0x137   : > { %5896 = vmatprep.mubr.msk.bf16.mxu1 %vm674_vm3, %v6452_v22  ;;  %v6454_v22 = vld [vmem:[%s6678_s11 + $0x84] sm:$0xff]   ;;  %v2271_v35 = vrot.slane %v2269_v7, 5 }
 0x138   : > { %v4442_v16 = vsel %vm6931_vm6, %v5548_v63, %v4441_v11  ;;  %v8247_v11 = vsel %vm6931_vm6, %v4527_v53, %v4528_v8  ;;  %v6508_v63 = vld [vmem:[%s6678_s11 + $0x74] sm:$0x1]  ;;  %v6457_v8 = vld [vmem:[%s6678_s11 + $0xa8] sm:$0xff]   ;;  %v2338_v53 = vshrl.u32 %v5250_v18, 16 }
 0x139   : > { %v5568_v12 = vcombine.low %v4442_v16, %v4445_v28  ;;  %v5580_v4 = vcombine.low %v8243_v14, %v8247_v11  ;;  %v2285_v44 = vshll.u32 %v6508_v63, 16  ;;  %v5253_v28 = vld [vmem:[%s6678_s11 + $0x9c] sm:$0xf]  ;;  %v6512_v63 = vld [vmem:[%s6678_s11 + $0x8c] sm:$0x1] }
 0x13b   : > { %v2287_v49 = vrot.slane %v2285_v44, 5  ;;  %v2333_v44 = vshll.u32 %v6512_v63, 16 }
 0x13d   : > { %6061 = vmatmul.mubr.msk.bf16.vlgmr.msra.gmra.mrb[0].mxu0 %vm674_vm3, %v5566_v3  ;;  %v2281_v3 = vrot.slane %v2279_v21, 4 }
 0x13e   : > { %5897 = vmatmul.mubr.msk.bf16.gmra.mrb[16].mxu1 %vm674_vm3, %v6453_v56  ;;  %6064 = vmatprep.mubr.msk.bf16.mxu0 %vm674_vm3, %v5567_v38  ;;  %v5247_v56 = vld [vmem:[%s6678_s11 + $0x84] sm:$0xf]  ;;  %v2272_v38 = vor.u32 %v2271_v35, %v2268_v55  ;;  %v2341_v55 = vshll.u32 %v5250_v18, 16 }
 0x13f   : > { %5900 = vmatprep.mubr.msk.bf16.mxu1 %vm674_vm3, %v6454_v22  ;;  %v2282_v2 = vor.u32 %v2281_v3, %v2277_v59  ;;  %v2314_v26 = vshrl.u32 %v5247_v56, 16  ;;  %v2317_v52 = vshll.u32 %v5247_v56, 16  ;;  %v6509_v22 = vld [vmem:[%s6678_s11 + $0x88] sm:$0xf]  ;;  %v2365_v56 = vshll.u32 %v5253_v28, 16 }
 0x140   : > { %v2323_v40 = vshll.u32 %v6509_v22, 16  ;;  %v2327_v57 = vshrl.u32 %v6509_v22, 16  ;;  %v2273_v7 = vrot.slane %v2272_v38, 4  ;;  %v2371_v38 = vshll.u32 %v6511_v58, 16 }
 0x141   : > { %v2283_v16 = vrot.slane %v2282_v2, 4  ;;  %v2316_v33 = vrot.slane %v2314_v26, 4  ;;  %v2340_v26 = vrot.slane %v2338_v53, 4  ;;  %v2343_v25 = vrot.slane %v2341_v55, 5  ;;  %v6514_v55 = vld [vmem:[%s6678_s11 + $0xa4] sm:$0x1] }
 0x142   : > { %v8267_v48 = vrot.slane %v2323_v40, 5  ;;  %v2329_v21 = vrot.slane %v2327_v57, 4  ;;  %v2278_v35 = vsel %vm6703_vm2, %v2273_v7, %v2277_v59  ;;  %v2367_v22 = vrot.slane %v2365_v56, 5  ;;  %v6459_v40 = vld [vmem:[%s6678_s11 + $0xc0] sm:$0xff]  }
 0x143   : > { %v2288_v59 = vsel %vm6703_vm2, %v2283_v16, %v2287_v49  ;;  %v8290_v18 = vrot.slane %v2371_v38, 5  ;;  %v5256_v16 = vld [vmem:[%s6678_s11 + $0xa8] sm:$0xf] }
 0x144   : > { %v2330_v2 = vor.u32 %v2329_v21, %v8267_v48  ;;  %v5277_v57 = vcombine.low %v2278_v35, %v2288_v59  ;;  %v2381_v35 = vshll.u32 %v6514_v55, 16  ;;  %v2389_v34 = vshll.u32 %v5256_v16, 16 }
 0x145   : > { %6065 = vmatmul.mubr.msk.bf16.gmra.mrb[4].mxu0 %vm674_vm3, %v5568_v12  ;;  %v6510_v12 = vld [vmem:[%s6678_s11 + $0x94] sm:$0xf] }
 0x146   : > { %5901 = vmatmul.mubr.msk.bf16.gmra.mrb[20].mxu1 %vm674_vm3, %v6455_v29  ;;  %6068 = vmatprep.mubr.msk.bf16.mxu0 %vm674_vm3, %v5569_v54  ;;  %v2319_v54 = vrot.slane %v2317_v52, 5  ;;  %v2347_v29 = vshll.u32 %v6510_v12, 16  ;;  %v2351_v3 = vshrl.u32 %v6510_v12, 16  ;;  %v2331_v49 = vrot.slane %v2330_v2, 4 }
 0x147   : > { %5904 = vmatprep.mubr.msk.bf16.mxu1 %vm674_vm3, %v6456_v20  ;;  %v2362_v20 = vshrl.u32 %v5253_v28, 16  ;;  %v6513_v28 = vld [vmem:[%s6678_s11 + $0x98] sm:$0x1]  ;;  %v2386_v12 = vshrl.u32 %v5256_v16, 16  ;;  %v5262_v16 = vld [vmem:[%s6678_s11 + $0xc0] sm:$0xf] }
 0x148   : > { %v2320_v0 = vor.u32 %v2319_v54, %v2316_v33  ;;  %v8287_v23 = vrot.slane %v2347_v29, 5  ;;  %v2335_v33 = vrot.slane %v2333_v44, 5  ;;  %v2344_v54 = vor.u32 %v2343_v25, %v2340_v26  ;;  %v5259_v29 = vld [vmem:[%s6678_s11 + $0xb4] sm:$0xf] }
 0x149   : > { %v2364_v52 = vrot.slane %v2362_v20, 4  ;;  %v2399_v20 = vshrl.u32 %v6515_v17, 16  ;;  %v2410_v62 = vshrl.u32 %v5259_v29, 16  ;;  %v2413_v60 = vshll.u32 %v5259_v29, 16 }
 0x14a   : > { %v2321_v7 = vrot.slane %v2320_v0, 4  ;;  %v2336_v59 = vsel %vm6703_vm2, %v2331_v49, %v2335_v33  ;;  %v2345_v0 = vrot.slane %v2344_v54, 4  ;;  %v2383_v44 = vrot.slane %v2381_v35, 5 }
 0x14b   : > { %v2368_v53 = vor.u32 %v2367_v22, %v2364_v52  ;;  %v2388_v26 = vrot.slane %v2386_v12, 4  ;;  %v2401_v22 = vrot.slane %v2399_v20, 4  ;;  %v6519_v12 = vld [vmem:[%s6678_s11 + $0xbc] sm:$0x1] }
 0x14c   : > { %v2326_v56 = vsel %vm6703_vm2, %v2321_v7, %v8267_v48  ;;  %v2350_v49 = vsel %vm6703_vm2, %v2345_v0, %v8287_v23  ;;  %v2429_v46 = vshll.u32 %v6519_v12, 16 }
 0x14d   : > { %6069 = vmatmul.mubr.msk.bf16.gmra.mrb[8].mxu0 %vm674_vm3, %v5570_v47  ;;  %v2375_v47 = vshrl.u32 %v6511_v58, 16  ;;  %v2369_v63 = vrot.slane %v2368_v53, 4  ;;  %v5279_v48 = vcombine.low %v2326_v56, %v2336_v59 }
 0x14e   : > { %5905 = vmatmul.mubr.msk.bf16.gmra.mrb[24].mxu1 %vm674_vm3, %v6457_v8  ;;  %6072 = vmatprep.mubr.msk.bf16.mxu0 %vm674_vm3, %v5571_v36  ;;  %v2353_v36 = vrot.slane %v2351_v3, 4 }
 0x14f   : > { %5908 = vmatprep.mubr.msk.bf16.mxu1 %vm674_vm3, %v6458_v6  ;;  %v2377_v8 = vrot.slane %v2375_v47, 4  ;;  %v2357_v6 = vshll.u32 %v6513_v28, 16  ;;  %v2374_v54 = vsel %vm6703_vm2, %v2369_v63, %v8290_v18  ;;  %v2455_v63 = vrot.slane %v2453_v50, 5 }
 0x150   : > { %v2354_v21 = vor.u32 %v2353_v36, %v8287_v23  ;;  %v2391_v36 = vrot.slane %v2389_v34, 5  ;;  %v6517_v23 = vld [vmem:[%s6678_s11 + $0xb0] sm:$0x1] }
 0x151   : > { %v2378_v3 = vor.u32 %v2377_v8, %v8290_v18  ;;  %v2359_v58 = vrot.slane %v2357_v6, 5  ;;  %v2405_v28 = vshll.u32 %v6517_v23, 16  ;;  %v2434_v6 = vshrl.u32 %v5262_v16, 16 }
 0x152   : > { %v2355_v2 = vrot.slane %v2354_v21, 4  ;;  %v2392_v15 = vor.u32 %v2391_v36, %v2388_v26  ;;  %v2437_v18 = vshll.u32 %v5262_v16, 16  ;;  %v6518_v21 = vld [vmem:[%s6678_s11 + $0xc4] sm:$0xf] }
 0x153   : > { %v2379_v25 = vrot.slane %v2378_v3, 4  ;;  %v2443_v53 = vshll.u32 %v6518_v21, 16  ;;  %v2447_v55 = vshrl.u32 %v6518_v21, 16  ;;  %v2407_v34 = vrot.slane %v2405_v28, 5 }
 0x154   : > { %v2360_v33 = vsel %vm6703_vm2, %v2355_v2, %v2359_v58  ;;  %v2393_v29 = vrot.slane %v2392_v15, 4  ;;  %v2431_v58 = vrot.slane %v2429_v46, 5 }
 0x155   : > { %6073 = vmatmul.mubr.msk.bf16.gmra.mrb[12].mxu0 %vm674_vm3, %v5572_v39  ;;  %v2395_v39 = vshll.u32 %v6515_v17, 16  ;;  %v2384_v1 = vsel %vm6703_vm2, %v2379_v25, %v2383_v44  ;;  %v5280_v37 = vcombine.low %v2350_v49, %v2360_v33  ;;  %v2436_v17 = vrot.slane %v2434_v6, 4 }
 0x156   : > { %5909 = vmatmul.mubr.msk.bf16.gmra.mrb[28].mxu1 %vm674_vm3, %v6459_v40  ;;  %6076 = vmatprep.mubr.msk.bf16.mxu0 %vm674_vm3, %v5573_v9  ;;  %v6516_v9 = vld [vmem:[%s6678_s11 + $0xb8] sm:$0xf]  ;;  %v2412_v40 = vrot.slane %v2410_v62, 4  ;;  %v2445_v20 = vrot.slane %v2443_v53, 5  ;;  %v2449_v56 = vrot.slane %v2447_v55, 4  ;;  %s161_s11 = sand.u32 1, %s6575_s13  }
 0x157   : > { %5932 = vmatprep.mubr.msk.bf16.mxu1 %vm674_vm3, %v5277_v57  ;;  %v2419_v38 = vshll.u32 %v6516_v9, 16  ;;  %v2423_v47 = vshrl.u32 %v6516_v9, 16  ;;  %v2397_v52 = vrot.slane %v2395_v39, 5  ;;  %v2415_v57 = vrot.slane %v2413_v60, 5  ;;  %s5019_s17 = sshll.u32 %s161_s11, 8  ;;  %s8475_s16 = scalar_lea.sflag [#allocation3], %s161_s11 }
 0x158   : > { %v2439_v39 = vrot.slane %v2437_v18, 5  ;;  %s8398_s19 = scalar_lea.vmem [#allocation2], %s5019_s17 }
 0x159   : > { %v2421_v7 = vrot.slane %v2419_v38, 5  ;;  %v2425_v8 = vrot.slane %v2423_v47, 4  ;;  %v2398_v62 = vsel %vm6703_vm2, %v2393_v29, %v2397_v52  ;;  %v2450_v38 = vor.u32 %v2449_v56, %v2445_v20  ;;  %s4953_s24 = sshll.u32 %s8398_s19, 4  ;;  %s8468_s24 = int_to_ptr.vmem [resolvable:$true] %s4953_s24 }
 0x15a   : > { %v2440_v9 = vor.u32 %v2439_v39, %v2436_v17  ;;  %s6521_s28 = scalar_lea.vmem %s8468_s24, 4096  ;;  %p6528_p0 = scmp.lt.s32.totalorder %s8468_s24, %s6526_s30 }
 0x15b   : > { %v2426_v35 = vor.u32 %v2425_v8, %v2421_v7  ;;  %v2451_v2 = vrot.slane %v2450_v38, 4  ;;  %v8390_v8 = vld [vmem:[%s8518_s2] ss:$0 sm:$0xff]  ;;  %p6522_p11 = scmp.ne.s32.totalorder %s8468_s24, %s6521_s28  ;;  %p6529_p1 = scmp.lt.s32.totalorder %s6527_s4, %s6521_s28 }
 0x15c   : > { %v2441_v47 = vrot.slane %v2440_v9, 4 }
 0x15d   : > { %6077 = vmatmul.mubr.msk.bf16.gmra.mrb[16].mxu0 %vm674_vm3, %v5574_v41  ;;  %v2402_v41 = vor.u32 %v2401_v22, %v2397_v52  ;;  %v2427_v0 = vrot.slane %v2426_v35, 4  ;;  %v2456_v26 = vsel %vm6703_vm2, %v2451_v2, %v2455_v63  ;;  %p6523_p12 = pnand %p6522_p11, %p6646_p5  ;;  %p6530_p2 = por %p6529_p1, %p6528_p0 }
 0x15e   : > { %5933 = vmatmul.mubr.msk.bf16.vlgmr.msra.gmra.mrb[16].mxu1 %vm674_vm3, %v8093_v10  ;;  %6080 = vmatprep.mubr.msk.bf16.mxu0 %vm674_vm3, %v5575_v32  ;;  %v2416_v10 = vor.u32 %v2415_v57, %v2412_v40  ;;  %v5281_v32 = vcombine.low %v2374_v54, %v2384_v1  ;;  %v2446_v44 = vsel %vm6703_vm2, %v2441_v47, %v2445_v20 }
 0x15f   : > { %5936 = vmatprep.mubr.msk.bf16.mxu1 %vm674_vm3, %v5279_v48  ;;  %v2403_v3 = vrot.slane %v2402_v41, 4  ;;  %v2432_v45 = vsel %vm6703_vm2, %v2427_v0, %v2431_v58  ;;  %v5284_v25 = vcombine.low %v2446_v44, %v2456_v26  ;;  %p6524_p13 = pneg %p6523_p12 }
 0x160   : > { %v2417_v59 = vrot.slane %v2416_v10, 4 }
 0x161   : > { %v2408_v60 = vsel %vm6703_vm2, %v2403_v3, %v2407_v34  ;;  %p6531_p3 = pnand %p6530_p2, %p6524_p13 }
 0x162   : > { %v5282_v27 = vcombine.low %v2398_v62, %v2408_v60 }
 0x165   : > { %6081 = vmatmul.mubr.msk.bf16.gmra.mrb[20].mxu0 %vm674_vm3, %v5576_v42  ;;  %v2422_v42 = vsel %vm6703_vm2, %v2417_v59, %v2421_v7 }
 0x166   : > { %5937 = vmatmul.mubr.msk.bf16.gmra.mrb[20].mxu1 %vm674_vm3, %v5280_v37  ;;  %6084 = vmatprep.mubr.msk.bf16.mxu0 %vm674_vm3, %v5577_v5  ;;  %v5283_v5 = vcombine.low %v2422_v42, %v2432_v45 }
 0x167   : > { %5940 = vmatprep.mubr.msk.bf16.mxu1 %vm674_vm3, %v5281_v32 }
 0x16d   : > { %6085 = vmatmul.mubr.msk.bf16.gmra.mrb[24].mxu0 %vm674_vm3, %v5578_v51 }
 0x16e   : > { %5941 = vmatmul.mubr.msk.bf16.gmra.mrb[24].mxu1 %vm674_vm3, %v5282_v27  ;;  %6088 = vmatprep.mubr.msk.bf16.mxu0 %vm674_vm3, %v5579_v31 }
 0x16f   : > { %5944 = vmatprep.mubr.msk.bf16.mxu1 %vm674_vm3, %v5283_v5 }
 0x175   : > { %6089 = vmatmul.mubr.msk.bf16.gmra.mrb[28].mxu0 %vm674_vm3, %v5580_v4 }
 0x176   : > { %5945 = vmatmul.mubr.msk.bf16.gmra.mrb[28].mxu1 %vm674_vm3, %v5284_v25 }
 0x1f1   : > { %v5882_v43 = vpop.f32.mrb[0].mxu1 }
 0x1f2   : > { %v1866_v24 = vpop.f32.mrb[1].mxu1 }
 0x1f3   : > { %v5883_v51 = vpop.f32.mrb[2].mxu1 }
 0x1f4   : > { %v1869_v19 = vpop.f32.mrb[3].mxu1 }
 0x1f9   : > { %v5886_v13 = vpop.f32.mrb[4].mxu1 }
 0x1fa   : > { %v1882_v31 = vpop.f32.mrb[5].mxu1 }
 0x1fb   : > { %v5887_v36 = vpop.f32.mrb[6].mxu1 }
 0x1fc   : > { %v1885_v52 = vpop.f32.mrb[7].mxu1 }
 0x201   : > { %v5890_v30 = vpop.f32.mrb[8].mxu1 }
 0x202   : > { %v1898_v22 = vpop.f32.mrb[9].mxu1 }
 0x203   : > { %v5891_v48 = vpop.f32.mrb[10].mxu1 }
 0x204   : > { %v1901_v40 = vpop.f32.mrb[11].mxu1 }
 0x209   : > { %v8378_v57 = vpop.f32.mrb[12].mxu1 }
 0x20a   : > { %v8380_v14 = vpop.f32.mrb[13].mxu1 }
 0x20b   : > { %v8382_v11 = vpop.f32.mrb[14].mxu1 }
 0x20c   : > { %v8384_v4 = vpop.f32.mrb[15].mxu1 }
 0x210   : > { %v6062_v7 = vpop.f32.mrb[0].mxu0 }
 0x211   : > { %v6096_v16 = vadd.f32 %v6062_v7, %v5882_v43  ;;  %v4677_v49 = vpop.f32.mrb[1].mxu0 }
 0x212   : > { %v6097_v33 = vadd.f32 %v4677_v49, %v1866_v24  ;;  %v6063_v54 = vpop.f32.mrb[2].mxu0 }
 0x213   : > { %v4845_v1 = vadd.f32 %v6096_v16, %v8390_v8  ;;  %v6098_v15 = vadd.f32 %v6063_v54, %v5883_v51  ;;  %v4680_v41 = vpop.f32.mrb[3].mxu0 }
 0x214   : > { %v4843_v23 = vadd.f32 %v6097_v33, %v8390_v8  ;;  %v6099_v28 = vadd.f32 %v4680_v41, %v1869_v19 }
 0x215   : > { %v4877_v6 = vmax.f32 %v4845_v1, 0.0  ;;  %v4846_v18 = vadd.f32 %v6098_v15, %v8390_v8 }
 0x216   : > { %v4875_v21 = vmax.f32 %v4843_v23, 0.0  ;;  %v4844_v53 = vadd.f32 %v6099_v28, %v8390_v8 }
 0x217   : > { %4909 = vst [vmem:[%s8398_s19 + $0x10] sm:$0xff] %v4877_v6  ;;  %v4878_v55 = vmax.f32 %v4846_v18, 0.0 }
 0x218   : > { %4907 = vst [vmem:[%s8398_s19] sm:$0xff] %v4875_v21  ;;  %v4876_v10 = vmax.f32 %v4844_v53, 0.0  ;;  %v6066_v35 = vpop.f32.mrb[4].mxu0 }
 0x219   : > { %4910 = vst [vmem:[%s8398_s19 + $0x18] sm:$0xff] %v4878_v55  ;;  %v6100_v12 = vadd.f32 %v6066_v35, %v5886_v13  ;;  %v4693_v46 = vpop.f32.mrb[5].mxu0 }
 0x21a   : > { %4908 = vst [vmem:[%s8398_s19 + $0x8] sm:$0xff] %v4876_v10  ;;  %v6101_v37 = vadd.f32 %v4693_v46, %v1882_v31  ;;  %v6067_v32 = vpop.f32.mrb[6].mxu0 }
 0x21b   : > { %v4849_v29 = vadd.f32 %v6100_v12, %v8390_v8  ;;  %v6102_v3 = vadd.f32 %v6067_v32, %v5887_v36  ;;  %v4696_v34 = vpop.f32.mrb[7].mxu0 }
 0x21c   : > { %v4847_v17 = vadd.f32 %v6101_v37, %v8390_v8  ;;  %v6103_v39 = vadd.f32 %v4696_v34, %v1885_v52 }
 0x21d   : > { %v4881_v20 = vmax.f32 %v4849_v29, 0.0  ;;  %v4850_v56 = vadd.f32 %v6102_v3, %v8390_v8 }
 0x21e   : > { %v4879_v59 = vmax.f32 %v4847_v17, 0.0  ;;  %v4848_v0 = vadd.f32 %v6103_v39, %v8390_v8 }
 0x21f   : > { %4913 = vst [vmem:[%s8398_s19 + $0x30] sm:$0xff] %v4881_v20  ;;  %v4882_v58 = vmax.f32 %v4850_v56, 0.0 }
 0x220   : > { %4911 = vst [vmem:[%s8398_s19 + $0x20] sm:$0xff] %v4879_v59  ;;  %v4880_v62 = vmax.f32 %v4848_v0, 0.0  ;;  %v6070_v60 = vpop.f32.mrb[8].mxu0 }
 0x221   : > { %4914 = vst [vmem:[%s8398_s19 + $0x38] sm:$0xff] %v4882_v58  ;;  %v6104_v9 = vadd.f32 %v6070_v60, %v5890_v30  ;;  %v4709_v38 = vpop.f32.mrb[9].mxu0 }
 0x222   : > { %4912 = vst [vmem:[%s8398_s19 + $0x28] sm:$0xff] %v4880_v62  ;;  %v6105_v61 = vadd.f32 %v4709_v38, %v1898_v22  ;;  %v6071_v50 = vpop.f32.mrb[10].mxu0 }
 0x223   : > { %v4853_v42 = vadd.f32 %v6104_v9, %v8390_v8  ;;  %v6106_v45 = vadd.f32 %v6071_v50, %v5891_v48  ;;  %v4712_v27 = vpop.f32.mrb[11].mxu0 }
 0x224   : > { %v4851_v5 = vadd.f32 %v6105_v61, %v8390_v8  ;;  %v6107_v47 = vadd.f32 %v4712_v27, %v1901_v40 }
 0x225   : > { %v4885_v2 = vmax.f32 %v4853_v42, 0.0  ;;  %v4854_v63 = vadd.f32 %v6106_v45, %v8390_v8 }
 0x226   : > { %v4883_v44 = vmax.f32 %v4851_v5, 0.0  ;;  %v4852_v26 = vadd.f32 %v6107_v47, %v8390_v8 }
 0x227   : > { %4917 = vst [vmem:[%s8398_s19 + $0x50] sm:$0xff] %v4885_v2  ;;  %v4886_v25 = vmax.f32 %v4854_v63, 0.0 }
 0x228   : > { %4915 = vst [vmem:[%s8398_s19 + $0x40] sm:$0xff] %v4883_v44  ;;  %v4884_v43 = vmax.f32 %v4852_v26, 0.0  ;;  %v6074_v24 = vpop.f32.mrb[12].mxu0 }
 0x229   : > { %4918 = vst [vmem:[%s8398_s19 + $0x58] sm:$0xff] %v4886_v25  ;;  %v6108_v51 = vadd.f32 %v6074_v24, %v8378_v57  ;;  %v4725_v19 = vpop.f32.mrb[13].mxu0 }
 0x22a   : > { %4916 = vst [vmem:[%s8398_s19 + $0x48] sm:$0xff] %v4884_v43  ;;  %v6109_v13 = vadd.f32 %v4725_v19, %v8380_v14  ;;  %v6075_v31 = vpop.f32.mrb[14].mxu0 }
 0x22b   : > { %v4857_v36 = vadd.f32 %v6108_v51, %v8390_v8  ;;  %v6110_v52 = vadd.f32 %v6075_v31, %v8382_v11  ;;  %v4728_v30 = vpop.f32.mrb[15].mxu0 }
 0x22c   : > { %v4855_v22 = vadd.f32 %v6109_v13, %v8390_v8  ;;  %v6111_v48 = vadd.f32 %v4728_v30, %v8384_v4 }
 0x22d   : > { %v4889_v40 = vmax.f32 %v4857_v36, 0.0  ;;  %v4858_v57 = vadd.f32 %v6110_v52, %v8390_v8 }
 0x22e   : > { %v4887_v7 = vmax.f32 %v4855_v22, 0.0  ;;  %v4856_v16 = vadd.f32 %v6111_v48, %v8390_v8 }
 0x22f   : > { %4921 = vst [vmem:[%s8398_s19 + $0x70] sm:$0xff] %v4889_v40  ;;  %v4890_v14 = vmax.f32 %v4858_v57, 0.0 }
 0x230   : > { %4919 = vst [vmem:[%s8398_s19 + $0x60] sm:$0xff] %v4887_v7  ;;  %v4888_v49 = vmax.f32 %v4856_v16, 0.0  ;;  %v6078_v33 = vpop.f32.mrb[16].mxu0 }
 0x231   : > { %4922 = vst [vmem:[%s8398_s19 + $0x78] sm:$0xff] %v4890_v14  ;;  %v5934_v54 = vpop.f32.mrb[16].mxu1  ;;  %v4741_v11 = vpop.f32.mrb[17].mxu0 }
 0x232   : > { %4920 = vst [vmem:[%s8398_s19 + $0x68] sm:$0xff] %v4888_v49  ;;  %v6112_v1 = vadd.f32 %v6078_v33, %v5934_v54  ;;  %v2668_v15 = vpop.f32.mrb[17].mxu1  ;;  %v6079_v41 = vpop.f32.mrb[18].mxu0 }
 0x233   : > { %v6113_v4 = vadd.f32 %v4741_v11, %v2668_v15  ;;  %v5935_v23 = vpop.f32.mrb[18].mxu1  ;;  %v4744_v28 = vpop.f32.mrb[19].mxu0 }
 0x234   : > { %v4861_v6 = vadd.f32 %v6112_v1, %v8390_v8  ;;  %v6114_v18 = vadd.f32 %v6079_v41, %v5935_v23  ;;  %v2671_v21 = vpop.f32.mrb[19].mxu1 }
 0x235   : > { %v4859_v53 = vadd.f32 %v6113_v4, %v8390_v8  ;;  %v6115_v55 = vadd.f32 %v4744_v28, %v2671_v21 }
 0x236   : > { %v4893_v10 = vmax.f32 %v4861_v6, 0.0  ;;  %v4862_v35 = vadd.f32 %v6114_v18, %v8390_v8 }
 0x237   : > { %v4891_v12 = vmax.f32 %v4859_v53, 0.0  ;;  %v4860_v46 = vadd.f32 %v6115_v55, %v8390_v8 }
 0x238   : > { %4925 = vst [vmem:[%s8398_s19 + $0x90] sm:$0xff] %v4893_v10  ;;  %v4894_v37 = vmax.f32 %v4862_v35, 0.0  ;;  %v6082_v32 = vpop.f32.mrb[20].mxu0 }
 0x239   : > { %4923 = vst [vmem:[%s8398_s19 + $0x80] sm:$0xff] %v4891_v12  ;;  %v4892_v29 = vmax.f32 %v4860_v46, 0.0  ;;  %v5938_v3 = vpop.f32.mrb[20].mxu1  ;;  %v4757_v34 = vpop.f32.mrb[21].mxu0 }
 0x23a   : > { %4926 = vst [vmem:[%s8398_s19 + $0x98] sm:$0xff] %v4894_v37  ;;  %v6116_v17 = vadd.f32 %v6082_v32, %v5938_v3  ;;  %v2684_v39 = vpop.f32.mrb[21].mxu1  ;;  %v6083_v20 = vpop.f32.mrb[22].mxu0 }
 0x23b   : > { %4924 = vst [vmem:[%s8398_s19 + $0x88] sm:$0xff] %v4892_v29  ;;  %v6117_v56 = vadd.f32 %v4757_v34, %v2684_v39  ;;  %v5939_v59 = vpop.f32.mrb[22].mxu1  ;;  %v4760_v0 = vpop.f32.mrb[23].mxu0 }
 0x23c   : > { %v4865_v58 = vadd.f32 %v6116_v17, %v8390_v8  ;;  %v6118_v62 = vadd.f32 %v6083_v20, %v5939_v59  ;;  %v2687_v60 = vpop.f32.mrb[23].mxu1 }
 0x23d   : > { %v4863_v9 = vadd.f32 %v6117_v56, %v8390_v8  ;;  %v6119_v38 = vadd.f32 %v4760_v0, %v2687_v60 }
 0x23e   : > { %v4897_v61 = vmax.f32 %v4865_v58, 0.0  ;;  %v4866_v50 = vadd.f32 %v6118_v62, %v8390_v8 }
 0x23f   : > { %v4895_v42 = vmax.f32 %v4863_v9, 0.0  ;;  %v4864_v45 = vadd.f32 %v6119_v38, %v8390_v8 }
 0x240   : > { %4929 = vst [vmem:[%s8398_s19 + $0xb0] sm:$0xff] %v4897_v61  ;;  %v4898_v27 = vmax.f32 %v4866_v50, 0.0  ;;  %v6086_v5 = vpop.f32.mrb[24].mxu0 }
 0x241   : > { %4927 = vst [vmem:[%s8398_s19 + $0xa0] sm:$0xff] %v4895_v42  ;;  %v4896_v47 = vmax.f32 %v4864_v45, 0.0  ;;  %v5942_v2 = vpop.f32.mrb[24].mxu1  ;;  %v4773_v63 = vpop.f32.mrb[25].mxu0 }
 0x242   : > { %4930 = vst [vmem:[%s8398_s19 + $0xb8] sm:$0xff] %v4898_v27  ;;  %v6120_v44 = vadd.f32 %v6086_v5, %v5942_v2  ;;  %v2700_v26 = vpop.f32.mrb[25].mxu1  ;;  %v6087_v25 = vpop.f32.mrb[26].mxu0 }
 0x243   : > { %4928 = vst [vmem:[%s8398_s19 + $0xa8] sm:$0xff] %v4896_v47  ;;  %v6121_v43 = vadd.f32 %v4773_v63, %v2700_v26  ;;  %v5943_v24 = vpop.f32.mrb[26].mxu1  ;;  %v4776_v51 = vpop.f32.mrb[27].mxu0 }
 0x244   : > { %v4869_v19 = vadd.f32 %v6120_v44, %v8390_v8  ;;  %v6122_v13 = vadd.f32 %v6087_v25, %v5943_v24  ;;  %v2703_v31 = vpop.f32.mrb[27].mxu1 }
 0x245   : > { %v4867_v36 = vadd.f32 %v6121_v43, %v8390_v8  ;;  %v6123_v52 = vadd.f32 %v4776_v51, %v2703_v31 }
 0x246   : > { %v4901_v30 = vmax.f32 %v4869_v19, 0.0  ;;  %v4870_v22 = vadd.f32 %v6122_v13, %v8390_v8 }
 0x247   : > { %v4899_v48 = vmax.f32 %v4867_v36, 0.0  ;;  %v4868_v40 = vadd.f32 %v6123_v52, %v8390_v8 }
 0x248   : > { %4933 = vst [vmem:[%s8398_s19 + $0xd0] sm:$0xff] %v4901_v30  ;;  %v4902_v57 = vmax.f32 %v4870_v22, 0.0  ;;  %v6090_v7 = vpop.f32.mrb[28].mxu0 }
 0x249   : > { %4931 = vst [vmem:[%s8398_s19 + $0xc0] sm:$0xff] %v4899_v48  ;;  %v4900_v16 = vmax.f32 %v4868_v40, 0.0  ;;  %v5946_v14 = vpop.f32.mrb[28].mxu1  ;;  %v4789_v49 = vpop.f32.mrb[29].mxu0 }
 0x24a   : > { %4934 = vst [vmem:[%s8398_s19 + $0xd8] sm:$0xff] %v4902_v57  ;;  %v6124_v33 = vadd.f32 %v6090_v7, %v5946_v14  ;;  %v2716_v54 = vpop.f32.mrb[29].mxu1  ;;  %v6091_v11 = vpop.f32.mrb[30].mxu0 }
 0x24b   : > { %4932 = vst [vmem:[%s8398_s19 + $0xc8] sm:$0xff] %v4900_v16  ;;  %v6125_v1 = vadd.f32 %v4789_v49, %v2716_v54  ;;  %v5947_v15 = vpop.f32.mrb[30].mxu1  ;;  %v4792_v41 = vpop.f32.mrb[31].mxu0 }
 0x24c   : > { %v4873_v4 = vadd.f32 %v6124_v33, %v8390_v8  ;;  %v6126_v23 = vadd.f32 %v6091_v11, %v5947_v15  ;;  %v2719_v28 = vpop.f32.mrb[31].mxu1 }
 0x24d   : > { %v4871_v6 = vadd.f32 %v6125_v1, %v8390_v8  ;;  %v6127_v18 = vadd.f32 %v4792_v41, %v2719_v28 }
 0x24e   : > { %v4905_v21 = vmax.f32 %v4873_v4, 0.0  ;;  %v4874_v53 = vadd.f32 %v6126_v23, %v8390_v8 }
 0x24f   : > { %v4903_v55 = vmax.f32 %v4871_v6, 0.0  ;;  %v4872_v10 = vadd.f32 %v6127_v18, %v8390_v8 }
 0x250   : > { %4937 = vst [vmem:[%s8398_s19 + $0xf0] sm:$0xff] %v4905_v21  ;;  %v4906_v35 = vmax.f32 %v4874_v53, 0.0 }
 0x251   : > { %4935 = vst [vmem:[%s8398_s19 + $0xe0] sm:$0xff] %v4903_v55  ;;  %v4904_v12 = vmax.f32 %v4872_v10, 0.0 }
 0x252   : > { %4938 = vst [vmem:[%s8398_s19 + $0xf8] sm:$0xff] %v4906_v35 }
 0x253   : > { %4936 = vst [vmem:[%s8398_s19 + $0xe8] sm:$0xff] %v4904_v12 }
 0x254   : > { %6534 = shalt.err (!%p6531_p3)
}
 0x255   : > { %s6535_s5 = scalar_lea.hbm %s8466_s27, 4096  ;;  %s6539_s8 = scalar_lea.hbm %s8519_s3, 8192 }
 0x256   : > { %p6536_p4 = scmp.ne.s32.totalorder %s8466_s27, %s6535_s5  ;;  %p6540_p9 = scmp.lt.u32.totalorder %s8466_s27, %s8519_s3 }
 0x257   : > { %p6541_p10 = scmp.lt.u32.totalorder %s6539_s8, %s6535_s5  ;;  %p6543_p12 = scmp.lt.u32.totalorder %s6535_s5, %s8466_s27 }
 0x258   : > { %p6537_p7 = pnand %p6536_p4, %p6646_p5 }
 0x259   : > { %p6542_p11 = por %p6541_p10, %p6540_p9 }
 0x25a   : > { %p6538_p8 = pneg %p6537_p7 }
 0x25b   : > { %p6544_p13 = por %p6543_p12, %p6542_p11 }
 0x25d   : > { %p6545_p0 = pnand %p6544_p13, %p6538_p8 }
 0x25f   : > { %6548 = shalt.err (!%p6545_p0)
}
 0x260   : > { %s6586_s10 = smov 128   ;;  %s6587_s17 = smov 8  }
 0x261   : > { %6353 = dma.vmem_to_hbm [thread:$0]  (%p6646_p5), %s8468_s24, 4096, %s8466_s27, %s8475_s16, %s6586_s10, %s6586_s10, %s6587_s17  }
 0x262 PF: > { %p6359_p1 = scmp.ge.s32.totalorder %s6583_s15, 2  ;;  %s4968_s19 = sand.u32 1, %s6571_s12  }
 0x263   : > { %s4969_s20 = scalar_lea.sflag [#allocation3], %s4968_s19 }
 0x264   : > { %p6356_p2 = pnand %p6359_p1, %p6650_p6 }
 0x266   : > { %6566 = dma.done.wait (!%p6356_p2), %s4969_s20, 4096  }
 0x267   : > { %6568 = vsyncadd (!%p6356_p2), %s4969_s20, 4294963200  ;;  %p13_p3 = scmp.ge.s32.totalorder %s6633_s18, 4   ;;  %s8589_s12 = smov %s6575_s13 }
 0x268   : > { %s8590_s13 = smov %s6579_s14  ;;  %s8591_s14 = smov %s6644_s21 }
 0x269   : > { %s8592_s15 = smov %s6633_s18  ;;  %15 = sbr.rel (!%p13_p3) target bundleno = 3 (0x3), region = 77 }
 0x270   :  { %4974 = vsyncpa [#allocation3], 1 }
 0x271   :  { %4976 = vsyncpa [#allocation3 + $0x1], 1 }

</bundles_post_ra>
